<compile_context>
chip_gen: v7x
topology: tpu7x:2x2x1
jax: 0.10.0
libtpu: 0.0.40
codegen_flags: <defaults>
</compile_context>

<pallas_src>
import jax
import jax.numpy as jnp
import numpy as np
from jax.experimental import pallas as pl
from jax.experimental.pallas import tpu as pltpu

K1 = 5        # conv1 kernel size
C_IN = 1      # conv1 in channels (squeezed away in the kernel)
C_MID = 6     # conv1 out channels
K2 = 2        # conv-transpose kernel size == stride  (non-overlapping)
C_OUT = 1     # conv-transpose out channels (3 // 2 == 1 in the original module)


def fused_conv_convt_kernel(x_ref, w1_ref, b1_ref, w2_ref, b2_ref, o_ref):
    """Fused conv(5x5)+ReLU -> convT(2x2, s=2)+ReLU for one batch element.

    x_ref : VMEM (1, H, W)            input image (C_IN == 1 squeezed)
    w1_ref: SMEM (C_MID*K1*K1,)       conv1 weights, index [c*25 + kh*5 + kw]
    b1_ref: SMEM (C_MID,)             conv1 bias
    w2_ref: SMEM (C_MID*K2*K2,)       convT weights, index [c*4 + a*2 + b]
    b2_ref: SMEM (C_OUT,)             convT bias
    o_ref : VMEM (1, Ho, K2*K2*Wo)    packed output: [i, p*Wo + j] = patch_p[i, j]
    """
    Ho = o_ref.shape[1]
    Wo = o_ref.shape[2] // (K2 * K2)

    # ---- stage 1: 5x5 valid conv (1 -> 6 channels) + bias + ReLU ------------
    # Accumulators are (Ho, Wo) vreg slabs; intermediate never touches HBM.
    accs = [jnp.full((Ho, Wo), b1_ref[c], jnp.float32) for c in range(C_MID)]
    for kh in range(K1):
        for kw in range(K1):
            # one shifted-window load per tap, shared by all 6 channels
            win = x_ref[0, kh:kh + Ho, kw:kw + Wo]            # (Ho, Wo)
            for c in range(C_MID):
                accs[c] = accs[c] + win * w1_ref[c * K1 * K1 + kh * K1 + kw]
    h = [jnp.maximum(a, 0.0) for a in accs]

    # ---- stage 2: convT k=2, s=2 (non-overlapping) + bias + ReLU ------------
    # Each input pixel emits a (K2, K2) output patch; plane p = a*K2 + b.
    patches = []
    for p in range(K2 * K2):
        acc = jnp.full((Ho, Wo), b2_ref[0], jnp.float32)
        for c in range(C_MID):
            acc = acc + h[c] * w2_ref[c * K2 * K2 + p]
        patches.append(jnp.maximum(acc, 0.0))

    # Lane-dense packed writeback (Ho, 4*Wo) = (12, 48); pixel shuffle is done
    # by the wrapper as a pure-layout reshape on a ~5 KB tensor.
    o_ref[0] = jnp.concatenate(patches, axis=-1)


def conv_transpose_net(x_nchw, params):
    """Forward pass matching the PyTorch ConvTransposeNet (NCHW in, NCHW out)."""
    w1, b1, w2, b2 = params      # torch layouts: w1 (C_MID,C_IN,K1,K1), w2 (C_MID,C_OUT,K2,K2)
    N, _, H, W = x_nchw.shape
    Ho, Wo = H - K1 + 1, W - K1 + 1

    # C_IN == 1: squeeze instead of transposing to NHWC (keeps W in the lane axis).
    x = x_nchw.reshape(N, H, W).astype(jnp.float32)

    # Flatten the tiny parameter tensors for 1-D SMEM residence (scalar taps).
    w1_flat = w1[:, 0, :, :].reshape(C_MID * K1 * K1).astype(jnp.float32)
    w2_flat = w2[:, 0, :, :].reshape(C_MID * K2 * K2).astype(jnp.float32)
    b1_flat = b1.reshape(C_MID).astype(jnp.float32)
    b2_flat = b2.reshape(C_OUT).astype(jnp.float32)

    smem = pl.BlockSpec(memory_space=pltpu.MemorySpace.SMEM)
    packed = pl.pallas_call(
        fused_conv_convt_kernel,
        out_shape=jax.ShapeDtypeStruct((N, Ho, K2 * K2 * Wo), jnp.float32),
        grid=(N,),
        in_specs=[
            pl.BlockSpec((1, H, W), lambda n: (n, 0, 0)),
            smem, smem, smem, smem,
        ],
        out_specs=pl.BlockSpec((1, Ho, K2 * K2 * Wo), lambda n: (n, 0, 0)),
        compiler_params=pltpu.CompilerParams(
            dimension_semantics=("parallel",)),   # batch split feeds both v7x TCs
    )(x, w1_flat, b1_flat, w2_flat, b2_flat)

    # Pixel shuffle (pure layout): packed[n, i, (a*K2+b)*Wo + j] -> y[n, 2i+a, 2j+b]
    y = packed.reshape(N, Ho, K2, K2, Wo)                       # [n, i, a, b, j]
    y = jnp.transpose(y, (0, 1, 2, 4, 3)).reshape(N, Ho * K2, Wo * K2)
    return y[:, None, :, :]                                     # NCHW (N, 1, 2Ho, 2Wo)


def reference_forward(x_nchw, params):
    """Pure-JAX reference using lax convolutions (PyTorch semantics)."""
    w1, b1, w2, b2 = params
    h = jax.lax.conv_general_dilated(
        x_nchw, w1, window_strides=(1, 1), padding="VALID",
        dimension_numbers=("NCHW", "OIHW", "NCHW"),
        precision=jax.lax.Precision.HIGHEST)
    h = jnp.maximum(h + b1.reshape(1, C_MID, 1, 1), 0.0)
    # ConvTranspose2d == conv with lhs dilation, flipped kernel, I/O swapped.
    w2_oihw_flipped = jnp.transpose(w2, (1, 0, 2, 3))[:, :, ::-1, ::-1]
    y = jax.lax.conv_general_dilated(
        h, w2_oihw_flipped, window_strides=(1, 1),
        padding=((K2 - 1, K2 - 1), (K2 - 1, K2 - 1)),
        lhs_dilation=(K2, K2),
        dimension_numbers=("NCHW", "OIHW", "NCHW"),
        precision=jax.lax.Precision.HIGHEST)
    return jnp.maximum(y + b2.reshape(1, C_OUT, 1, 1), 0.0)


if __name__ == "__main__":
    key = jax.random.PRNGKey(0)
    kx, k1, k2, k3, k4 = jax.random.split(key, 5)

    # Small input consistent with the module: NCHW, 1 input channel.
    x = jax.random.normal(kx, (2, C_IN, 16, 16), dtype=jnp.float32)

    # Deterministic synthetic parameters (torch layouts).
    w1 = jax.random.normal(k1, (C_MID, C_IN, K1, K1), dtype=jnp.float32) * 0.2
    b1 = jax.random.normal(k2, (C_MID,), dtype=jnp.float32) * 0.1
    w2 = jax.random.normal(k3, (C_MID, C_OUT, K2, K2), dtype=jnp.float32) * 0.2
    b2 = jax.random.normal(k4, (C_OUT,), dtype=jnp.float32) * 0.1
    params = (w1, b1, w2, b2)

    out = jax.block_until_ready(conv_transpose_net(x, params))
    ref = jax.block_until_ready(reference_forward(x, params))

    assert out.shape == (2, C_OUT, 24, 24), out.shape
    np.testing.assert_allclose(np.asarray(out), np.asarray(ref),
                               rtol=1e-4, atol=1e-4)
    print("KERNEL_OK")
</pallas_src>

<mosaic_0001>
module attributes {stable_mosaic.version = 11 : i64} {
  func.func @fused_conv_convt_kernel(%arg0: i32, %arg1: memref<1x16x16xf32, #tpu.memory_space<vmem>>, %arg2: memref<150xf32, #tpu.memory_space<smem>>, %arg3: memref<6xf32, #tpu.memory_space<smem>>, %arg4: memref<24xf32, #tpu.memory_space<smem>>, %arg5: memref<1xf32, #tpu.memory_space<smem>>, %arg6: memref<1x12x48xf32, #tpu.memory_space<vmem>>) attributes {dimension_semantics = [#tpu.dimension_semantics<parallel>], iteration_bounds = array<i64: 2>, scalar_prefetch = 0 : i64, scratch_operands = 0 : i64, tpu.core_type = #tpu.core_type<tc>, window_params = [{transform_indices = @transform_0, window_bounds = array<i64: 1, 16, 16>}, {transform_indices = @transform_1, window_bounds = array<i64: 150>}, {transform_indices = @transform_2, window_bounds = array<i64: 6>}, {transform_indices = @transform_3, window_bounds = array<i64: 24>}, {transform_indices = @transform_4, window_bounds = array<i64: 1>}, {transform_indices = @transform_5, window_bounds = array<i64: 1, 12, 48>}]} {
    %c0 = arith.constant 0 : index
    %0 = memref.load %arg3[%c0] : memref<6xf32, #tpu.memory_space<smem>>
    %1 = vector.broadcast %0 : f32 to vector<12x12xf32>
    %c1 = arith.constant 1 : index
    %2 = memref.load %arg3[%c1] : memref<6xf32, #tpu.memory_space<smem>>
    %3 = vector.broadcast %2 : f32 to vector<12x12xf32>
    %c2 = arith.constant 2 : index
    %4 = memref.load %arg3[%c2] : memref<6xf32, #tpu.memory_space<smem>>
    %5 = vector.broadcast %4 : f32 to vector<12x12xf32>
    %c3 = arith.constant 3 : index
    %6 = memref.load %arg3[%c3] : memref<6xf32, #tpu.memory_space<smem>>
    %7 = vector.broadcast %6 : f32 to vector<12x12xf32>
    %c4 = arith.constant 4 : index
    %8 = memref.load %arg3[%c4] : memref<6xf32, #tpu.memory_space<smem>>
    %9 = vector.broadcast %8 : f32 to vector<12x12xf32>
    %c5 = arith.constant 5 : index
    %10 = memref.load %arg3[%c5] : memref<6xf32, #tpu.memory_space<smem>>
    %11 = vector.broadcast %10 : f32 to vector<12x12xf32>
    %c0_0 = arith.constant 0 : index
    %c0_1 = arith.constant 0 : index
    %c0_2 = arith.constant 0 : index
    %12 = vector.load %arg1[%c0_0, %c0_1, %c0_2] : memref<1x16x16xf32, #tpu.memory_space<vmem>>, vector<1x12x12xf32>
    %13 = vector.shape_cast %12 : vector<1x12x12xf32> to vector<12x12xf32>
    %c0_3 = arith.constant 0 : index
    %14 = memref.load %arg2[%c0_3] : memref<150xf32, #tpu.memory_space<smem>>
    %15 = vector.broadcast %14 : f32 to vector<12x12xf32>
    %16 = arith.mulf %13, %15 : vector<12x12xf32>
    %17 = arith.addf %1, %16 : vector<12x12xf32>
    %c25 = arith.constant 25 : index
    %18 = memref.load %arg2[%c25] : memref<150xf32, #tpu.memory_space<smem>>
    %19 = vector.broadcast %18 : f32 to vector<12x12xf32>
    %20 = arith.mulf %13, %19 : vector<12x12xf32>
    %21 = arith.addf %3, %20 : vector<12x12xf32>
    %c50 = arith.constant 50 : index
    %22 = memref.load %arg2[%c50] : memref<150xf32, #tpu.memory_space<smem>>
    %23 = vector.broadcast %22 : f32 to vector<12x12xf32>
    %24 = arith.mulf %13, %23 : vector<12x12xf32>
    %25 = arith.addf %5, %24 : vector<12x12xf32>
    %c75 = arith.constant 75 : index
    %26 = memref.load %arg2[%c75] : memref<150xf32, #tpu.memory_space<smem>>
    %27 = vector.broadcast %26 : f32 to vector<12x12xf32>
    %28 = arith.mulf %13, %27 : vector<12x12xf32>
    %29 = arith.addf %7, %28 : vector<12x12xf32>
    %c100 = arith.constant 100 : index
    %30 = memref.load %arg2[%c100] : memref<150xf32, #tpu.memory_space<smem>>
    %31 = vector.broadcast %30 : f32 to vector<12x12xf32>
    %32 = arith.mulf %13, %31 : vector<12x12xf32>
    %33 = arith.addf %9, %32 : vector<12x12xf32>
    %c125 = arith.constant 125 : index
    %34 = memref.load %arg2[%c125] : memref<150xf32, #tpu.memory_space<smem>>
    %35 = vector.broadcast %34 : f32 to vector<12x12xf32>
    %36 = arith.mulf %13, %35 : vector<12x12xf32>
    %37 = arith.addf %11, %36 : vector<12x12xf32>
    %c0_4 = arith.constant 0 : index
    %c0_5 = arith.constant 0 : index
    %c1_6 = arith.constant 1 : index
    %38 = vector.load %arg1[%c0_4, %c0_5, %c1_6] : memref<1x16x16xf32, #tpu.memory_space<vmem>>, vector<1x12x12xf32>
    %39 = vector.shape_cast %38 : vector<1x12x12xf32> to vector<12x12xf32>
    %c1_7 = arith.constant 1 : index
    %40 = memref.load %arg2[%c1_7] : memref<150xf32, #tpu.memory_space<smem>>
    %41 = vector.broadcast %40 : f32 to vector<12x12xf32>
    %42 = arith.mulf %39, %41 : vector<12x12xf32>
    %43 = arith.addf %17, %42 : vector<12x12xf32>
    %c26 = arith.constant 26 : index
    %44 = memref.load %arg2[%c26] : memref<150xf32, #tpu.memory_space<smem>>
    %45 = vector.broadcast %44 : f32 to vector<12x12xf32>
    %46 = arith.mulf %39, %45 : vector<12x12xf32>
    %47 = arith.addf %21, %46 : vector<12x12xf32>
    %c51 = arith.constant 51 : index
    %48 = memref.load %arg2[%c51] : memref<150xf32, #tpu.memory_space<smem>>
    %49 = vector.broadcast %48 : f32 to vector<12x12xf32>
    %50 = arith.mulf %39, %49 : vector<12x12xf32>
    %51 = arith.addf %25, %50 : vector<12x12xf32>
    %c76 = arith.constant 76 : index
    %52 = memref.load %arg2[%c76] : memref<150xf32, #tpu.memory_space<smem>>
    %53 = vector.broadcast %52 : f32 to vector<12x12xf32>
    %54 = arith.mulf %39, %53 : vector<12x12xf32>
    %55 = arith.addf %29, %54 : vector<12x12xf32>
    %c101 = arith.constant 101 : index
    %56 = memref.load %arg2[%c101] : memref<150xf32, #tpu.memory_space<smem>>
    %57 = vector.broadcast %56 : f32 to vector<12x12xf32>
    %58 = arith.mulf %39, %57 : vector<12x12xf32>
    %59 = arith.addf %33, %58 : vector<12x12xf32>
    %c126 = arith.constant 126 : index
    %60 = memref.load %arg2[%c126] : memref<150xf32, #tpu.memory_space<smem>>
    %61 = vector.broadcast %60 : f32 to vector<12x12xf32>
    %62 = arith.mulf %39, %61 : vector<12x12xf32>
    %63 = arith.addf %37, %62 : vector<12x12xf32>
    %c0_8 = arith.constant 0 : index
    %c0_9 = arith.constant 0 : index
    %c2_10 = arith.constant 2 : index
    %64 = vector.load %arg1[%c0_8, %c0_9, %c2_10] : memref<1x16x16xf32, #tpu.memory_space<vmem>>, vector<1x12x12xf32>
    %65 = vector.shape_cast %64 : vector<1x12x12xf32> to vector<12x12xf32>
    %c2_11 = arith.constant 2 : index
    %66 = memref.load %arg2[%c2_11] : memref<150xf32, #tpu.memory_space<smem>>
    %67 = vector.broadcast %66 : f32 to vector<12x12xf32>
    %68 = arith.mulf %65, %67 : vector<12x12xf32>
    %69 = arith.addf %43, %68 : vector<12x12xf32>
    %c27 = arith.constant 27 : index
    %70 = memref.load %arg2[%c27] : memref<150xf32, #tpu.memory_space<smem>>
    %71 = vector.broadcast %70 : f32 to vector<12x12xf32>
    %72 = arith.mulf %65, %71 : vector<12x12xf32>
    %73 = arith.addf %47, %72 : vector<12x12xf32>
    %c52 = arith.constant 52 : index
    %74 = memref.load %arg2[%c52] : memref<150xf32, #tpu.memory_space<smem>>
    %75 = vector.broadcast %74 : f32 to vector<12x12xf32>
    %76 = arith.mulf %65, %75 : vector<12x12xf32>
    %77 = arith.addf %51, %76 : vector<12x12xf32>
    %c77 = arith.constant 77 : index
    %78 = memref.load %arg2[%c77] : memref<150xf32, #tpu.memory_space<smem>>
    %79 = vector.broadcast %78 : f32 to vector<12x12xf32>
    %80 = arith.mulf %65, %79 : vector<12x12xf32>
    %81 = arith.addf %55, %80 : vector<12x12xf32>
    %c102 = arith.constant 102 : index
    %82 = memref.load %arg2[%c102] : memref<150xf32, #tpu.memory_space<smem>>
    %83 = vector.broadcast %82 : f32 to vector<12x12xf32>
    %84 = arith.mulf %65, %83 : vector<12x12xf32>
    %85 = arith.addf %59, %84 : vector<12x12xf32>
    %c127 = arith.constant 127 : index
    %86 = memref.load %arg2[%c127] : memref<150xf32, #tpu.memory_space<smem>>
    %87 = vector.broadcast %86 : f32 to vector<12x12xf32>
    %88 = arith.mulf %65, %87 : vector<12x12xf32>
    %89 = arith.addf %63, %88 : vector<12x12xf32>
    %c0_12 = arith.constant 0 : index
    %c0_13 = arith.constant 0 : index
    %c3_14 = arith.constant 3 : index
    %90 = vector.load %arg1[%c0_12, %c0_13, %c3_14] : memref<1x16x16xf32, #tpu.memory_space<vmem>>, vector<1x12x12xf32>
    %91 = vector.shape_cast %90 : vector<1x12x12xf32> to vector<12x12xf32>
    %c3_15 = arith.constant 3 : index
    %92 = memref.load %arg2[%c3_15] : memref<150xf32, #tpu.memory_space<smem>>
    %93 = vector.broadcast %92 : f32 to vector<12x12xf32>
    %94 = arith.mulf %91, %93 : vector<12x12xf32>
    %95 = arith.addf %69, %94 : vector<12x12xf32>
    %c28 = arith.constant 28 : index
    %96 = memref.load %arg2[%c28] : memref<150xf32, #tpu.memory_space<smem>>
    %97 = vector.broadcast %96 : f32 to vector<12x12xf32>
    %98 = arith.mulf %91, %97 : vector<12x12xf32>
    %99 = arith.addf %73, %98 : vector<12x12xf32>
    %c53 = arith.constant 53 : index
    %100 = memref.load %arg2[%c53] : memref<150xf32, #tpu.memory_space<smem>>
    %101 = vector.broadcast %100 : f32 to vector<12x12xf32>
    %102 = arith.mulf %91, %101 : vector<12x12xf32>
    %103 = arith.addf %77, %102 : vector<12x12xf32>
    %c78 = arith.constant 78 : index
    %104 = memref.load %arg2[%c78] : memref<150xf32, #tpu.memory_space<smem>>
    %105 = vector.broadcast %104 : f32 to vector<12x12xf32>
    %106 = arith.mulf %91, %105 : vector<12x12xf32>
    %107 = arith.addf %81, %106 : vector<12x12xf32>
    %c103 = arith.constant 103 : index
    %108 = memref.load %arg2[%c103] : memref<150xf32, #tpu.memory_space<smem>>
    %109 = vector.broadcast %108 : f32 to vector<12x12xf32>
    %110 = arith.mulf %91, %109 : vector<12x12xf32>
    %111 = arith.addf %85, %110 : vector<12x12xf32>
    %c128 = arith.constant 128 : index
    %112 = memref.load %arg2[%c128] : memref<150xf32, #tpu.memory_space<smem>>
    %113 = vector.broadcast %112 : f32 to vector<12x12xf32>
    %114 = arith.mulf %91, %113 : vector<12x12xf32>
    %115 = arith.addf %89, %114 : vector<12x12xf32>
    %c0_16 = arith.constant 0 : index
    %c0_17 = arith.constant 0 : index
    %c4_18 = arith.constant 4 : index
    %116 = vector.load %arg1[%c0_16, %c0_17, %c4_18] : memref<1x16x16xf32, #tpu.memory_space<vmem>>, vector<1x12x12xf32>
    %117 = vector.shape_cast %116 : vector<1x12x12xf32> to vector<12x12xf32>
    %c4_19 = arith.constant 4 : index
    %118 = memref.load %arg2[%c4_19] : memref<150xf32, #tpu.memory_space<smem>>
    %119 = vector.broadcast %118 : f32 to vector<12x12xf32>
    %120 = arith.mulf %117, %119 : vector<12x12xf32>
    %121 = arith.addf %95, %120 : vector<12x12xf32>
    %c29 = arith.constant 29 : index
    %122 = memref.load %arg2[%c29] : memref<150xf32, #tpu.memory_space<smem>>
    %123 = vector.broadcast %122 : f32 to vector<12x12xf32>
    %124 = arith.mulf %117, %123 : vector<12x12xf32>
    %125 = arith.addf %99, %124 : vector<12x12xf32>
    %c54 = arith.constant 54 : index
    %126 = memref.load %arg2[%c54] : memref<150xf32, #tpu.memory_space<smem>>
    %127 = vector.broadcast %126 : f32 to vector<12x12xf32>
    %128 = arith.mulf %117, %127 : vector<12x12xf32>
    %129 = arith.addf %103, %128 : vector<12x12xf32>
    %c79 = arith.constant 79 : index
    %130 = memref.load %arg2[%c79] : memref<150xf32, #tpu.memory_space<smem>>
    %131 = vector.broadcast %130 : f32 to vector<12x12xf32>
    %132 = arith.mulf %117, %131 : vector<12x12xf32>
    %133 = arith.addf %107, %132 : vector<12x12xf32>
    %c104 = arith.constant 104 : index
    %134 = memref.load %arg2[%c104] : memref<150xf32, #tpu.memory_space<smem>>
    %135 = vector.broadcast %134 : f32 to vector<12x12xf32>
    %136 = arith.mulf %117, %135 : vector<12x12xf32>
    %137 = arith.addf %111, %136 : vector<12x12xf32>
    %c129 = arith.constant 129 : index
    %138 = memref.load %arg2[%c129] : memref<150xf32, #tpu.memory_space<smem>>
    %139 = vector.broadcast %138 : f32 to vector<12x12xf32>
    %140 = arith.mulf %117, %139 : vector<12x12xf32>
    %141 = arith.addf %115, %140 : vector<12x12xf32>
    %c0_20 = arith.constant 0 : index
    %c1_21 = arith.constant 1 : index
    %c0_22 = arith.constant 0 : index
    %142 = vector.load %arg1[%c0_20, %c1_21, %c0_22] : memref<1x16x16xf32, #tpu.memory_space<vmem>>, vector<1x12x12xf32>
    %143 = vector.shape_cast %142 : vector<1x12x12xf32> to vector<12x12xf32>
    %c5_23 = arith.constant 5 : index
    %144 = memref.load %arg2[%c5_23] : memref<150xf32, #tpu.memory_space<smem>>
    %145 = vector.broadcast %144 : f32 to vector<12x12xf32>
    %146 = arith.mulf %143, %145 : vector<12x12xf32>
    %147 = arith.addf %121, %146 : vector<12x12xf32>
    %c30 = arith.constant 30 : index
    %148 = memref.load %arg2[%c30] : memref<150xf32, #tpu.memory_space<smem>>
    %149 = vector.broadcast %148 : f32 to vector<12x12xf32>
    %150 = arith.mulf %143, %149 : vector<12x12xf32>
    %151 = arith.addf %125, %150 : vector<12x12xf32>
    %c55 = arith.constant 55 : index
    %152 = memref.load %arg2[%c55] : memref<150xf32, #tpu.memory_space<smem>>
    %153 = vector.broadcast %152 : f32 to vector<12x12xf32>
    %154 = arith.mulf %143, %153 : vector<12x12xf32>
    %155 = arith.addf %129, %154 : vector<12x12xf32>
    %c80 = arith.constant 80 : index
    %156 = memref.load %arg2[%c80] : memref<150xf32, #tpu.memory_space<smem>>
    %157 = vector.broadcast %156 : f32 to vector<12x12xf32>
    %158 = arith.mulf %143, %157 : vector<12x12xf32>
    %159 = arith.addf %133, %158 : vector<12x12xf32>
    %c105 = arith.constant 105 : index
    %160 = memref.load %arg2[%c105] : memref<150xf32, #tpu.memory_space<smem>>
    %161 = vector.broadcast %160 : f32 to vector<12x12xf32>
    %162 = arith.mulf %143, %161 : vector<12x12xf32>
    %163 = arith.addf %137, %162 : vector<12x12xf32>
    %c130 = arith.constant 130 : index
    %164 = memref.load %arg2[%c130] : memref<150xf32, #tpu.memory_space<smem>>
    %165 = vector.broadcast %164 : f32 to vector<12x12xf32>
    %166 = arith.mulf %143, %165 : vector<12x12xf32>
    %167 = arith.addf %141, %166 : vector<12x12xf32>
    %c0_24 = arith.constant 0 : index
    %c1_25 = arith.constant 1 : index
    %c1_26 = arith.constant 1 : index
    %168 = vector.load %arg1[%c0_24, %c1_25, %c1_26] : memref<1x16x16xf32, #tpu.memory_space<vmem>>, vector<1x12x12xf32>
    %169 = vector.shape_cast %168 : vector<1x12x12xf32> to vector<12x12xf32>
    %c6 = arith.constant 6 : index
    %170 = memref.load %arg2[%c6] : memref<150xf32, #tpu.memory_space<smem>>
    %171 = vector.broadcast %170 : f32 to vector<12x12xf32>
    %172 = arith.mulf %169, %171 : vector<12x12xf32>
    %173 = arith.addf %147, %172 : vector<12x12xf32>
    %c31 = arith.constant 31 : index
    %174 = memref.load %arg2[%c31] : memref<150xf32, #tpu.memory_space<smem>>
    %175 = vector.broadcast %174 : f32 to vector<12x12xf32>
    %176 = arith.mulf %169, %175 : vector<12x12xf32>
    %177 = arith.addf %151, %176 : vector<12x12xf32>
    %c56 = arith.constant 56 : index
    %178 = memref.load %arg2[%c56] : memref<150xf32, #tpu.memory_space<smem>>
    %179 = vector.broadcast %178 : f32 to vector<12x12xf32>
    %180 = arith.mulf %169, %179 : vector<12x12xf32>
    %181 = arith.addf %155, %180 : vector<12x12xf32>
    %c81 = arith.constant 81 : index
    %182 = memref.load %arg2[%c81] : memref<150xf32, #tpu.memory_space<smem>>
    %183 = vector.broadcast %182 : f32 to vector<12x12xf32>
    %184 = arith.mulf %169, %183 : vector<12x12xf32>
    %185 = arith.addf %159, %184 : vector<12x12xf32>
    %c106 = arith.constant 106 : index
    %186 = memref.load %arg2[%c106] : memref<150xf32, #tpu.memory_space<smem>>
    %187 = vector.broadcast %186 : f32 to vector<12x12xf32>
    %188 = arith.mulf %169, %187 : vector<12x12xf32>
    %189 = arith.addf %163, %188 : vector<12x12xf32>
    %c131 = arith.constant 131 : index
    %190 = memref.load %arg2[%c131] : memref<150xf32, #tpu.memory_space<smem>>
    %191 = vector.broadcast %190 : f32 to vector<12x12xf32>
    %192 = arith.mulf %169, %191 : vector<12x12xf32>
    %193 = arith.addf %167, %192 : vector<12x12xf32>
    %c0_27 = arith.constant 0 : index
    %c1_28 = arith.constant 1 : index
    %c2_29 = arith.constant 2 : index
    %194 = vector.load %arg1[%c0_27, %c1_28, %c2_29] : memref<1x16x16xf32, #tpu.memory_space<vmem>>, vector<1x12x12xf32>
    %195 = vector.shape_cast %194 : vector<1x12x12xf32> to vector<12x12xf32>
    %c7 = arith.constant 7 : index
    %196 = memref.load %arg2[%c7] : memref<150xf32, #tpu.memory_space<smem>>
    %197 = vector.broadcast %196 : f32 to vector<12x12xf32>
    %198 = arith.mulf %195, %197 : vector<12x12xf32>
    %199 = arith.addf %173, %198 : vector<12x12xf32>
    %c32 = arith.constant 32 : index
    %200 = memref.load %arg2[%c32] : memref<150xf32, #tpu.memory_space<smem>>
    %201 = vector.broadcast %200 : f32 to vector<12x12xf32>
    %202 = arith.mulf %195, %201 : vector<12x12xf32>
    %203 = arith.addf %177, %202 : vector<12x12xf32>
    %c57 = arith.constant 57 : index
    %204 = memref.load %arg2[%c57] : memref<150xf32, #tpu.memory_space<smem>>
    %205 = vector.broadcast %204 : f32 to vector<12x12xf32>
    %206 = arith.mulf %195, %205 : vector<12x12xf32>
    %207 = arith.addf %181, %206 : vector<12x12xf32>
    %c82 = arith.constant 82 : index
    %208 = memref.load %arg2[%c82] : memref<150xf32, #tpu.memory_space<smem>>
    %209 = vector.broadcast %208 : f32 to vector<12x12xf32>
    %210 = arith.mulf %195, %209 : vector<12x12xf32>
    %211 = arith.addf %185, %210 : vector<12x12xf32>
    %c107 = arith.constant 107 : index
    %212 = memref.load %arg2[%c107] : memref<150xf32, #tpu.memory_space<smem>>
    %213 = vector.broadcast %212 : f32 to vector<12x12xf32>
    %214 = arith.mulf %195, %213 : vector<12x12xf32>
    %215 = arith.addf %189, %214 : vector<12x12xf32>
    %c132 = arith.constant 132 : index
    %216 = memref.load %arg2[%c132] : memref<150xf32, #tpu.memory_space<smem>>
    %217 = vector.broadcast %216 : f32 to vector<12x12xf32>
    %218 = arith.mulf %195, %217 : vector<12x12xf32>
    %219 = arith.addf %193, %218 : vector<12x12xf32>
    %c0_30 = arith.constant 0 : index
    %c1_31 = arith.constant 1 : index
    %c3_32 = arith.constant 3 : index
    %220 = vector.load %arg1[%c0_30, %c1_31, %c3_32] : memref<1x16x16xf32, #tpu.memory_space<vmem>>, vector<1x12x12xf32>
    %221 = vector.shape_cast %220 : vector<1x12x12xf32> to vector<12x12xf32>
    %c8 = arith.constant 8 : index
    %222 = memref.load %arg2[%c8] : memref<150xf32, #tpu.memory_space<smem>>
    %223 = vector.broadcast %222 : f32 to vector<12x12xf32>
    %224 = arith.mulf %221, %223 : vector<12x12xf32>
    %225 = arith.addf %199, %224 : vector<12x12xf32>
    %c33 = arith.constant 33 : index
    %226 = memref.load %arg2[%c33] : memref<150xf32, #tpu.memory_space<smem>>
    %227 = vector.broadcast %226 : f32 to vector<12x12xf32>
    %228 = arith.mulf %221, %227 : vector<12x12xf32>
    %229 = arith.addf %203, %228 : vector<12x12xf32>
    %c58 = arith.constant 58 : index
    %230 = memref.load %arg2[%c58] : memref<150xf32, #tpu.memory_space<smem>>
    %231 = vector.broadcast %230 : f32 to vector<12x12xf32>
    %232 = arith.mulf %221, %231 : vector<12x12xf32>
    %233 = arith.addf %207, %232 : vector<12x12xf32>
    %c83 = arith.constant 83 : index
    %234 = memref.load %arg2[%c83] : memref<150xf32, #tpu.memory_space<smem>>
    %235 = vector.broadcast %234 : f32 to vector<12x12xf32>
    %236 = arith.mulf %221, %235 : vector<12x12xf32>
    %237 = arith.addf %211, %236 : vector<12x12xf32>
    %c108 = arith.constant 108 : index
    %238 = memref.load %arg2[%c108] : memref<150xf32, #tpu.memory_space<smem>>
    %239 = vector.broadcast %238 : f32 to vector<12x12xf32>
    %240 = arith.mulf %221, %239 : vector<12x12xf32>
    %241 = arith.addf %215, %240 : vector<12x12xf32>
    %c133 = arith.constant 133 : index
    %242 = memref.load %arg2[%c133] : memref<150xf32, #tpu.memory_space<smem>>
    %243 = vector.broadcast %242 : f32 to vector<12x12xf32>
    %244 = arith.mulf %221, %243 : vector<12x12xf32>
    %245 = arith.addf %219, %244 : vector<12x12xf32>
    %c0_33 = arith.constant 0 : index
    %c1_34 = arith.constant 1 : index
    %c4_35 = arith.constant 4 : index
    %246 = vector.load %arg1[%c0_33, %c1_34, %c4_35] : memref<1x16x16xf32, #tpu.memory_space<vmem>>, vector<1x12x12xf32>
    %247 = vector.shape_cast %246 : vector<1x12x12xf32> to vector<12x12xf32>
    %c9 = arith.constant 9 : index
    %248 = memref.load %arg2[%c9] : memref<150xf32, #tpu.memory_space<smem>>
    %249 = vector.broadcast %248 : f32 to vector<12x12xf32>
    %250 = arith.mulf %247, %249 : vector<12x12xf32>
    %251 = arith.addf %225, %250 : vector<12x12xf32>
    %c34 = arith.constant 34 : index
    %252 = memref.load %arg2[%c34] : memref<150xf32, #tpu.memory_space<smem>>
    %253 = vector.broadcast %252 : f32 to vector<12x12xf32>
    %254 = arith.mulf %247, %253 : vector<12x12xf32>
    %255 = arith.addf %229, %254 : vector<12x12xf32>
    %c59 = arith.constant 59 : index
    %256 = memref.load %arg2[%c59] : memref<150xf32, #tpu.memory_space<smem>>
    %257 = vector.broadcast %256 : f32 to vector<12x12xf32>
    %258 = arith.mulf %247, %257 : vector<12x12xf32>
    %259 = arith.addf %233, %258 : vector<12x12xf32>
    %c84 = arith.constant 84 : index
    %260 = memref.load %arg2[%c84] : memref<150xf32, #tpu.memory_space<smem>>
    %261 = vector.broadcast %260 : f32 to vector<12x12xf32>
    %262 = arith.mulf %247, %261 : vector<12x12xf32>
    %263 = arith.addf %237, %262 : vector<12x12xf32>
    %c109 = arith.constant 109 : index
    %264 = memref.load %arg2[%c109] : memref<150xf32, #tpu.memory_space<smem>>
    %265 = vector.broadcast %264 : f32 to vector<12x12xf32>
    %266 = arith.mulf %247, %265 : vector<12x12xf32>
    %267 = arith.addf %241, %266 : vector<12x12xf32>
    %c134 = arith.constant 134 : index
    %268 = memref.load %arg2[%c134] : memref<150xf32, #tpu.memory_space<smem>>
    %269 = vector.broadcast %268 : f32 to vector<12x12xf32>
    %270 = arith.mulf %247, %269 : vector<12x12xf32>
    %271 = arith.addf %245, %270 : vector<12x12xf32>
    %c0_36 = arith.constant 0 : index
    %c2_37 = arith.constant 2 : index
    %c0_38 = arith.constant 0 : index
    %272 = vector.load %arg1[%c0_36, %c2_37, %c0_38] : memref<1x16x16xf32, #tpu.memory_space<vmem>>, vector<1x12x12xf32>
    %273 = vector.shape_cast %272 : vector<1x12x12xf32> to vector<12x12xf32>
    %c10 = arith.constant 10 : index
    %274 = memref.load %arg2[%c10] : memref<150xf32, #tpu.memory_space<smem>>
    %275 = vector.broadcast %274 : f32 to vector<12x12xf32>
    %276 = arith.mulf %273, %275 : vector<12x12xf32>
    %277 = arith.addf %251, %276 : vector<12x12xf32>
    %c35 = arith.constant 35 : index
    %278 = memref.load %arg2[%c35] : memref<150xf32, #tpu.memory_space<smem>>
    %279 = vector.broadcast %278 : f32 to vector<12x12xf32>
    %280 = arith.mulf %273, %279 : vector<12x12xf32>
    %281 = arith.addf %255, %280 : vector<12x12xf32>
    %c60 = arith.constant 60 : index
    %282 = memref.load %arg2[%c60] : memref<150xf32, #tpu.memory_space<smem>>
    %283 = vector.broadcast %282 : f32 to vector<12x12xf32>
    %284 = arith.mulf %273, %283 : vector<12x12xf32>
    %285 = arith.addf %259, %284 : vector<12x12xf32>
    %c85 = arith.constant 85 : index
    %286 = memref.load %arg2[%c85] : memref<150xf32, #tpu.memory_space<smem>>
    %287 = vector.broadcast %286 : f32 to vector<12x12xf32>
    %288 = arith.mulf %273, %287 : vector<12x12xf32>
    %289 = arith.addf %263, %288 : vector<12x12xf32>
    %c110 = arith.constant 110 : index
    %290 = memref.load %arg2[%c110] : memref<150xf32, #tpu.memory_space<smem>>
    %291 = vector.broadcast %290 : f32 to vector<12x12xf32>
    %292 = arith.mulf %273, %291 : vector<12x12xf32>
    %293 = arith.addf %267, %292 : vector<12x12xf32>
    %c135 = arith.constant 135 : index
    %294 = memref.load %arg2[%c135] : memref<150xf32, #tpu.memory_space<smem>>
    %295 = vector.broadcast %294 : f32 to vector<12x12xf32>
    %296 = arith.mulf %273, %295 : vector<12x12xf32>
    %297 = arith.addf %271, %296 : vector<12x12xf32>
    %c0_39 = arith.constant 0 : index
    %c2_40 = arith.constant 2 : index
    %c1_41 = arith.constant 1 : index
    %298 = vector.load %arg1[%c0_39, %c2_40, %c1_41] : memref<1x16x16xf32, #tpu.memory_space<vmem>>, vector<1x12x12xf32>
    %299 = vector.shape_cast %298 : vector<1x12x12xf32> to vector<12x12xf32>
    %c11 = arith.constant 11 : index
    %300 = memref.load %arg2[%c11] : memref<150xf32, #tpu.memory_space<smem>>
    %301 = vector.broadcast %300 : f32 to vector<12x12xf32>
    %302 = arith.mulf %299, %301 : vector<12x12xf32>
    %303 = arith.addf %277, %302 : vector<12x12xf32>
    %c36 = arith.constant 36 : index
    %304 = memref.load %arg2[%c36] : memref<150xf32, #tpu.memory_space<smem>>
    %305 = vector.broadcast %304 : f32 to vector<12x12xf32>
    %306 = arith.mulf %299, %305 : vector<12x12xf32>
    %307 = arith.addf %281, %306 : vector<12x12xf32>
    %c61 = arith.constant 61 : index
    %308 = memref.load %arg2[%c61] : memref<150xf32, #tpu.memory_space<smem>>
    %309 = vector.broadcast %308 : f32 to vector<12x12xf32>
    %310 = arith.mulf %299, %309 : vector<12x12xf32>
    %311 = arith.addf %285, %310 : vector<12x12xf32>
    %c86 = arith.constant 86 : index
    %312 = memref.load %arg2[%c86] : memref<150xf32, #tpu.memory_space<smem>>
    %313 = vector.broadcast %312 : f32 to vector<12x12xf32>
    %314 = arith.mulf %299, %313 : vector<12x12xf32>
    %315 = arith.addf %289, %314 : vector<12x12xf32>
    %c111 = arith.constant 111 : index
    %316 = memref.load %arg2[%c111] : memref<150xf32, #tpu.memory_space<smem>>
    %317 = vector.broadcast %316 : f32 to vector<12x12xf32>
    %318 = arith.mulf %299, %317 : vector<12x12xf32>
    %319 = arith.addf %293, %318 : vector<12x12xf32>
    %c136 = arith.constant 136 : index
    %320 = memref.load %arg2[%c136] : memref<150xf32, #tpu.memory_space<smem>>
    %321 = vector.broadcast %320 : f32 to vector<12x12xf32>
    %322 = arith.mulf %299, %321 : vector<12x12xf32>
    %323 = arith.addf %297, %322 : vector<12x12xf32>
    %c0_42 = arith.constant 0 : index
    %c2_43 = arith.constant 2 : index
    %c2_44 = arith.constant 2 : index
    %324 = vector.load %arg1[%c0_42, %c2_43, %c2_44] : memref<1x16x16xf32, #tpu.memory_space<vmem>>, vector<1x12x12xf32>
    %325 = vector.shape_cast %324 : vector<1x12x12xf32> to vector<12x12xf32>
    %c12 = arith.constant 12 : index
    %326 = memref.load %arg2[%c12] : memref<150xf32, #tpu.memory_space<smem>>
    %327 = vector.broadcast %326 : f32 to vector<12x12xf32>
    %328 = arith.mulf %325, %327 : vector<12x12xf32>
    %329 = arith.addf %303, %328 : vector<12x12xf32>
    %c37 = arith.constant 37 : index
    %330 = memref.load %arg2[%c37] : memref<150xf32, #tpu.memory_space<smem>>
    %331 = vector.broadcast %330 : f32 to vector<12x12xf32>
    %332 = arith.mulf %325, %331 : vector<12x12xf32>
    %333 = arith.addf %307, %332 : vector<12x12xf32>
    %c62 = arith.constant 62 : index
    %334 = memref.load %arg2[%c62] : memref<150xf32, #tpu.memory_space<smem>>
    %335 = vector.broadcast %334 : f32 to vector<12x12xf32>
    %336 = arith.mulf %325, %335 : vector<12x12xf32>
    %337 = arith.addf %311, %336 : vector<12x12xf32>
    %c87 = arith.constant 87 : index
    %338 = memref.load %arg2[%c87] : memref<150xf32, #tpu.memory_space<smem>>
    %339 = vector.broadcast %338 : f32 to vector<12x12xf32>
    %340 = arith.mulf %325, %339 : vector<12x12xf32>
    %341 = arith.addf %315, %340 : vector<12x12xf32>
    %c112 = arith.constant 112 : index
    %342 = memref.load %arg2[%c112] : memref<150xf32, #tpu.memory_space<smem>>
    %343 = vector.broadcast %342 : f32 to vector<12x12xf32>
    %344 = arith.mulf %325, %343 : vector<12x12xf32>
    %345 = arith.addf %319, %344 : vector<12x12xf32>
    %c137 = arith.constant 137 : index
    %346 = memref.load %arg2[%c137] : memref<150xf32, #tpu.memory_space<smem>>
    %347 = vector.broadcast %346 : f32 to vector<12x12xf32>
    %348 = arith.mulf %325, %347 : vector<12x12xf32>
    %349 = arith.addf %323, %348 : vector<12x12xf32>
    %c0_45 = arith.constant 0 : index
    %c2_46 = arith.constant 2 : index
    %c3_47 = arith.constant 3 : index
    %350 = vector.load %arg1[%c0_45, %c2_46, %c3_47] : memref<1x16x16xf32, #tpu.memory_space<vmem>>, vector<1x12x12xf32>
    %351 = vector.shape_cast %350 : vector<1x12x12xf32> to vector<12x12xf32>
    %c13 = arith.constant 13 : index
    %352 = memref.load %arg2[%c13] : memref<150xf32, #tpu.memory_space<smem>>
    %353 = vector.broadcast %352 : f32 to vector<12x12xf32>
    %354 = arith.mulf %351, %353 : vector<12x12xf32>
    %355 = arith.addf %329, %354 : vector<12x12xf32>
    %c38 = arith.constant 38 : index
    %356 = memref.load %arg2[%c38] : memref<150xf32, #tpu.memory_space<smem>>
    %357 = vector.broadcast %356 : f32 to vector<12x12xf32>
    %358 = arith.mulf %351, %357 : vector<12x12xf32>
    %359 = arith.addf %333, %358 : vector<12x12xf32>
    %c63 = arith.constant 63 : index
    %360 = memref.load %arg2[%c63] : memref<150xf32, #tpu.memory_space<smem>>
    %361 = vector.broadcast %360 : f32 to vector<12x12xf32>
    %362 = arith.mulf %351, %361 : vector<12x12xf32>
    %363 = arith.addf %337, %362 : vector<12x12xf32>
    %c88 = arith.constant 88 : index
    %364 = memref.load %arg2[%c88] : memref<150xf32, #tpu.memory_space<smem>>
    %365 = vector.broadcast %364 : f32 to vector<12x12xf32>
    %366 = arith.mulf %351, %365 : vector<12x12xf32>
    %367 = arith.addf %341, %366 : vector<12x12xf32>
    %c113 = arith.constant 113 : index
    %368 = memref.load %arg2[%c113] : memref<150xf32, #tpu.memory_space<smem>>
    %369 = vector.broadcast %368 : f32 to vector<12x12xf32>
    %370 = arith.mulf %351, %369 : vector<12x12xf32>
    %371 = arith.addf %345, %370 : vector<12x12xf32>
    %c138 = arith.constant 138 : index
    %372 = memref.load %arg2[%c138] : memref<150xf32, #tpu.memory_space<smem>>
    %373 = vector.broadcast %372 : f32 to vector<12x12xf32>
    %374 = arith.mulf %351, %373 : vector<12x12xf32>
    %375 = arith.addf %349, %374 : vector<12x12xf32>
    %c0_48 = arith.constant 0 : index
    %c2_49 = arith.constant 2 : index
    %c4_50 = arith.constant 4 : index
    %376 = vector.load %arg1[%c0_48, %c2_49, %c4_50] : memref<1x16x16xf32, #tpu.memory_space<vmem>>, vector<1x12x12xf32>
    %377 = vector.shape_cast %376 : vector<1x12x12xf32> to vector<12x12xf32>
    %c14 = arith.constant 14 : index
    %378 = memref.load %arg2[%c14] : memref<150xf32, #tpu.memory_space<smem>>
    %379 = vector.broadcast %378 : f32 to vector<12x12xf32>
    %380 = arith.mulf %377, %379 : vector<12x12xf32>
    %381 = arith.addf %355, %380 : vector<12x12xf32>
    %c39 = arith.constant 39 : index
    %382 = memref.load %arg2[%c39] : memref<150xf32, #tpu.memory_space<smem>>
    %383 = vector.broadcast %382 : f32 to vector<12x12xf32>
    %384 = arith.mulf %377, %383 : vector<12x12xf32>
    %385 = arith.addf %359, %384 : vector<12x12xf32>
    %c64 = arith.constant 64 : index
    %386 = memref.load %arg2[%c64] : memref<150xf32, #tpu.memory_space<smem>>
    %387 = vector.broadcast %386 : f32 to vector<12x12xf32>
    %388 = arith.mulf %377, %387 : vector<12x12xf32>
    %389 = arith.addf %363, %388 : vector<12x12xf32>
    %c89 = arith.constant 89 : index
    %390 = memref.load %arg2[%c89] : memref<150xf32, #tpu.memory_space<smem>>
    %391 = vector.broadcast %390 : f32 to vector<12x12xf32>
    %392 = arith.mulf %377, %391 : vector<12x12xf32>
    %393 = arith.addf %367, %392 : vector<12x12xf32>
    %c114 = arith.constant 114 : index
    %394 = memref.load %arg2[%c114] : memref<150xf32, #tpu.memory_space<smem>>
    %395 = vector.broadcast %394 : f32 to vector<12x12xf32>
    %396 = arith.mulf %377, %395 : vector<12x12xf32>
    %397 = arith.addf %371, %396 : vector<12x12xf32>
    %c139 = arith.constant 139 : index
    %398 = memref.load %arg2[%c139] : memref<150xf32, #tpu.memory_space<smem>>
    %399 = vector.broadcast %398 : f32 to vector<12x12xf32>
    %400 = arith.mulf %377, %399 : vector<12x12xf32>
    %401 = arith.addf %375, %400 : vector<12x12xf32>
    %c0_51 = arith.constant 0 : index
    %c3_52 = arith.constant 3 : index
    %c0_53 = arith.constant 0 : index
    %402 = vector.load %arg1[%c0_51, %c3_52, %c0_53] : memref<1x16x16xf32, #tpu.memory_space<vmem>>, vector<1x12x12xf32>
    %403 = vector.shape_cast %402 : vector<1x12x12xf32> to vector<12x12xf32>
    %c15 = arith.constant 15 : index
    %404 = memref.load %arg2[%c15] : memref<150xf32, #tpu.memory_space<smem>>
    %405 = vector.broadcast %404 : f32 to vector<12x12xf32>
    %406 = arith.mulf %403, %405 : vector<12x12xf32>
    %407 = arith.addf %381, %406 : vector<12x12xf32>
    %c40 = arith.constant 40 : index
    %408 = memref.load %arg2[%c40] : memref<150xf32, #tpu.memory_space<smem>>
    %409 = vector.broadcast %408 : f32 to vector<12x12xf32>
    %410 = arith.mulf %403, %409 : vector<12x12xf32>
    %411 = arith.addf %385, %410 : vector<12x12xf32>
    %c65 = arith.constant 65 : index
    %412 = memref.load %arg2[%c65] : memref<150xf32, #tpu.memory_space<smem>>
    %413 = vector.broadcast %412 : f32 to vector<12x12xf32>
    %414 = arith.mulf %403, %413 : vector<12x12xf32>
    %415 = arith.addf %389, %414 : vector<12x12xf32>
    %c90 = arith.constant 90 : index
    %416 = memref.load %arg2[%c90] : memref<150xf32, #tpu.memory_space<smem>>
    %417 = vector.broadcast %416 : f32 to vector<12x12xf32>
    %418 = arith.mulf %403, %417 : vector<12x12xf32>
    %419 = arith.addf %393, %418 : vector<12x12xf32>
    %c115 = arith.constant 115 : index
    %420 = memref.load %arg2[%c115] : memref<150xf32, #tpu.memory_space<smem>>
    %421 = vector.broadcast %420 : f32 to vector<12x12xf32>
    %422 = arith.mulf %403, %421 : vector<12x12xf32>
    %423 = arith.addf %397, %422 : vector<12x12xf32>
    %c140 = arith.constant 140 : index
    %424 = memref.load %arg2[%c140] : memref<150xf32, #tpu.memory_space<smem>>
    %425 = vector.broadcast %424 : f32 to vector<12x12xf32>
    %426 = arith.mulf %403, %425 : vector<12x12xf32>
    %427 = arith.addf %401, %426 : vector<12x12xf32>
    %c0_54 = arith.constant 0 : index
    %c3_55 = arith.constant 3 : index
    %c1_56 = arith.constant 1 : index
    %428 = vector.load %arg1[%c0_54, %c3_55, %c1_56] : memref<1x16x16xf32, #tpu.memory_space<vmem>>, vector<1x12x12xf32>
    %429 = vector.shape_cast %428 : vector<1x12x12xf32> to vector<12x12xf32>
    %c16 = arith.constant 16 : index
    %430 = memref.load %arg2[%c16] : memref<150xf32, #tpu.memory_space<smem>>
    %431 = vector.broadcast %430 : f32 to vector<12x12xf32>
    %432 = arith.mulf %429, %431 : vector<12x12xf32>
    %433 = arith.addf %407, %432 : vector<12x12xf32>
    %c41 = arith.constant 41 : index
    %434 = memref.load %arg2[%c41] : memref<150xf32, #tpu.memory_space<smem>>
    %435 = vector.broadcast %434 : f32 to vector<12x12xf32>
    %436 = arith.mulf %429, %435 : vector<12x12xf32>
    %437 = arith.addf %411, %436 : vector<12x12xf32>
    %c66 = arith.constant 66 : index
    %438 = memref.load %arg2[%c66] : memref<150xf32, #tpu.memory_space<smem>>
    %439 = vector.broadcast %438 : f32 to vector<12x12xf32>
    %440 = arith.mulf %429, %439 : vector<12x12xf32>
    %441 = arith.addf %415, %440 : vector<12x12xf32>
    %c91 = arith.constant 91 : index
    %442 = memref.load %arg2[%c91] : memref<150xf32, #tpu.memory_space<smem>>
    %443 = vector.broadcast %442 : f32 to vector<12x12xf32>
    %444 = arith.mulf %429, %443 : vector<12x12xf32>
    %445 = arith.addf %419, %444 : vector<12x12xf32>
    %c116 = arith.constant 116 : index
    %446 = memref.load %arg2[%c116] : memref<150xf32, #tpu.memory_space<smem>>
    %447 = vector.broadcast %446 : f32 to vector<12x12xf32>
    %448 = arith.mulf %429, %447 : vector<12x12xf32>
    %449 = arith.addf %423, %448 : vector<12x12xf32>
    %c141 = arith.constant 141 : index
    %450 = memref.load %arg2[%c141] : memref<150xf32, #tpu.memory_space<smem>>
    %451 = vector.broadcast %450 : f32 to vector<12x12xf32>
    %452 = arith.mulf %429, %451 : vector<12x12xf32>
    %453 = arith.addf %427, %452 : vector<12x12xf32>
    %c0_57 = arith.constant 0 : index
    %c3_58 = arith.constant 3 : index
    %c2_59 = arith.constant 2 : index
    %454 = vector.load %arg1[%c0_57, %c3_58, %c2_59] : memref<1x16x16xf32, #tpu.memory_space<vmem>>, vector<1x12x12xf32>
    %455 = vector.shape_cast %454 : vector<1x12x12xf32> to vector<12x12xf32>
    %c17 = arith.constant 17 : index
    %456 = memref.load %arg2[%c17] : memref<150xf32, #tpu.memory_space<smem>>
    %457 = vector.broadcast %456 : f32 to vector<12x12xf32>
    %458 = arith.mulf %455, %457 : vector<12x12xf32>
    %459 = arith.addf %433, %458 : vector<12x12xf32>
    %c42 = arith.constant 42 : index
    %460 = memref.load %arg2[%c42] : memref<150xf32, #tpu.memory_space<smem>>
    %461 = vector.broadcast %460 : f32 to vector<12x12xf32>
    %462 = arith.mulf %455, %461 : vector<12x12xf32>
    %463 = arith.addf %437, %462 : vector<12x12xf32>
    %c67 = arith.constant 67 : index
    %464 = memref.load %arg2[%c67] : memref<150xf32, #tpu.memory_space<smem>>
    %465 = vector.broadcast %464 : f32 to vector<12x12xf32>
    %466 = arith.mulf %455, %465 : vector<12x12xf32>
    %467 = arith.addf %441, %466 : vector<12x12xf32>
    %c92 = arith.constant 92 : index
    %468 = memref.load %arg2[%c92] : memref<150xf32, #tpu.memory_space<smem>>
    %469 = vector.broadcast %468 : f32 to vector<12x12xf32>
    %470 = arith.mulf %455, %469 : vector<12x12xf32>
    %471 = arith.addf %445, %470 : vector<12x12xf32>
    %c117 = arith.constant 117 : index
    %472 = memref.load %arg2[%c117] : memref<150xf32, #tpu.memory_space<smem>>
    %473 = vector.broadcast %472 : f32 to vector<12x12xf32>
    %474 = arith.mulf %455, %473 : vector<12x12xf32>
    %475 = arith.addf %449, %474 : vector<12x12xf32>
    %c142 = arith.constant 142 : index
    %476 = memref.load %arg2[%c142] : memref<150xf32, #tpu.memory_space<smem>>
    %477 = vector.broadcast %476 : f32 to vector<12x12xf32>
    %478 = arith.mulf %455, %477 : vector<12x12xf32>
    %479 = arith.addf %453, %478 : vector<12x12xf32>
    %c0_60 = arith.constant 0 : index
    %c3_61 = arith.constant 3 : index
    %c3_62 = arith.constant 3 : index
    %480 = vector.load %arg1[%c0_60, %c3_61, %c3_62] : memref<1x16x16xf32, #tpu.memory_space<vmem>>, vector<1x12x12xf32>
    %481 = vector.shape_cast %480 : vector<1x12x12xf32> to vector<12x12xf32>
    %c18 = arith.constant 18 : index
    %482 = memref.load %arg2[%c18] : memref<150xf32, #tpu.memory_space<smem>>
    %483 = vector.broadcast %482 : f32 to vector<12x12xf32>
    %484 = arith.mulf %481, %483 : vector<12x12xf32>
    %485 = arith.addf %459, %484 : vector<12x12xf32>
    %c43 = arith.constant 43 : index
    %486 = memref.load %arg2[%c43] : memref<150xf32, #tpu.memory_space<smem>>
    %487 = vector.broadcast %486 : f32 to vector<12x12xf32>
    %488 = arith.mulf %481, %487 : vector<12x12xf32>
    %489 = arith.addf %463, %488 : vector<12x12xf32>
    %c68 = arith.constant 68 : index
    %490 = memref.load %arg2[%c68] : memref<150xf32, #tpu.memory_space<smem>>
    %491 = vector.broadcast %490 : f32 to vector<12x12xf32>
    %492 = arith.mulf %481, %491 : vector<12x12xf32>
    %493 = arith.addf %467, %492 : vector<12x12xf32>
    %c93 = arith.constant 93 : index
    %494 = memref.load %arg2[%c93] : memref<150xf32, #tpu.memory_space<smem>>
    %495 = vector.broadcast %494 : f32 to vector<12x12xf32>
    %496 = arith.mulf %481, %495 : vector<12x12xf32>
    %497 = arith.addf %471, %496 : vector<12x12xf32>
    %c118 = arith.constant 118 : index
    %498 = memref.load %arg2[%c118] : memref<150xf32, #tpu.memory_space<smem>>
    %499 = vector.broadcast %498 : f32 to vector<12x12xf32>
    %500 = arith.mulf %481, %499 : vector<12x12xf32>
    %501 = arith.addf %475, %500 : vector<12x12xf32>
    %c143 = arith.constant 143 : index
    %502 = memref.load %arg2[%c143] : memref<150xf32, #tpu.memory_space<smem>>
    %503 = vector.broadcast %502 : f32 to vector<12x12xf32>
    %504 = arith.mulf %481, %503 : vector<12x12xf32>
    %505 = arith.addf %479, %504 : vector<12x12xf32>
    %c0_63 = arith.constant 0 : index
    %c3_64 = arith.constant 3 : index
    %c4_65 = arith.constant 4 : index
    %506 = vector.load %arg1[%c0_63, %c3_64, %c4_65] : memref<1x16x16xf32, #tpu.memory_space<vmem>>, vector<1x12x12xf32>
    %507 = vector.shape_cast %506 : vector<1x12x12xf32> to vector<12x12xf32>
    %c19 = arith.constant 19 : index
    %508 = memref.load %arg2[%c19] : memref<150xf32, #tpu.memory_space<smem>>
    %509 = vector.broadcast %508 : f32 to vector<12x12xf32>
    %510 = arith.mulf %507, %509 : vector<12x12xf32>
    %511 = arith.addf %485, %510 : vector<12x12xf32>
    %c44 = arith.constant 44 : index
    %512 = memref.load %arg2[%c44] : memref<150xf32, #tpu.memory_space<smem>>
    %513 = vector.broadcast %512 : f32 to vector<12x12xf32>
    %514 = arith.mulf %507, %513 : vector<12x12xf32>
    %515 = arith.addf %489, %514 : vector<12x12xf32>
    %c69 = arith.constant 69 : index
    %516 = memref.load %arg2[%c69] : memref<150xf32, #tpu.memory_space<smem>>
    %517 = vector.broadcast %516 : f32 to vector<12x12xf32>
    %518 = arith.mulf %507, %517 : vector<12x12xf32>
    %519 = arith.addf %493, %518 : vector<12x12xf32>
    %c94 = arith.constant 94 : index
    %520 = memref.load %arg2[%c94] : memref<150xf32, #tpu.memory_space<smem>>
    %521 = vector.broadcast %520 : f32 to vector<12x12xf32>
    %522 = arith.mulf %507, %521 : vector<12x12xf32>
    %523 = arith.addf %497, %522 : vector<12x12xf32>
    %c119 = arith.constant 119 : index
    %524 = memref.load %arg2[%c119] : memref<150xf32, #tpu.memory_space<smem>>
    %525 = vector.broadcast %524 : f32 to vector<12x12xf32>
    %526 = arith.mulf %507, %525 : vector<12x12xf32>
    %527 = arith.addf %501, %526 : vector<12x12xf32>
    %c144 = arith.constant 144 : index
    %528 = memref.load %arg2[%c144] : memref<150xf32, #tpu.memory_space<smem>>
    %529 = vector.broadcast %528 : f32 to vector<12x12xf32>
    %530 = arith.mulf %507, %529 : vector<12x12xf32>
    %531 = arith.addf %505, %530 : vector<12x12xf32>
    %c0_66 = arith.constant 0 : index
    %c4_67 = arith.constant 4 : index
    %c0_68 = arith.constant 0 : index
    %532 = vector.load %arg1[%c0_66, %c4_67, %c0_68] : memref<1x16x16xf32, #tpu.memory_space<vmem>>, vector<1x12x12xf32>
    %533 = vector.shape_cast %532 : vector<1x12x12xf32> to vector<12x12xf32>
    %c20 = arith.constant 20 : index
    %534 = memref.load %arg2[%c20] : memref<150xf32, #tpu.memory_space<smem>>
    %535 = vector.broadcast %534 : f32 to vector<12x12xf32>
    %536 = arith.mulf %533, %535 : vector<12x12xf32>
    %537 = arith.addf %511, %536 : vector<12x12xf32>
    %c45 = arith.constant 45 : index
    %538 = memref.load %arg2[%c45] : memref<150xf32, #tpu.memory_space<smem>>
    %539 = vector.broadcast %538 : f32 to vector<12x12xf32>
    %540 = arith.mulf %533, %539 : vector<12x12xf32>
    %541 = arith.addf %515, %540 : vector<12x12xf32>
    %c70 = arith.constant 70 : index
    %542 = memref.load %arg2[%c70] : memref<150xf32, #tpu.memory_space<smem>>
    %543 = vector.broadcast %542 : f32 to vector<12x12xf32>
    %544 = arith.mulf %533, %543 : vector<12x12xf32>
    %545 = arith.addf %519, %544 : vector<12x12xf32>
    %c95 = arith.constant 95 : index
    %546 = memref.load %arg2[%c95] : memref<150xf32, #tpu.memory_space<smem>>
    %547 = vector.broadcast %546 : f32 to vector<12x12xf32>
    %548 = arith.mulf %533, %547 : vector<12x12xf32>
    %549 = arith.addf %523, %548 : vector<12x12xf32>
    %c120 = arith.constant 120 : index
    %550 = memref.load %arg2[%c120] : memref<150xf32, #tpu.memory_space<smem>>
    %551 = vector.broadcast %550 : f32 to vector<12x12xf32>
    %552 = arith.mulf %533, %551 : vector<12x12xf32>
    %553 = arith.addf %527, %552 : vector<12x12xf32>
    %c145 = arith.constant 145 : index
    %554 = memref.load %arg2[%c145] : memref<150xf32, #tpu.memory_space<smem>>
    %555 = vector.broadcast %554 : f32 to vector<12x12xf32>
    %556 = arith.mulf %533, %555 : vector<12x12xf32>
    %557 = arith.addf %531, %556 : vector<12x12xf32>
    %c0_69 = arith.constant 0 : index
    %c4_70 = arith.constant 4 : index
    %c1_71 = arith.constant 1 : index
    %558 = vector.load %arg1[%c0_69, %c4_70, %c1_71] : memref<1x16x16xf32, #tpu.memory_space<vmem>>, vector<1x12x12xf32>
    %559 = vector.shape_cast %558 : vector<1x12x12xf32> to vector<12x12xf32>
    %c21 = arith.constant 21 : index
    %560 = memref.load %arg2[%c21] : memref<150xf32, #tpu.memory_space<smem>>
    %561 = vector.broadcast %560 : f32 to vector<12x12xf32>
    %562 = arith.mulf %559, %561 : vector<12x12xf32>
    %563 = arith.addf %537, %562 : vector<12x12xf32>
    %c46 = arith.constant 46 : index
    %564 = memref.load %arg2[%c46] : memref<150xf32, #tpu.memory_space<smem>>
    %565 = vector.broadcast %564 : f32 to vector<12x12xf32>
    %566 = arith.mulf %559, %565 : vector<12x12xf32>
    %567 = arith.addf %541, %566 : vector<12x12xf32>
    %c71 = arith.constant 71 : index
    %568 = memref.load %arg2[%c71] : memref<150xf32, #tpu.memory_space<smem>>
    %569 = vector.broadcast %568 : f32 to vector<12x12xf32>
    %570 = arith.mulf %559, %569 : vector<12x12xf32>
    %571 = arith.addf %545, %570 : vector<12x12xf32>
    %c96 = arith.constant 96 : index
    %572 = memref.load %arg2[%c96] : memref<150xf32, #tpu.memory_space<smem>>
    %573 = vector.broadcast %572 : f32 to vector<12x12xf32>
    %574 = arith.mulf %559, %573 : vector<12x12xf32>
    %575 = arith.addf %549, %574 : vector<12x12xf32>
    %c121 = arith.constant 121 : index
    %576 = memref.load %arg2[%c121] : memref<150xf32, #tpu.memory_space<smem>>
    %577 = vector.broadcast %576 : f32 to vector<12x12xf32>
    %578 = arith.mulf %559, %577 : vector<12x12xf32>
    %579 = arith.addf %553, %578 : vector<12x12xf32>
    %c146 = arith.constant 146 : index
    %580 = memref.load %arg2[%c146] : memref<150xf32, #tpu.memory_space<smem>>
    %581 = vector.broadcast %580 : f32 to vector<12x12xf32>
    %582 = arith.mulf %559, %581 : vector<12x12xf32>
    %583 = arith.addf %557, %582 : vector<12x12xf32>
    %c0_72 = arith.constant 0 : index
    %c4_73 = arith.constant 4 : index
    %c2_74 = arith.constant 2 : index
    %584 = vector.load %arg1[%c0_72, %c4_73, %c2_74] : memref<1x16x16xf32, #tpu.memory_space<vmem>>, vector<1x12x12xf32>
    %585 = vector.shape_cast %584 : vector<1x12x12xf32> to vector<12x12xf32>
    %c22 = arith.constant 22 : index
    %586 = memref.load %arg2[%c22] : memref<150xf32, #tpu.memory_space<smem>>
    %587 = vector.broadcast %586 : f32 to vector<12x12xf32>
    %588 = arith.mulf %585, %587 : vector<12x12xf32>
    %589 = arith.addf %563, %588 : vector<12x12xf32>
    %c47 = arith.constant 47 : index
    %590 = memref.load %arg2[%c47] : memref<150xf32, #tpu.memory_space<smem>>
    %591 = vector.broadcast %590 : f32 to vector<12x12xf32>
    %592 = arith.mulf %585, %591 : vector<12x12xf32>
    %593 = arith.addf %567, %592 : vector<12x12xf32>
    %c72 = arith.constant 72 : index
    %594 = memref.load %arg2[%c72] : memref<150xf32, #tpu.memory_space<smem>>
    %595 = vector.broadcast %594 : f32 to vector<12x12xf32>
    %596 = arith.mulf %585, %595 : vector<12x12xf32>
    %597 = arith.addf %571, %596 : vector<12x12xf32>
    %c97 = arith.constant 97 : index
    %598 = memref.load %arg2[%c97] : memref<150xf32, #tpu.memory_space<smem>>
    %599 = vector.broadcast %598 : f32 to vector<12x12xf32>
    %600 = arith.mulf %585, %599 : vector<12x12xf32>
    %601 = arith.addf %575, %600 : vector<12x12xf32>
    %c122 = arith.constant 122 : index
    %602 = memref.load %arg2[%c122] : memref<150xf32, #tpu.memory_space<smem>>
    %603 = vector.broadcast %602 : f32 to vector<12x12xf32>
    %604 = arith.mulf %585, %603 : vector<12x12xf32>
    %605 = arith.addf %579, %604 : vector<12x12xf32>
    %c147 = arith.constant 147 : index
    %606 = memref.load %arg2[%c147] : memref<150xf32, #tpu.memory_space<smem>>
    %607 = vector.broadcast %606 : f32 to vector<12x12xf32>
    %608 = arith.mulf %585, %607 : vector<12x12xf32>
    %609 = arith.addf %583, %608 : vector<12x12xf32>
    %c0_75 = arith.constant 0 : index
    %c4_76 = arith.constant 4 : index
    %c3_77 = arith.constant 3 : index
    %610 = vector.load %arg1[%c0_75, %c4_76, %c3_77] : memref<1x16x16xf32, #tpu.memory_space<vmem>>, vector<1x12x12xf32>
    %611 = vector.shape_cast %610 : vector<1x12x12xf32> to vector<12x12xf32>
    %c23 = arith.constant 23 : index
    %612 = memref.load %arg2[%c23] : memref<150xf32, #tpu.memory_space<smem>>
    %613 = vector.broadcast %612 : f32 to vector<12x12xf32>
    %614 = arith.mulf %611, %613 : vector<12x12xf32>
    %615 = arith.addf %589, %614 : vector<12x12xf32>
    %c48 = arith.constant 48 : index
    %616 = memref.load %arg2[%c48] : memref<150xf32, #tpu.memory_space<smem>>
    %617 = vector.broadcast %616 : f32 to vector<12x12xf32>
    %618 = arith.mulf %611, %617 : vector<12x12xf32>
    %619 = arith.addf %593, %618 : vector<12x12xf32>
    %c73 = arith.constant 73 : index
    %620 = memref.load %arg2[%c73] : memref<150xf32, #tpu.memory_space<smem>>
    %621 = vector.broadcast %620 : f32 to vector<12x12xf32>
    %622 = arith.mulf %611, %621 : vector<12x12xf32>
    %623 = arith.addf %597, %622 : vector<12x12xf32>
    %c98 = arith.constant 98 : index
    %624 = memref.load %arg2[%c98] : memref<150xf32, #tpu.memory_space<smem>>
    %625 = vector.broadcast %624 : f32 to vector<12x12xf32>
    %626 = arith.mulf %611, %625 : vector<12x12xf32>
    %627 = arith.addf %601, %626 : vector<12x12xf32>
    %c123 = arith.constant 123 : index
    %628 = memref.load %arg2[%c123] : memref<150xf32, #tpu.memory_space<smem>>
    %629 = vector.broadcast %628 : f32 to vector<12x12xf32>
    %630 = arith.mulf %611, %629 : vector<12x12xf32>
    %631 = arith.addf %605, %630 : vector<12x12xf32>
    %c148 = arith.constant 148 : index
    %632 = memref.load %arg2[%c148] : memref<150xf32, #tpu.memory_space<smem>>
    %633 = vector.broadcast %632 : f32 to vector<12x12xf32>
    %634 = arith.mulf %611, %633 : vector<12x12xf32>
    %635 = arith.addf %609, %634 : vector<12x12xf32>
    %c0_78 = arith.constant 0 : index
    %c4_79 = arith.constant 4 : index
    %c4_80 = arith.constant 4 : index
    %636 = vector.load %arg1[%c0_78, %c4_79, %c4_80] : memref<1x16x16xf32, #tpu.memory_space<vmem>>, vector<1x12x12xf32>
    %637 = vector.shape_cast %636 : vector<1x12x12xf32> to vector<12x12xf32>
    %c24 = arith.constant 24 : index
    %638 = memref.load %arg2[%c24] : memref<150xf32, #tpu.memory_space<smem>>
    %639 = vector.broadcast %638 : f32 to vector<12x12xf32>
    %640 = arith.mulf %637, %639 : vector<12x12xf32>
    %641 = arith.addf %615, %640 : vector<12x12xf32>
    %c49 = arith.constant 49 : index
    %642 = memref.load %arg2[%c49] : memref<150xf32, #tpu.memory_space<smem>>
    %643 = vector.broadcast %642 : f32 to vector<12x12xf32>
    %644 = arith.mulf %637, %643 : vector<12x12xf32>
    %645 = arith.addf %619, %644 : vector<12x12xf32>
    %c74 = arith.constant 74 : index
    %646 = memref.load %arg2[%c74] : memref<150xf32, #tpu.memory_space<smem>>
    %647 = vector.broadcast %646 : f32 to vector<12x12xf32>
    %648 = arith.mulf %637, %647 : vector<12x12xf32>
    %649 = arith.addf %623, %648 : vector<12x12xf32>
    %c99 = arith.constant 99 : index
    %650 = memref.load %arg2[%c99] : memref<150xf32, #tpu.memory_space<smem>>
    %651 = vector.broadcast %650 : f32 to vector<12x12xf32>
    %652 = arith.mulf %637, %651 : vector<12x12xf32>
    %653 = arith.addf %627, %652 : vector<12x12xf32>
    %c124 = arith.constant 124 : index
    %654 = memref.load %arg2[%c124] : memref<150xf32, #tpu.memory_space<smem>>
    %655 = vector.broadcast %654 : f32 to vector<12x12xf32>
    %656 = arith.mulf %637, %655 : vector<12x12xf32>
    %657 = arith.addf %631, %656 : vector<12x12xf32>
    %c149 = arith.constant 149 : index
    %658 = memref.load %arg2[%c149] : memref<150xf32, #tpu.memory_space<smem>>
    %659 = vector.broadcast %658 : f32 to vector<12x12xf32>
    %660 = arith.mulf %637, %659 : vector<12x12xf32>
    %661 = arith.addf %635, %660 : vector<12x12xf32>
    %cst = arith.constant 0.000000e+00 : f32
    %662 = vector.broadcast %cst : f32 to vector<12x12xf32>
    %663 = arith.maximumf %641, %662 : vector<12x12xf32>
    %cst_81 = arith.constant 0.000000e+00 : f32
    %664 = vector.broadcast %cst_81 : f32 to vector<12x12xf32>
    %665 = arith.maximumf %645, %664 : vector<12x12xf32>
    %cst_82 = arith.constant 0.000000e+00 : f32
    %666 = vector.broadcast %cst_82 : f32 to vector<12x12xf32>
    %667 = arith.maximumf %649, %666 : vector<12x12xf32>
    %cst_83 = arith.constant 0.000000e+00 : f32
    %668 = vector.broadcast %cst_83 : f32 to vector<12x12xf32>
    %669 = arith.maximumf %653, %668 : vector<12x12xf32>
    %cst_84 = arith.constant 0.000000e+00 : f32
    %670 = vector.broadcast %cst_84 : f32 to vector<12x12xf32>
    %671 = arith.maximumf %657, %670 : vector<12x12xf32>
    %cst_85 = arith.constant 0.000000e+00 : f32
    %672 = vector.broadcast %cst_85 : f32 to vector<12x12xf32>
    %673 = arith.maximumf %661, %672 : vector<12x12xf32>
    %c0_86 = arith.constant 0 : index
    %674 = memref.load %arg5[%c0_86] : memref<1xf32, #tpu.memory_space<smem>>
    %675 = vector.broadcast %674 : f32 to vector<12x12xf32>
    %c0_87 = arith.constant 0 : index
    %676 = memref.load %arg4[%c0_87] : memref<24xf32, #tpu.memory_space<smem>>
    %677 = vector.broadcast %676 : f32 to vector<12x12xf32>
    %678 = arith.mulf %663, %677 : vector<12x12xf32>
    %679 = arith.addf %675, %678 : vector<12x12xf32>
    %c4_88 = arith.constant 4 : index
    %680 = memref.load %arg4[%c4_88] : memref<24xf32, #tpu.memory_space<smem>>
    %681 = vector.broadcast %680 : f32 to vector<12x12xf32>
    %682 = arith.mulf %665, %681 : vector<12x12xf32>
    %683 = arith.addf %679, %682 : vector<12x12xf32>
    %c8_89 = arith.constant 8 : index
    %684 = memref.load %arg4[%c8_89] : memref<24xf32, #tpu.memory_space<smem>>
    %685 = vector.broadcast %684 : f32 to vector<12x12xf32>
    %686 = arith.mulf %667, %685 : vector<12x12xf32>
    %687 = arith.addf %683, %686 : vector<12x12xf32>
    %c12_90 = arith.constant 12 : index
    %688 = memref.load %arg4[%c12_90] : memref<24xf32, #tpu.memory_space<smem>>
    %689 = vector.broadcast %688 : f32 to vector<12x12xf32>
    %690 = arith.mulf %669, %689 : vector<12x12xf32>
    %691 = arith.addf %687, %690 : vector<12x12xf32>
    %c16_91 = arith.constant 16 : index
    %692 = memref.load %arg4[%c16_91] : memref<24xf32, #tpu.memory_space<smem>>
    %693 = vector.broadcast %692 : f32 to vector<12x12xf32>
    %694 = arith.mulf %671, %693 : vector<12x12xf32>
    %695 = arith.addf %691, %694 : vector<12x12xf32>
    %c20_92 = arith.constant 20 : index
    %696 = memref.load %arg4[%c20_92] : memref<24xf32, #tpu.memory_space<smem>>
    %697 = vector.broadcast %696 : f32 to vector<12x12xf32>
    %698 = arith.mulf %673, %697 : vector<12x12xf32>
    %699 = arith.addf %695, %698 : vector<12x12xf32>
    %cst_93 = arith.constant 0.000000e+00 : f32
    %700 = vector.broadcast %cst_93 : f32 to vector<12x12xf32>
    %701 = arith.maximumf %699, %700 : vector<12x12xf32>
    %c0_94 = arith.constant 0 : index
    %702 = memref.load %arg5[%c0_94] : memref<1xf32, #tpu.memory_space<smem>>
    %703 = vector.broadcast %702 : f32 to vector<12x12xf32>
    %c1_95 = arith.constant 1 : index
    %704 = memref.load %arg4[%c1_95] : memref<24xf32, #tpu.memory_space<smem>>
    %705 = vector.broadcast %704 : f32 to vector<12x12xf32>
    %706 = arith.mulf %663, %705 : vector<12x12xf32>
    %707 = arith.addf %703, %706 : vector<12x12xf32>
    %c5_96 = arith.constant 5 : index
    %708 = memref.load %arg4[%c5_96] : memref<24xf32, #tpu.memory_space<smem>>
    %709 = vector.broadcast %708 : f32 to vector<12x12xf32>
    %710 = arith.mulf %665, %709 : vector<12x12xf32>
    %711 = arith.addf %707, %710 : vector<12x12xf32>
    %c9_97 = arith.constant 9 : index
    %712 = memref.load %arg4[%c9_97] : memref<24xf32, #tpu.memory_space<smem>>
    %713 = vector.broadcast %712 : f32 to vector<12x12xf32>
    %714 = arith.mulf %667, %713 : vector<12x12xf32>
    %715 = arith.addf %711, %714 : vector<12x12xf32>
    %c13_98 = arith.constant 13 : index
    %716 = memref.load %arg4[%c13_98] : memref<24xf32, #tpu.memory_space<smem>>
    %717 = vector.broadcast %716 : f32 to vector<12x12xf32>
    %718 = arith.mulf %669, %717 : vector<12x12xf32>
    %719 = arith.addf %715, %718 : vector<12x12xf32>
    %c17_99 = arith.constant 17 : index
    %720 = memref.load %arg4[%c17_99] : memref<24xf32, #tpu.memory_space<smem>>
    %721 = vector.broadcast %720 : f32 to vector<12x12xf32>
    %722 = arith.mulf %671, %721 : vector<12x12xf32>
    %723 = arith.addf %719, %722 : vector<12x12xf32>
    %c21_100 = arith.constant 21 : index
    %724 = memref.load %arg4[%c21_100] : memref<24xf32, #tpu.memory_space<smem>>
    %725 = vector.broadcast %724 : f32 to vector<12x12xf32>
    %726 = arith.mulf %673, %725 : vector<12x12xf32>
    %727 = arith.addf %723, %726 : vector<12x12xf32>
    %cst_101 = arith.constant 0.000000e+00 : f32
    %728 = vector.broadcast %cst_101 : f32 to vector<12x12xf32>
    %729 = arith.maximumf %727, %728 : vector<12x12xf32>
    %c0_102 = arith.constant 0 : index
    %730 = memref.load %arg5[%c0_102] : memref<1xf32, #tpu.memory_space<smem>>
    %731 = vector.broadcast %730 : f32 to vector<12x12xf32>
    %c2_103 = arith.constant 2 : index
    %732 = memref.load %arg4[%c2_103] : memref<24xf32, #tpu.memory_space<smem>>
    %733 = vector.broadcast %732 : f32 to vector<12x12xf32>
    %734 = arith.mulf %663, %733 : vector<12x12xf32>
    %735 = arith.addf %731, %734 : vector<12x12xf32>
    %c6_104 = arith.constant 6 : index
    %736 = memref.load %arg4[%c6_104] : memref<24xf32, #tpu.memory_space<smem>>
    %737 = vector.broadcast %736 : f32 to vector<12x12xf32>
    %738 = arith.mulf %665, %737 : vector<12x12xf32>
    %739 = arith.addf %735, %738 : vector<12x12xf32>
    %c10_105 = arith.constant 10 : index
    %740 = memref.load %arg4[%c10_105] : memref<24xf32, #tpu.memory_space<smem>>
    %741 = vector.broadcast %740 : f32 to vector<12x12xf32>
    %742 = arith.mulf %667, %741 : vector<12x12xf32>
    %743 = arith.addf %739, %742 : vector<12x12xf32>
    %c14_106 = arith.constant 14 : index
    %744 = memref.load %arg4[%c14_106] : memref<24xf32, #tpu.memory_space<smem>>
    %745 = vector.broadcast %744 : f32 to vector<12x12xf32>
    %746 = arith.mulf %669, %745 : vector<12x12xf32>
    %747 = arith.addf %743, %746 : vector<12x12xf32>
    %c18_107 = arith.constant 18 : index
    %748 = memref.load %arg4[%c18_107] : memref<24xf32, #tpu.memory_space<smem>>
    %749 = vector.broadcast %748 : f32 to vector<12x12xf32>
    %750 = arith.mulf %671, %749 : vector<12x12xf32>
    %751 = arith.addf %747, %750 : vector<12x12xf32>
    %c22_108 = arith.constant 22 : index
    %752 = memref.load %arg4[%c22_108] : memref<24xf32, #tpu.memory_space<smem>>
    %753 = vector.broadcast %752 : f32 to vector<12x12xf32>
    %754 = arith.mulf %673, %753 : vector<12x12xf32>
    %755 = arith.addf %751, %754 : vector<12x12xf32>
    %cst_109 = arith.constant 0.000000e+00 : f32
    %756 = vector.broadcast %cst_109 : f32 to vector<12x12xf32>
    %757 = arith.maximumf %755, %756 : vector<12x12xf32>
    %c0_110 = arith.constant 0 : index
    %758 = memref.load %arg5[%c0_110] : memref<1xf32, #tpu.memory_space<smem>>
    %759 = vector.broadcast %758 : f32 to vector<12x12xf32>
    %c3_111 = arith.constant 3 : index
    %760 = memref.load %arg4[%c3_111] : memref<24xf32, #tpu.memory_space<smem>>
    %761 = vector.broadcast %760 : f32 to vector<12x12xf32>
    %762 = arith.mulf %663, %761 : vector<12x12xf32>
    %763 = arith.addf %759, %762 : vector<12x12xf32>
    %c7_112 = arith.constant 7 : index
    %764 = memref.load %arg4[%c7_112] : memref<24xf32, #tpu.memory_space<smem>>
    %765 = vector.broadcast %764 : f32 to vector<12x12xf32>
    %766 = arith.mulf %665, %765 : vector<12x12xf32>
    %767 = arith.addf %763, %766 : vector<12x12xf32>
    %c11_113 = arith.constant 11 : index
    %768 = memref.load %arg4[%c11_113] : memref<24xf32, #tpu.memory_space<smem>>
    %769 = vector.broadcast %768 : f32 to vector<12x12xf32>
    %770 = arith.mulf %667, %769 : vector<12x12xf32>
    %771 = arith.addf %767, %770 : vector<12x12xf32>
    %c15_114 = arith.constant 15 : index
    %772 = memref.load %arg4[%c15_114] : memref<24xf32, #tpu.memory_space<smem>>
    %773 = vector.broadcast %772 : f32 to vector<12x12xf32>
    %774 = arith.mulf %669, %773 : vector<12x12xf32>
    %775 = arith.addf %771, %774 : vector<12x12xf32>
    %c19_115 = arith.constant 19 : index
    %776 = memref.load %arg4[%c19_115] : memref<24xf32, #tpu.memory_space<smem>>
    %777 = vector.broadcast %776 : f32 to vector<12x12xf32>
    %778 = arith.mulf %671, %777 : vector<12x12xf32>
    %779 = arith.addf %775, %778 : vector<12x12xf32>
    %c23_116 = arith.constant 23 : index
    %780 = memref.load %arg4[%c23_116] : memref<24xf32, #tpu.memory_space<smem>>
    %781 = vector.broadcast %780 : f32 to vector<12x12xf32>
    %782 = arith.mulf %673, %781 : vector<12x12xf32>
    %783 = arith.addf %779, %782 : vector<12x12xf32>
    %cst_117 = arith.constant 0.000000e+00 : f32
    %784 = vector.broadcast %cst_117 : f32 to vector<12x12xf32>
    %785 = arith.maximumf %783, %784 : vector<12x12xf32>
    %786 = tpu.concatenate %701, %729, %757, %785 in 1 : vector<12x12xf32>, vector<12x12xf32>, vector<12x12xf32>, vector<12x12xf32> -> vector<12x48xf32>
    %c0_118 = arith.constant 0 : index
    %c0_119 = arith.constant 0 : index
    %c0_120 = arith.constant 0 : index
    %787 = vector.load %arg6[%c0_118, %c0_119, %c0_120] : memref<1x12x48xf32, #tpu.memory_space<vmem>>, vector<1x12x48xf32>
    %788 = vector.shape_cast %787 : vector<1x12x48xf32> to vector<12x48xf32>
    %789 = vector.shape_cast %786 : vector<12x48xf32> to vector<1x12x48xf32>
    tpu.vector_store %arg6[%c0_118, %c0_119, %c0_120], %789 {strides = array<i32>} : memref<1x12x48xf32, #tpu.memory_space<vmem>>, vector<1x12x48xf32>,
    return
  }
  func.func @transform_0(%arg0: i32) -> (i32, i32, i32) {
    %c0_i32 = arith.constant 0 : i32
    %c0_i32_0 = arith.constant 0 : i32
    %c0_i32_1 = arith.constant 0 : i32
    return %arg0, %c0_i32, %c0_i32_0 : i32, i32, i32
  }
  func.func @transform_1(%arg0: i32) -> i32 {
    %c0_i32 = arith.constant 0 : i32
    %c0_i32_0 = arith.constant 0 : i32
    return %c0_i32 : i32
  }
  func.func @transform_2(%arg0: i32) -> i32 {
    %c0_i32 = arith.constant 0 : i32
    %c0_i32_0 = arith.constant 0 : i32
    return %c0_i32 : i32
  }
  func.func @transform_3(%arg0: i32) -> i32 {
    %c0_i32 = arith.constant 0 : i32
    %c0_i32_0 = arith.constant 0 : i32
    return %c0_i32 : i32
  }
  func.func @transform_4(%arg0: i32) -> i32 {
    %c0_i32 = arith.constant 0 : i32
    %c0_i32_0 = arith.constant 0 : i32
    return %c0_i32 : i32
  }
  func.func @transform_5(%arg0: i32) -> (i32, i32, i32) {
    %c0_i32 = arith.constant 0 : i32
    %c0_i32_0 = arith.constant 0 : i32
    %c0_i32_1 = arith.constant 0 : i32
    return %arg0, %c0_i32, %c0_i32_0 : i32, i32, i32
  }
}

</mosaic_0001>

<bundles_post_ra>
// kernel: tpu_custom_call.1
= control target key start
LH: loop header
LB: loop body
LE: loop exit
PB: predicated region body
PF: predicated region fallthrough
CT: control target
= control target key end

     0   :  { %s4557_s0 = inlined_call_operand.hbm [shape: f32[2,16,16], index: 0, kind: input, shape index: {}]   ;;  %s4558_s1 = inlined_call_operand.vmem [shape: f32[150], index: 1, kind: input, shape index: {}]   ;;  %s4559_s2 = inlined_call_operand.vmem [shape: f32[6], index: 2, kind: input, shape index: {}]   ;;  %s4560_s3 = inlined_call_operand.vmem [shape: f32[24], index: 3, kind: input, shape index: {}]   ;;  %s4561_s4 = inlined_call_operand.<no memory space> [shape: f32[1], index: 4, kind: input, shape index: {}]   ;;  %s4562_s5 = inlined_call_operand.vmem [shape: f32[2,12,48], index: 5, kind: output, shape index: {}]  }
   0x1   :  { %10 = sst [smem:[#allocation2]] %s4561_s4 }
   0x2   :  { %11 = vsyncpa [#allocation4], 0 }
   0x3   :  { %13 = vsyncpa [#allocation4 + $0x1], 0 }
   0x4   :  { %14 = vsyncpa [#allocation5], 0 }
   0x5   :  { %15 = vsyncpa [#allocation8], 0  ;;  %s2911_s20 = smov 0   ;;  %s2913_s21 = smov 0  }
   0x6   :  { %s2915_s22 = smov 0   ;;  %s2917_s23 = smov 0  }
   0x7 LB: > { %s2930_s4 = sadd.s32 4294967295, %s2863_s23   ;;  %p41_p0 = scmp.ne.s32.totalorder %s2855_s21, %s2851_s20  ;;  %s2863_s23 = sphi %s2917_s23, %s4702_s23   ;;  %s2859_s22 = sphi %s2915_s22, %s4701_s22   ;;  %s2855_s21 = sphi %s2913_s21, %s4700_s21   ;;  %s2851_s20 = sphi %s2911_s20, %s4699_s20  }
   0x8   : > { %p4563_p1 = scmp.eq.s32.totalorder %s2930_s4, 0  ;;  %p2469_p2 = scmp.ge.s32.totalorder %s2863_s23, 1 }
   0x9   : > { %p162_p3 = scmp.lt.s32.totalorder %s2863_s23, 3  ;;  %s186_s27 = sshll.u32 %s4559_s2, 4  ;;  %s187_s27 = int_to_ptr.vmem [resolvable:$true] %s186_s27 }
   0xa   : > { %p2938_p4 = por %p4563_p1, %p41_p0  ;;  %s175_s6 = sshll.u32 %s4558_s1, 4  ;;  %s176_s6 = int_to_ptr.vmem [resolvable:$true] %s175_s6 }
   0xb   : > { %p2945_p5 = pnand %p2469_p2, %p162_p3  ;;  %s197_s10 = sshll.u32 %s4560_s3, 4  ;;  %s2963_s10 = int_to_ptr.vmem [resolvable:$true] %s197_s10 }
   0xc   : > { %s4566_s24 = scalar_select %p2938_p4, 1, 0 }
   0xd   : > { %s4567_s28 = scalar_select %p2945_p5, 1, 0 }
   0xe   : > { %p2679_p6 = pneg %p2945_p5  ;;  %s2746_s11 = scalar_lea.vmem %s187_s27, 16 }
   0xf   : > { %p2747_p8 = scmp.ne.s32.totalorder %s187_s27, %s2746_s11  ;;  %p2754_p12 = scmp.lt.s32.totalorder %s187_s27, %s187_s27 }
  0x10   : > { %p2956_p7 = pnand %p2679_p6, %p4563_p1  ;;  %p2755_p13 = scmp.lt.s32.totalorder %s2746_s11, %s2746_s11 }
  0x12   : > { %p2748_p9 = pneg %p2956_p7  ;;  %p2756_p0 = por %p2755_p13, %p2754_p12 }
  0x14   : > { %p2749_p10 = pnand %p2748_p9, %p2747_p8 }
  0x16   : > { %p2750_p11 = pneg %p2749_p10 }
  0x18   : > { %p2757_p2 = pnand %p2756_p0, %p2750_p11 }
  0x1a   : > { %2760 = shalt.err (!%p2757_p2)
}
  0x1b   : > { %s2865_s12 = smov [#allocation7]   ;;  %s2761_s13 = scalar_lea.vmem %s176_s6, 32 }
  0x1c   : > { %2685 = dma.vmem_to_smem (!%p2956_p7), %s187_s27, 16, %s2865_s12, [#allocation8]  }
  0x1d   : > { %p2762_p3 = scmp.ne.s32.totalorder %s176_s6, %s2761_s13  ;;  %p2769_p4 = scmp.lt.s32.totalorder %s176_s6, %s176_s6 }
  0x1e   : > { %p2770_p5 = scmp.lt.s32.totalorder %s2761_s13, %s2761_s13 }
  0x1f   : > { %p2764_p6 = pnand %p2762_p3, %p2748_p9 }
  0x20   : > { %p2771_p8 = por %p2770_p5, %p2769_p4 }
  0x21   : > { %p2765_p1 = pneg %p2764_p6 }
  0x23   : > { %p2772_p10 = pnand %p2771_p8, %p2765_p1 }
  0x25   : > { %2775 = shalt.err (!%p2772_p10)
}
  0x26   : > { %s2866_s14 = smov [#allocation6]   ;;  %s2776_s15 = scalar_lea.vmem %s2963_s10, 16 }
  0x27   : > { %2682 = dma.vmem_to_smem (!%p2956_p7), %s176_s6, 32, %s2866_s14, [#allocation5]  }
  0x28   : > { %p2777_p11 = scmp.ne.s32.totalorder %s2963_s10, %s2776_s15  ;;  %p2784_p0 = scmp.lt.s32.totalorder %s2963_s10, %s2963_s10 }
  0x29   : > { %p2785_p2 = scmp.lt.s32.totalorder %s2776_s15, %s2776_s15 }
  0x2a   : > { %p2779_p12 = pnand %p2777_p11, %p2748_p9 }
  0x2b   : > { %p2786_p4 = por %p2785_p2, %p2784_p0 }
  0x2c   : > { %p2780_p13 = pneg %p2779_p12 }
  0x2e   : > { %p2787_p1 = pnand %p2786_p4, %p2780_p13 }
  0x30   : > { %2790 = shalt.err (!%p2787_p1)
}
  0x31   : > { %s2867_s16 = smov [#allocation9]   ;;  %s2988_s17 = sadd.s32 1, %s2863_s23  }
  0x32   : > { %2688 = dma.vmem_to_smem (!%p2956_p7), %s2963_s10, 16, %s2867_s16, [#allocation8]  }
  0x33   : > { %s25_s18 = ssub.s32 %s2863_s23, %s2988_s17  ;;  %s28_s19 = sadd.s32 1, %s2859_s22 }
  0x34   : > { %p26_p5 = scmp.eq.s32.totalorder %s25_s18, 0  ;;  %p35_p9 = scmp.ne.s32.totalorder %s2859_s22, %s2855_s21 }
  0x35   : > { %p36_p3 = scmp.eq.s32.totalorder %s2863_s23, 0  ;;  %p2696_p6 = scmp.lt.s32.totalorder %s2863_s23, 2 }
  0x36   : > { %s2998_s20 = scalar_select %p26_p5, %s2859_s22, %s28_s19  }
  0x37   : > { %p37_p8 = por %p36_p3, %p35_p9  ;;  %s211_s25 = sand.u32 1, %s2859_s22  }
  0x38   : > { %s2474_s26 = sshll.u32 %s211_s25, 4  ;;  %s2663_s27 = sshll.u32 %s2863_s23, 8 }
  0x39   : > { %s3005_s6 = scalar_lea.hbm %s4557_s0, %s2663_s27  ;;  %s215_s7 = scalar_lea.vmem [#allocation3], %s2474_s26 }
  0x3a   : > { %s222_s8 = sshll.u32 %s215_s7, 4  ;;  %p3009_p7 = pnand %p2696_p6, %p37_p8  ;;  %s3007_s8 = int_to_ptr.vmem [resolvable:$true] %s222_s8 }
  0x3b   : > { %s3013_s23 = scalar_lea.sflag [#allocation4], %s211_s25  ;;  %s2791_s10 = scalar_lea.hbm %s3005_s6, 256 }
  0x3c   : > { %p2792_p10 = scmp.ne.s32.totalorder %s3005_s6, %s2791_s10  ;;  %p2793_p11 = pneg %p3009_p7 }
  0x3d   : > { %s2796_s13 = scalar_lea.hbm %s4557_s0, 512  ;;  %p2797_p0 = scmp.lt.u32.totalorder %s3005_s6, %s4557_s0 }
  0x3e   : > { %p2794_p12 = pnand %p2793_p11, %p2792_p10  ;;  %p2798_p2 = scmp.lt.u32.totalorder %s2796_s13, %s2791_s10 }
  0x3f   : > { %p2800_p1 = scmp.lt.u32.totalorder %s2791_s10, %s3005_s6 }
  0x40   : > { %p2795_p13 = pneg %p2794_p12  ;;  %p2799_p4 = por %p2798_p2, %p2797_p0 }
  0x42   : > { %p2801_p5 = por %p2800_p1, %p2799_p4 }
  0x44   : > { %p2802_p9 = pnand %p2801_p5, %p2795_p13 }
  0x46   : > { %2805 = shalt.err (!%p2802_p9)
}
  0x47   : > { %s2806_s16 = scalar_lea.vmem %s3007_s8, 256  ;;  %s2868_s18 = smov [#allocation3]  }
  0x48   : > { %p2807_p3 = scmp.ne.s32.totalorder %s3007_s8, %s2806_s16  ;;  %s2811_s19 = sshll.u32 %s2868_s18, 4  ;;  %s2812_s19 = int_to_ptr.vmem [resolvable:$false] %s2811_s19 }
  0x49   : > { %s2813_s25 = scalar_lea.vmem %s2812_s19, 512  ;;  %p2814_p10 = scmp.lt.s32.totalorder %s3007_s8, %s2812_s19 }
  0x4a   : > { %p2809_p6 = pnand %p2807_p3, %p2793_p11  ;;  %p2815_p12 = scmp.lt.s32.totalorder %s2813_s25, %s2806_s16 }
  0x4c   : > { %p2810_p8 = pneg %p2809_p6  ;;  %p2816_p0 = por %p2815_p12, %p2814_p10 }
  0x4e   : > { %p2817_p2 = pnand %p2816_p0, %p2810_p8 }
  0x50   : > { %2820 = shalt.err (!%p2817_p2)
}
  0x51   : > { %s2869_s26 = smov 128   ;;  %s2870_s27 = smov 8  }
  0x52   : > { %2692 = dma.hbm_to_vmem [thread:$0]  (!%p3009_p7), %s3005_s6, 256, %s3007_s8, %s3013_s23, %s2869_s26, %s2869_s26, %s2870_s27  }
  0x53   : > { %p4570_p11 = scmp.ne.s32.totalorder %s4567_s28, 0 }
  0x55   : > { %234 = sbr.rel (%p4570_p11) target bundleno = 843 (0x34b), region = 40 }
  0x5c   : > { %s236_s29 = sand.u32 1, %s2855_s21   ;;  %p4571_p13 = scmp.ne.s32.totalorder %s4566_s24, 0 }
  0x5d   : > { %s2478_s30 = sshll.u32 %s236_s29, 4  ;;  %s237_s7 = scalar_lea.sflag [#allocation4], %s236_s29 }
  0x5e   : > { %s3044_s10 = scalar_lea.vmem [#allocation3], %s2478_s30 }
  0x5f   : > { %2838 = dma.done.wait (%p4571_p13), %s237_s7, 256  }
  0x60   : > { %2840 = vsyncadd (%p4571_p13), %s237_s7, 4294967040  ;;  %p4572_p4 = scmp.eq.s32.totalorder %s2930_s4, 0 }
  0x62   : > { %2842 = dma.done.wait (%p4572_p4), [#allocation5], 32   ;;  %p4573_p7 = pmov %p4572_p4 }
  0x63   : > { %p4574_p1 = pmov %p4572_p4 }
  0x64   : > { %2844 = vsyncadd (%p4573_p7), [#allocation5], 4294967264 }
  0x65   : > { %2846 = dma.done.wait (%p4574_p1), [#allocation8], 32   ;;  %p4575_p5 = pmov %p4574_p1 }
  0x67   : > { %2848 = vsyncadd (%p4575_p5), [#allocation8], 4294967264 }
  0x68   : > { %257 = sfence }
  0x69   : > { %s2495_s28 = sld [smem:[#allocation6 + $0x1a]]  ;;  %s2494_s6 = sld [smem:[#allocation6 + $0x1]]  ;;  %v3059_v0 = vld [vmem:[%s3044_s10] sm:$0xff]  ;;  %v3062_v1 = vld [vmem:[%s3044_s10 + $0x8] sm:$0xf]  ;;  %vm2357_vm0 = vcmask 97280  }
  0x6a   : > { %s2496_s8 = sld [smem:[#allocation6 + $0x33]]  ;;  %s2497_s24 = sld [smem:[#allocation6 + $0x4c]]  ;;  %vm2360_vm1 = vcmask 195584   ;;  %vm2363_vm2 = vcmask 293888   ;;  %vm2368_vm3 = vcmask 388096   ;;  %vm2366_vm4 = vcmask 392192  }
  0x6b   : > { %s2871_s9 = smov 127   ;;  %s2498_s23 = sld [smem:[#allocation6 + $0x65]] }
  0x6c   : > { %s2499_s11 = sld [smem:[#allocation6 + $0x7e]]  ;;  %s2500_s12 = sld [smem:[#allocation6 + $0x2]] }
  0x6d   : > { %s2501_s13 = sld [smem:[#allocation6 + $0x1b]]  ;;  %s2502_s14 = sld [smem:[#allocation6 + $0x34]] }
  0x6e   : > { %s2503_s15 = sld [smem:[#allocation6 + $0x4d]]  ;;  %s2872_s16 = smov 126  }
  0x6f   : > { %v350_v2 = vstv %s2495_s28  ;;  %v336_v4 = vstv %s2494_s6  ;;  %s2504_s18 = sld [smem:[#allocation6 + $0x66]]  ;;  %s2505_s19 = sld [smem:[#allocation6 + $0x7f]] }
  0x70   : > { %v351_v3 = vmul.f32 %v350_v2, %v3059_v0  ;;  %v337_v5 = vmul.f32 %v336_v4, %v3059_v0  ;;  %v352_v6 = vmul.f32 %v350_v2, %v3062_v1  ;;  %v338_v7 = vmul.f32 %v336_v4, %v3062_v1  ;;  %s2506_s25 = sld [smem:[#allocation6 + $0x3]]  ;;  %s2507_s26 = sld [smem:[#allocation6 + $0x1c]] }
  0x71   : > { %v364_v8 = vstv %s2496_s8  ;;  %v378_v11 = vstv %s2497_s24  ;;  %v392_v14 = vstv %s2498_s23  ;;  %s2508_s27 = sld [smem:[#allocation6 + $0x35]]  ;;  %s2509_s29 = sld [smem:[#allocation6 + $0x4e]] }
  0x72   : > { %355 = vrot.lane.b32.xlu1 %v351_v3, %s2871_s9  ;;  %341 = vrot.lane.b32.xlu0 %v337_v5, %s2871_s9  ;;  %v366_v9 = vmul.f32 %v364_v8, %v3062_v1  ;;  %v365_v10 = vmul.f32 %v364_v8, %v3059_v0  ;;  %v380_v12 = vmul.f32 %v378_v11, %v3062_v1  ;;  %v406_v17 = vstv %s2499_s11  ;;  %s2873_s30 = smov 125   ;;  %s2510_s7 = sld [smem:[#allocation6 + $0x67]] }
  0x73   : > { %v379_v13 = vmul.f32 %v378_v11, %v3059_v0  ;;  %v394_v15 = vmul.f32 %v392_v14, %v3062_v1  ;;  %v393_v16 = vmul.f32 %v392_v14, %v3059_v0  ;;  %v408_v18 = vmul.f32 %v406_v17, %v3062_v1  ;;  %s2511_s28 = sld [smem:[#allocation6 + $0x80]]  ;;  %s2512_s6 = sld [smem:[#allocation6 + $0x4]]  ;;  %v3162_v14 = vld [vmem:[%s3044_s10 + $0x1] sm:$0xff] }
  0x74   : > { %v407_v19 = vmul.f32 %v406_v17, %v3059_v0  ;;  %v420_v20 = vstv %s2500_s12  ;;  %v434_v23 = vstv %s2501_s13  ;;  %v448_v26 = vstv %s2502_s14  ;;  %s2513_s8 = sld [smem:[#allocation6 + $0x1d]]  ;;  %s2514_s24 = sld [smem:[#allocation6 + $0x36]] }
  0x75   : > { %v422_v21 = vmul.f32 %v420_v20, %v3062_v1  ;;  %v421_v22 = vmul.f32 %v420_v20, %v3059_v0  ;;  %v436_v24 = vmul.f32 %v434_v23, %v3062_v1  ;;  %v435_v25 = vmul.f32 %v434_v23, %v3059_v0  ;;  %s2515_s23 = sld [smem:[#allocation6 + $0x4f]]  ;;  %s2874_s11 = smov 124  }
  0x76   : > { %357 = vrot.lane.b32.xlu1 %v352_v6, %s2871_s9  ;;  %343 = vrot.lane.b32.xlu0 %v338_v7, %s2871_s9  ;;  %v450_v27 = vmul.f32 %v448_v26, %v3062_v1  ;;  %v449_v28 = vmul.f32 %v448_v26, %v3059_v0  ;;  %v462_v29 = vstv %s2503_s15  ;;  %v476_v32 = vstv %s2504_s18  ;;  %s2516_s12 = sld [smem:[#allocation6 + $0x68]]  ;;  %s2517_s13 = sld [smem:[#allocation6 + $0x81]] }
  0x77   : > { %v464_v30 = vmul.f32 %v462_v29, %v3062_v1  ;;  %v463_v31 = vmul.f32 %v462_v29, %v3059_v0  ;;  %v478_v33 = vmul.f32 %v476_v32, %v3062_v1  ;;  %v477_v34 = vmul.f32 %v476_v32, %v3059_v0  ;;  %s2524_s14 = sld [smem:[#allocation6 + $0x6]]  ;;  %s2525_s15 = sld [smem:[#allocation6 + $0x1f]] }
  0x78   : > { %v490_v35 = vstv %s2505_s19  ;;  %v504_v38 = vstv %s2506_s25  ;;  %v518_v41 = vstv %s2507_s26  ;;  %v532_v44 = vstv %s2508_s27  ;;  %s2526_s18 = sld [smem:[#allocation6 + $0x38]]  ;;  %s2527_s19 = sld [smem:[#allocation6 + $0x51]] }
  0x79   : > { %v492_v36 = vmul.f32 %v490_v35, %v3062_v1  ;;  %v491_v37 = vmul.f32 %v490_v35, %v3059_v0  ;;  %v506_v39 = vmul.f32 %v504_v38, %v3062_v1  ;;  %v505_v40 = vmul.f32 %v504_v38, %v3059_v0  ;;  %s2528_s25 = sld [smem:[#allocation6 + $0x6a]]  ;;  %s2529_s26 = sld [smem:[#allocation6 + $0x83]] }
  0x7a   : > { %371 = vrot.lane.b32.xlu1 %v366_v9, %s2871_s9  ;;  %369 = vrot.lane.b32.xlu0 %v365_v10, %s2871_s9  ;;  %v520_v42 = vmul.f32 %v518_v41, %v3062_v1  ;;  %v519_v43 = vmul.f32 %v518_v41, %v3059_v0  ;;  %v534_v45 = vmul.f32 %v532_v44, %v3062_v1  ;;  %v546_v47 = vstv %s2509_s29  ;;  %s2530_s27 = sld [smem:[#allocation6 + $0x7]]  ;;  %s2531_s29 = sld [smem:[#allocation6 + $0x20]] }
  0x7b   : > { %v533_v46 = vmul.f32 %v532_v44, %v3059_v0  ;;  %v548_v48 = vmul.f32 %v546_v47, %v3062_v1  ;;  %v547_v49 = vmul.f32 %v546_v47, %v3059_v0  ;;  %v560_v50 = vstv %s2510_s7  ;;  %s2532_s7 = sld [smem:[#allocation6 + $0x39]]  ;;  %p280_p9 = scmp.lt.s32.totalorder %s2930_s4, 1 }
  0x7c   : > { %v562_v51 = vmul.f32 %v560_v50, %v3062_v1  ;;  %v561_v52 = vmul.f32 %v560_v50, %v3059_v0  ;;  %v574_v53 = vstv %s2511_s28  ;;  %v588_v56 = vstv %s2512_s6  ;;  %s2533_s28 = sld [smem:[#allocation6 + $0x52]]  ;;  %s2534_s6 = sld [smem:[#allocation6 + $0x6b]] }
  0x7d   : > { %v576_v54 = vmul.f32 %v574_v53, %v3062_v1  ;;  %v575_v55 = vmul.f32 %v574_v53, %v3059_v0  ;;  %v590_v57 = vmul.f32 %v588_v56, %v3062_v1  ;;  %v589_v58 = vmul.f32 %v588_v56, %v3059_v0  ;;  %s4704_s4 = smov (!%p280_p9, %s2930_s4), 1 }
  0x7e   : > { %385 = vrot.lane.b32.xlu1 %v380_v12, %s2871_s9  ;;  %383 = vrot.lane.b32.xlu0 %v379_v13, %s2871_s9  ;;  %v602_v59 = vstv %s2513_s8  ;;  %v616_v62 = vstv %s2514_s24  ;;  %s2535_s8 = sld [smem:[#allocation6 + $0x84]]  ;;  %s2536_s24 = sld [smem:[#allocation6 + $0x8]] }
  0x7f   : > { %v604_v60 = vmul.f32 %v602_v59, %v3062_v1  ;;  %v603_v61 = vmul.f32 %v602_v59, %v3059_v0  ;;  %v618_v63 = vmul.f32 %v616_v62, %v3062_v1  ;;  %v617_v2 = vmul.f32 %v616_v62, %v3059_v0  ;;  %v3159_v12 = vld [vmem:[%s3044_s10 + $0x9] sm:$0xf] }
  0x80   : > { %v630_v3 = vstv %s2515_s23  ;;  %v644_v6 = vstv %s2516_s12  ;;  %v658_v9 = vstv %s2517_s13  ;;  %v710_v13 = vstv %s2524_s14  ;;  %s2537_s23 = sld [smem:[#allocation6 + $0x21]]  ;;  %s2538_s12 = sld [smem:[#allocation6 + $0x3a]] }
  0x81   : > { %v632_v4 = vmul.f32 %v630_v3, %v3062_v1  ;;  %v631_v5 = vmul.f32 %v630_v3, %v3059_v0  ;;  %v646_v7 = vmul.f32 %v644_v6, %v3062_v1  ;;  %v645_v8 = vmul.f32 %v644_v6, %v3059_v0  ;;  %s2539_s13 = sld [smem:[#allocation6 + $0x53]]  ;;  %s2540_s14 = sld [smem:[#allocation6 + $0x6c]] }
  0x82   : > { %399 = vrot.lane.b32.xlu1 %v394_v15, %s2871_s9  ;;  %397 = vrot.lane.b32.xlu0 %v393_v16, %s2871_s9  ;;  %v660_v10 = vmul.f32 %v658_v9, %v3062_v1  ;;  %v659_v11 = vmul.f32 %v658_v9, %v3059_v0  ;;  %v712_v15 = vmul.f32 %v710_v13, %v3159_v12  ;;  %v724_v17 = vstv %s2525_s15  ;;  %s2541_s15 = sld [smem:[#allocation6 + $0x85]] }
  0x83   : > { %v711_v16 = vmul.f32 %v710_v13, %v3162_v14  ;;  %v738_v20 = vstv %s2526_s18  ;;  %v752_v23 = vstv %s2527_s19  ;;  %v766_v26 = vstv %s2528_s25  ;;  %s2542_s18 = sld [smem:[#allocation6 + $0x9]]  ;;  %s3276_s19 = sld [smem:[#allocation6 + $0x22]] }
  0x84   : > { %v780_v29 = vstv %s2529_s26  ;;  %v794_v32 = vstv %s2530_s27  ;;  %v836_v47 = vstv %s2533_s28  ;;  %v878_v62 = vstv %s2536_s24  ;;  %s3282_s25 = sld [smem:[#allocation6 + $0x19]]  ;;  %s3288_s26 = sld [smem:[#allocation6 + $0x3b]] }
  0x85   : > { %v796_v35 = vmul.f32 %v794_v32, %v3159_v12  ;;  %v838_v50 = vmul.f32 %v836_v47, %v3159_v12  ;;  %v880_v3 = vmul.f32 %v878_v62, %v3159_v12  ;;  %s3292_s27 = sld [smem:[#allocation6]]  ;;  %s3305_s28 = sld [smem:[#allocation6 + $0x54]] }
  0x86   : > { %413 = vrot.lane.b32.xlu1 %v408_v18, %s2871_s9  ;;  %411 = vrot.lane.b32.xlu0 %v407_v19, %s2871_s9  ;;  %v726_v18 = vmul.f32 %v724_v17, %v3159_v12  ;;  %v725_v19 = vmul.f32 %v724_v17, %v3162_v14  ;;  %s3313_s24 = sld [smem:[#allocation7 + $0x2]] }
  0x87   : > { %v920_v17 = vstv %s2539_s13  ;;  %s3327_s13 = sld [smem:[#allocation6 + $0x6d]] }
  0x8a   : > { %427 = vrot.lane.b32.xlu1 %v422_v21, %s2872_s16  ;;  %425 = vrot.lane.b32.xlu0 %v421_v22, %s2872_s16  ;;  %v740_v21 = vmul.f32 %v738_v20, %v3159_v12  ;;  %v739_v22 = vmul.f32 %v738_v20, %v3162_v14  ;;  %v922_v20 = vmul.f32 %v920_v17, %v3159_v12 }
  0x8e   : > { %441 = vrot.lane.b32.xlu1 %v436_v24, %s2872_s16  ;;  %439 = vrot.lane.b32.xlu0 %v435_v25, %s2872_s16  ;;  %v754_v24 = vmul.f32 %v752_v23, %v3159_v12  ;;  %v753_v25 = vmul.f32 %v752_v23, %v3162_v14 }
  0x92   : > { %455 = vrot.lane.b32.xlu1 %v450_v27, %s2872_s16  ;;  %453 = vrot.lane.b32.xlu0 %v449_v28, %s2872_s16  ;;  %v768_v27 = vmul.f32 %v766_v26, %v3159_v12  ;;  %v767_v28 = vmul.f32 %v766_v26, %v3162_v14 }
  0x96   : > { %469 = vrot.lane.b32.xlu1 %v464_v30, %s2872_s16  ;;  %467 = vrot.lane.b32.xlu0 %v463_v31, %s2872_s16  ;;  %v782_v30 = vmul.f32 %v780_v29, %v3159_v12  ;;  %v781_v31 = vmul.f32 %v780_v29, %v3162_v14 }
  0x9a   : > { %483 = vrot.lane.b32.xlu1 %v478_v33, %s2872_s16  ;;  %481 = vrot.lane.b32.xlu0 %v477_v34, %s2872_s16 }
  0x9e   : > { %497 = vrot.lane.b32.xlu1 %v492_v36, %s2872_s16  ;;  %495 = vrot.lane.b32.xlu0 %v491_v37, %s2872_s16  ;;  %v795_v36 = vmul.f32 %v794_v32, %v3162_v14  ;;  %v808_v37 = vstv %s2531_s29  ;;  %v962_v32 = vstv %s2542_s18  ;;  %s3296_s29 = sld [smem:[#allocation7 + $0x1]]  ;;  %s3341_s18 = sld [smem:[#allocation7 + $0x5]] }
  0x9f   : > { %v809_v41 = vmul.f32 %v808_v37, %v3162_v14 }
  0xa2   : > { %511 = vrot.lane.b32.xlu1 %v506_v39, %s2873_s30  ;;  %509 = vrot.lane.b32.xlu0 %v505_v40, %s2873_s30  ;;  %v810_v40 = vmul.f32 %v808_v37, %v3159_v12  ;;  %v964_v37 = vmul.f32 %v962_v32, %v3159_v12 }
  0xa6   : > { %525 = vrot.lane.b32.xlu1 %v520_v42, %s2873_s30  ;;  %523 = vrot.lane.b32.xlu0 %v519_v43, %s2873_s30  ;;  %v822_v42 = vstv %s2532_s7  ;;  %s3298_s7 = sld [smem:[#allocation6 + $0x32]] }
  0xaa   : > { %539 = vrot.lane.b32.xlu1 %v534_v45, %s2873_s30  ;;  %537 = vrot.lane.b32.xlu0 %v533_v46, %s2873_s30  ;;  %v824_v45 = vmul.f32 %v822_v42, %v3159_v12  ;;  %v823_v46 = vmul.f32 %v822_v42, %v3162_v14 }
  0xae   : > { %553 = vrot.lane.b32.xlu1 %v548_v48, %s2873_s30  ;;  %551 = vrot.lane.b32.xlu0 %v547_v49, %s2873_s30 }
  0xb2   : > { %567 = vrot.lane.b32.xlu1 %v562_v51, %s2873_s30  ;;  %565 = vrot.lane.b32.xlu0 %v561_v52, %s2873_s30  ;;  %v837_v51 = vmul.f32 %v836_v47, %v3162_v14  ;;  %v850_v52 = vstv %s2534_s6  ;;  %s3307_s6 = sld [smem:[#allocation6 + $0x4b]] }
  0xb3   : > { %v851_v56 = vmul.f32 %v850_v52, %v3162_v14 }
  0xb6   : > { %581 = vrot.lane.b32.xlu1 %v576_v54, %s2873_s30  ;;  %579 = vrot.lane.b32.xlu0 %v575_v55, %s2873_s30  ;;  %v852_v55 = vmul.f32 %v850_v52, %v3159_v12 }
  0xba   : > { %595 = vrot.lane.b32.xlu1 %v590_v57, %s2874_s11  ;;  %593 = vrot.lane.b32.xlu0 %v589_v58, %s2874_s11  ;;  %v864_v57 = vstv %s2535_s8  ;;  %s3311_s8 = sld [smem:[#allocation7]] }
  0xbe   : > { %609 = vrot.lane.b32.xlu1 %v604_v60, %s2874_s11  ;;  %607 = vrot.lane.b32.xlu0 %v603_v61, %s2874_s11  ;;  %v866_v60 = vmul.f32 %v864_v57, %v3159_v12  ;;  %v865_v61 = vmul.f32 %v864_v57, %v3162_v14 }
  0xc2   : > { %623 = vrot.lane.b32.xlu1 %v618_v63, %s2874_s11  ;;  %621 = vrot.lane.b32.xlu0 %v617_v2, %s2874_s11 }
  0xc6   : > { %637 = vrot.lane.b32.xlu1 %v632_v4, %s2874_s11  ;;  %635 = vrot.lane.b32.xlu0 %v631_v5, %s2874_s11  ;;  %v879_v4 = vmul.f32 %v878_v62, %v3162_v14  ;;  %v892_v5 = vstv %s2537_s23  ;;  %s3318_s23 = sld [smem:[#allocation6 + $0x64]] }
  0xc7   : > { %v893_v9 = vmul.f32 %v892_v5, %v3162_v14 }
  0xca   : > { %651 = vrot.lane.b32.xlu1 %v646_v7, %s2874_s11  ;;  %649 = vrot.lane.b32.xlu0 %v645_v8, %s2874_s11  ;;  %v894_v8 = vmul.f32 %v892_v5, %v3159_v12  ;;  %v1004_v5 = vstv %s3305_s28  ;;  %s3428_s28 = sld [smem:[#allocation6 + $0x3d]] }
  0xce   : > { %665 = vrot.lane.b32.xlu1 %v660_v10, %s2874_s11  ;;  %663 = vrot.lane.b32.xlu0 %v659_v11, %s2874_s11  ;;  %v906_v10 = vstv %s2538_s12  ;;  %s3320_s12 = sld [smem:[#allocation6 + $0x7d]] }
  0xd2   : > { %717 = vrot.lane.b32.xlu1 %v712_v15, %s2871_s9  ;;  %715 = vrot.lane.b32.xlu0 %v711_v16, %s2871_s9  ;;  %v908_v15 = vmul.f32 %v906_v10, %v3159_v12  ;;  %v907_v16 = vmul.f32 %v906_v10, %v3162_v14  ;;  %v318_v10 = vstv %s3307_s6  ;;  %s3435_s6 = sld [smem:[#allocation6 + $0x50]] }
  0xd6   : > { %731 = vrot.lane.b32.xlu1 %v726_v18, %s2871_s9  ;;  %729 = vrot.lane.b32.xlu0 %v725_v19, %s2871_s9 }
  0xda   : > { %745 = vrot.lane.b32.xlu1 %v740_v21, %s2871_s9  ;;  %743 = vrot.lane.b32.xlu0 %v739_v22, %s2871_s9  ;;  %v921_v21 = vmul.f32 %v920_v17, %v3162_v14  ;;  %v934_v22 = vstv %s2540_s14  ;;  %s3329_s14 = sld [smem:[#allocation7 + $0x3]]  ;;  %v286_v17 = vstv %s3311_s8  ;;  %s3449_s8 = sld [smem:[#allocation6 + $0x56]] }
  0xdb   : > { %v935_v26 = vmul.f32 %v934_v22, %v3162_v14 }
  0xde   : > { %759 = vrot.lane.b32.xlu1 %v754_v24, %s2871_s9  ;;  %757 = vrot.lane.b32.xlu0 %v753_v25, %s2871_s9  ;;  %v936_v25 = vmul.f32 %v934_v22, %v3159_v12 }
  0xe2   : > { %773 = vrot.lane.b32.xlu1 %v768_v27, %s2871_s9  ;;  %771 = vrot.lane.b32.xlu0 %v767_v28, %s2871_s9  ;;  %v948_v27 = vstv %s2541_s15  ;;  %s3339_s15 = sld [smem:[#allocation7 + $0x4]] }
  0xe4   : > { %v3188_v33 = vpop.permute.xlu1 %355  ;;  %v3190_v34 = vpop.permute.xlu0 %341 }
  0xe6   : > { %787 = vrot.lane.b32.xlu1 %v782_v30, %s2871_s9  ;;  %785 = vrot.lane.b32.xlu0 %v781_v31, %s2871_s9  ;;  %v950_v30 = vmul.f32 %v948_v27, %v3159_v12  ;;  %v949_v31 = vmul.f32 %v948_v27, %v3162_v14  ;;  %v330_v27 = vstv %s3320_s12  ;;  %s3487_s12 = sld [smem:[#allocation6 + $0x82]] }
  0xe8   : > { %v3196_v38 = vpop.permute.xlu1 %357  ;;  %v3198_v39 = vpop.permute.xlu0 %343 }
  0xea   : > { %801 = vrot.lane.b32.xlu1 %v796_v35, %s2872_s16  ;;  %799 = vrot.lane.b32.xlu0 %v795_v36, %s2872_s16 }
  0xec   : > { %v3204_v43 = vpop.permute.xlu1 %371  ;;  %v3206_v44 = vpop.permute.xlu0 %369 }
  0xee   : > { %815 = vrot.lane.b32.xlu1 %v810_v40, %s2872_s16  ;;  %813 = vrot.lane.b32.xlu0 %v809_v41, %s2872_s16  ;;  %v963_v40 = vmul.f32 %v962_v32, %v3162_v14  ;;  %v976_v41 = vstv %s3276_s19  ;;  %s3349_s19 = sld [smem:[#allocation6 + $0x86]]  ;;  %v320_v32 = vmul.f32 %v318_v10, %v3062_v1 }
  0xef   : > { %v978_v47 = vmul.f32 %v976_v41, %v3159_v12 }
  0xf0   : > { %v3212_v48 = vpop.permute.xlu1 %385  ;;  %v3214_v49 = vpop.permute.xlu0 %383 }
  0xf2   : > { %829 = vrot.lane.b32.xlu1 %v824_v45, %s2872_s16  ;;  %827 = vrot.lane.b32.xlu0 %v823_v46, %s2872_s16  ;;  %v306_v46 = vstv %s3282_s25  ;;  %s3356_s25 = sld [smem:[#allocation6 + $0x5]] }
  0xf4   : > { %v3220_v53 = vpop.permute.xlu1 %399  ;;  %v3222_v54 = vpop.permute.xlu0 %397 }
  0xf6   : > { %843 = vrot.lane.b32.xlu1 %v838_v50, %s2872_s16  ;;  %841 = vrot.lane.b32.xlu0 %v837_v51, %s2872_s16  ;;  %v977_v50 = vmul.f32 %v976_v41, %v3162_v14  ;;  %v990_v51 = vstv %s3288_s26  ;;  %s3370_s26 = sld [smem:[#allocation6 + $0xb]] }
  0xf7   : > { %v992_v62 = vmul.f32 %v990_v51, %v3159_v12 }
  0xf8   : > { %v3228_v58 = vpop.permute.xlu1 %413  ;;  %v3230_v59 = vpop.permute.xlu0 %411 }
  0xfa   : > { %857 = vrot.lane.b32.xlu1 %v852_v55, %s2872_s16  ;;  %855 = vrot.lane.b32.xlu0 %v851_v56, %s2872_s16  ;;  %v307_v55 = vmul.f32 %v306_v46, %v3059_v0  ;;  %v300_v56 = vstv %s3292_s27  ;;  %s3376_s27 = sld [smem:[#allocation6 + $0x1e]] }
  0xfc   : > { %v3236_v63 = vpop.permute.xlu1 %427  ;;  %v3238_v2 = vpop.permute.xlu0 %425 }
  0xfe   : > { %871 = vrot.lane.b32.xlu1 %v866_v60, %s2872_s16  ;;  %869 = vrot.lane.b32.xlu0 %v865_v61, %s2872_s16  ;;  %v288_v60 = vstv %s3296_s29  ;;  %v312_v61 = vstv %s3298_s7  ;;  %s3391_s29 = sld [smem:[#allocation6 + $0x24]]  ;;  %s3399_s7 = sld [smem:[#allocation6 + $0x37]] }
 0x100   : > { %v3244_v6 = vpop.permute.xlu1 %441  ;;  %v3246_v7 = vpop.permute.xlu0 %439 }
 0x102   : > { %885 = vrot.lane.b32.xlu1 %v880_v3, %s2873_s30  ;;  %883 = vrot.lane.b32.xlu0 %v879_v4, %s2873_s30  ;;  %v302_v3 = vmul.f32 %v300_v56, %v3062_v1  ;;  %v991_v4 = vmul.f32 %v990_v51, %v3162_v14 }
 0x104   : > { %v3252_v11 = vpop.permute.xlu1 %455  ;;  %v3254_v13 = vpop.permute.xlu0 %453 }
 0x106   : > { %899 = vrot.lane.b32.xlu1 %v894_v8, %s2873_s30  ;;  %897 = vrot.lane.b32.xlu0 %v893_v9, %s2873_s30  ;;  %v301_v8 = vmul.f32 %v300_v56, %v3059_v0  ;;  %v308_v9 = vmul.f32 %v306_v46, %v3062_v1 }
 0x108   : > { %v3260_v18 = vpop.permute.xlu1 %469  ;;  %v3262_v19 = vpop.permute.xlu0 %467  ;;  %v303_v41 = vadd.f32 %v301_v8, %v286_v17  ;;  %v310_v46 = vadd.f32 %v308_v9, %v288_v60  ;;  %v296_v8 = vstv %s3341_s18  ;;  %s2562_s18 = sld [smem:[#allocation6 + $0x3e]] }
 0x10a   : > { %913 = vrot.lane.b32.xlu1 %v908_v15, %s2873_s30  ;;  %911 = vrot.lane.b32.xlu0 %v907_v16, %s2873_s30  ;;  %v3358_v16 = vadd.f32 %v307_v55, %v288_v60 }
 0x10c   : > { %v3268_v23 = vpop.permute.xlu1 %483  ;;  %v3270_v24 = vpop.permute.xlu0 %481 }
 0x10e   : > { %927 = vrot.lane.b32.xlu1 %v922_v20, %s2873_s30  ;;  %925 = vrot.lane.b32.xlu0 %v921_v21, %s2873_s30  ;;  %v314_v20 = vmul.f32 %v312_v61, %v3062_v1  ;;  %v290_v21 = vstv %s3313_s24  ;;  %s3458_s24 = sld [smem:[#allocation6 + $0x69]] }
 0x110   : > { %v3278_v28 = vpop.permute.xlu1 %497  ;;  %v3280_v29 = vpop.permute.xlu0 %495  ;;  %v316_v55 = vadd.f32 %v314_v20, %v290_v21  ;;  %v347_v20 = vadd.f32 %v3190_v34, %v303_v41  ;;  %v3422_v41 = vld [vmem:[%s3044_s10 + $0xa] sm:$0xf] }
 0x112   : > { %941 = vrot.lane.b32.xlu1 %v936_v25, %s2873_s30  ;;  %939 = vrot.lane.b32.xlu0 %v935_v26, %s2873_s30  ;;  %v313_v25 = vmul.f32 %v312_v61, %v3059_v0  ;;  %v324_v26 = vstv %s3318_s23  ;;  %v431_v34 = vadd.f32 %v3238_v2, %v347_v20  ;;  %s3476_s23 = sld [smem:[#allocation6 + $0x6f]] }
 0x113   : > { %v326_v56 = vmul.f32 %v324_v26, %v3062_v1  ;;  %v325_v61 = vmul.f32 %v324_v26, %v3059_v0 }
 0x114   : > { %v3290_v35 = vpop.permute.xlu1 %511  ;;  %v3294_v36 = vpop.permute.xlu0 %509 }
 0x116   : > { %955 = vrot.lane.b32.xlu1 %v950_v30, %s2873_s30  ;;  %953 = vrot.lane.b32.xlu0 %v949_v31, %s2873_s30  ;;  %v1006_v30 = vmul.f32 %v1004_v5, %v3159_v12  ;;  %v304_v31 = vadd.f32 %v302_v3, %v286_v17  ;;  %v1032_v17 = vstv %s3349_s19  ;;  %s2563_s19 = sld [smem:[#allocation6 + $0x57]] }
 0x118   : > { %v3309_v42 = vpop.permute.xlu1 %525  ;;  %v3315_v45 = vpop.permute.xlu0 %523  ;;  %v348_v9 = vadd.f32 %v3198_v39, %v304_v31  ;;  %v674_v39 = vstv %s3356_s25  ;;  %s2564_s25 = sld [smem:[#allocation6 + $0x70]] }
 0x119   : > { %v676_v2 = vmul.f32 %v674_v39, %v3159_v12 }
 0x11a   : > { %969 = vrot.lane.b32.xlu1 %v964_v37, %s2874_s11  ;;  %967 = vrot.lane.b32.xlu0 %v963_v40, %s2874_s11  ;;  %v1005_v37 = vmul.f32 %v1004_v5, %v3162_v14  ;;  %v1018_v40 = vstv %s3327_s13  ;;  %v294_v5 = vstv %s3339_s15  ;;  %s3500_s13 = sld [smem:[#allocation6 + $0x88]]  ;;  %s3541_s15 = sld [smem:[#allocation6 + $0x25]] }
 0x11b   : > { %v1020_v60 = vmul.f32 %v1018_v40, %v3159_v12  ;;  %v3410_v31 = vadd.f32 %v325_v61, %v294_v5  ;;  %v680_v61 = vstv %s3376_s27  ;;  %s2566_s27 = sld [smem:[#allocation6 + $0xd]] }
 0x11c   : > { %v3331_v52 = vpop.permute.xlu1 %539  ;;  %v3335_v57 = vpop.permute.xlu0 %537 }
 0x11e   : > { %983 = vrot.lane.b32.xlu1 %v978_v47, %s2874_s11  ;;  %981 = vrot.lane.b32.xlu0 %v977_v50, %s2874_s11  ;;  %v292_v47 = vstv %s3329_s14  ;;  %v319_v50 = vmul.f32 %v318_v10, %v3059_v0  ;;  %s3523_s14 = sld [smem:[#allocation6 + $0xc]] }
 0x11f   : > { %v3394_v10 = vadd.f32 %v320_v32, %v292_v47 }
 0x120   : > { %v3354_v15 = vpop.permute.xlu1 %553  ;;  %v3363_v22 = vpop.permute.xlu0 %551 }
 0x122   : > { %997 = vrot.lane.b32.xlu1 %v992_v62, %s2874_s11  ;;  %995 = vrot.lane.b32.xlu0 %v991_v4, %s2874_s11  ;;  %v332_v62 = vmul.f32 %v330_v27, %v3062_v1  ;;  %v315_v4 = vadd.f32 %v313_v25, %v290_v21  ;;  %v1019_v1 = vmul.f32 %v1018_v40, %v3162_v14 }
 0x123   : > { %v3402_v21 = vadd.f32 %v319_v50, %v292_v47  ;;  %v331_v25 = vmul.f32 %v330_v27, %v3059_v0  ;;  %v1034_v0 = vmul.f32 %v1032_v17, %v3159_v12  ;;  %v1033_v27 = vmul.f32 %v1032_v17, %v3162_v14  ;;  %v3426_v50 = vld [vmem:[%s3044_s10 + $0x2] sm:$0xff] }
 0x124   : > { %v3380_v51 = vpop.permute.xlu1 %567  ;;  %v3385_v3 = vpop.permute.xlu0 %565  ;;  %v3412_v32 = vadd.f32 %v332_v62, %v296_v8  ;;  %v1084_v47 = vstv %s3370_s26  ;;  %v361_v62 = vadd.f32 %v3188_v33, %v3358_v16  ;;  %v1098_v33 = vstv %s3391_s29  ;;  %s2565_s26 = sld [smem:[#allocation6 + $0x89]]  ;;  %s2567_s29 = sld [smem:[#allocation6 + $0x26]] }
 0x125   : > { %v1086_v17 = vmul.f32 %v1084_v47, %v3422_v41  ;;  %v1085_v20 = vmul.f32 %v1084_v47, %v3426_v50  ;;  %v376_v16 = vadd.f32 %v3204_v43, %v316_v55  ;;  %v681_v47 = vmul.f32 %v680_v61, %v3162_v14 }
 0x126   : > { %1011 = vrot.lane.b32.xlu1 %v1006_v30, %s2874_s11  ;;  %1009 = vrot.lane.b32.xlu0 %v1005_v37, %s2874_s11  ;;  %v3408_v30 = vadd.f32 %v326_v56, %v294_v5  ;;  %v432_v37 = vadd.f32 %v3236_v63, %v348_v9  ;;  %v362_v56 = vadd.f32 %v3196_v38, %v310_v46 }
 0x127   : > { %v3439_v5 = vadd.f32 %v331_v25, %v296_v8  ;;  %v675_v38 = vmul.f32 %v674_v39, %v3162_v14  ;;  %v686_v25 = vstv %s3399_s7  ;;  %v460_v43 = vadd.f32 %v3252_v11, %v376_v16  ;;  %s2568_s7 = sld [smem:[#allocation6 + $0x3f]] }
 0x128   : > { %v3405_v26 = vpop.permute.xlu1 %581  ;;  %v3415_v40 = vpop.permute.xlu0 %579  ;;  %v516_v63 = vadd.f32 %v3290_v35, %v432_v37  ;;  %v446_v35 = vadd.f32 %v3244_v6, %v362_v56  ;;  %v445_v37 = vadd.f32 %v3246_v7, %v361_v62  ;;  %v375_v7 = vadd.f32 %v3206_v44, %v315_v4 }
 0x129   : > { %4576 = vst [vmem:[#allocation13_spill] sm:$0xff] %v3415_v40  ;;  %v1099_v56 = vmul.f32 %v1098_v33, %v3426_v50  ;;  %v1112_v44 = vstv %s3428_s28  ;;  %v390_v4 = vadd.f32 %v3212_v48, %v3394_v10  ;;  %v687_v48 = vmul.f32 %v686_v25, %v3162_v14  ;;  %s2569_s28 = sld [smem:[#allocation6 + $0x58]] }
 0x12a   : > { %1025 = vrot.lane.b32.xlu1 %v1020_v60, %s2874_s11  ;;  %1023 = vrot.lane.b32.xlu0 %v1019_v1, %s2874_s11  ;;  %v515_v60 = vadd.f32 %v3294_v36, %v431_v34  ;;  %v682_v36 = vmul.f32 %v680_v61, %v3159_v12  ;;  %v530_v6 = vadd.f32 %v3309_v42, %v446_v35  ;;  %v692_v61 = vstv %s3435_s6  ;;  %s2570_s6 = sld [smem:[#allocation6 + $0x71]] }
 0x12b   : > { %v529_v39 = vadd.f32 %v3315_v45, %v445_v37  ;;  %v688_v45 = vmul.f32 %v686_v25, %v3159_v12  ;;  %v1114_v35 = vmul.f32 %v1112_v44, %v3422_v41  ;;  %v698_v37 = vstv %s3458_s24  ;;  %s2572_s24 = sld [smem:[#allocation6 + $0xe]] }
 0x12c   : > { %v596_v9 = vpop.permute.xlu1 %595  ;;  %v594_v1 = vpop.permute.xlu0 %593 }
 0x12d   : > { %v600_v46 = vadd.f32 %v596_v9, %v516_v63  ;;  %v599_v40 = vadd.f32 %v594_v1, %v515_v60  ;;  %v459_v63 = vadd.f32 %v3254_v13, %v375_v7  ;;  %v389_v13 = vadd.f32 %v3214_v49, %v3402_v21 }
 0x12e   : > { %1039 = vrot.lane.b32.xlu1 %v1034_v0, %s2874_s11  ;;  %1037 = vrot.lane.b32.xlu0 %v1033_v27, %s2874_s11  ;;  %v1100_v27 = vmul.f32 %v1098_v33, %v3422_v41  ;;  %v694_v1 = vmul.f32 %v692_v61, %v3159_v12 }
 0x12f   : > { %v3455_v8 = vadd.f32 %v676_v2, %v600_v46  ;;  %v3462_v0 = vadd.f32 %v675_v38, %v599_v40  ;;  %v544_v40 = vadd.f32 %v3331_v52, %v460_v43  ;;  %v543_v62 = vadd.f32 %v3335_v57, %v459_v63 }
 0x130   : > { %v610_v34 = vpop.permute.xlu1 %609  ;;  %v608_v55 = vpop.permute.xlu0 %607  ;;  %v474_v52 = vadd.f32 %v3260_v18, %v390_v4  ;;  %v1113_v46 = vmul.f32 %v1112_v44, %v3426_v50  ;;  %v473_v49 = vadd.f32 %v3262_v19, %v389_v13  ;;  %v1126_v57 = vstv %s3449_s8  ;;  %s2571_s8 = sld [smem:[#allocation6 + $0x8a]] }
 0x131   : > { %v614_v42 = vadd.f32 %v610_v34, %v530_v6  ;;  %v613_v2 = vadd.f32 %v608_v55, %v529_v39  ;;  %v403_v19 = vadd.f32 %v3222_v54, %v3410_v31  ;;  %v1128_v25 = vmul.f32 %v1126_v57, %v3422_v41 }
 0x132   : > { %1091 = vrot.lane.b32.xlu1 %v1086_v17, %s2871_s9  ;;  %1089 = vrot.lane.b32.xlu0 %v1085_v20, %s2871_s9  ;;  %v404_v17 = vadd.f32 %v3220_v53, %v3408_v30  ;;  %v558_v20 = vadd.f32 %v3354_v15, %v474_v52  ;;  %v557_v33 = vadd.f32 %v3363_v22, %v473_v49 }
 0x133   : > { %v3478_v11 = vadd.f32 %v682_v36, %v614_v42  ;;  %v3484_v9 = vadd.f32 %v681_v47, %v613_v2  ;;  %v693_v53 = vmul.f32 %v692_v61, %v3162_v14  ;;  %v1127_v7 = vmul.f32 %v1126_v57, %v3426_v50 }
 0x134   : > { %v624_v60 = vpop.permute.xlu1 %623  ;;  %v622_v38 = vpop.permute.xlu0 %621  ;;  %v488_v15 = vadd.f32 %v3268_v23, %v404_v17  ;;  %v487_v39 = vadd.f32 %v3270_v24, %v403_v19  ;;  %v700_v22 = vmul.f32 %v698_v37, %v3159_v12  ;;  %v699_v31 = vmul.f32 %v698_v37, %v3162_v14 }
 0x135   : > { %v628_v10 = vadd.f32 %v624_v60, %v544_v40  ;;  %v627_v21 = vadd.f32 %v622_v38, %v543_v62  ;;  %v418_v34 = vadd.f32 %v3228_v58, %v3412_v32  ;;  %v1140_v47 = vstv %s3476_s23  ;;  %s2573_s23 = sld [smem:[#allocation6 + $0x27]] }
 0x136   : > { %1105 = vrot.lane.b32.xlu1 %v1100_v27, %s2871_s9  ;;  %1103 = vrot.lane.b32.xlu0 %v1099_v56, %s2871_s9  ;;  %v572_v23 = vadd.f32 %v3380_v51, %v488_v15  ;;  %v417_v24 = vadd.f32 %v3230_v59, %v3439_v5  ;;  %v571_v42 = vadd.f32 %v3385_v3, %v487_v39  ;;  %v704_v56 = vstv %s3487_s12  ;;  %s2574_s12 = sld [smem:[#allocation6 + $0x40]] }
 0x137   : > { %v3502_v18 = vadd.f32 %v688_v45, %v628_v10  ;;  %v3508_v16 = vadd.f32 %v687_v48, %v627_v21  ;;  %v502_v58 = vadd.f32 %v3278_v28, %v418_v34  ;;  %v1142_v44 = vmul.f32 %v1140_v47, %v3422_v41 }
 0x138   : > { %v638_v36 = vpop.permute.xlu1 %637  ;;  %v636_v6 = vpop.permute.xlu0 %635  ;;  %v501_v63 = vadd.f32 %v3280_v29, %v417_v24  ;;  %v1141_v45 = vmul.f32 %v1140_v47, %v3426_v50  ;;  %v1154_v3 = vstv %s3500_s13  ;;  %v706_v5 = vmul.f32 %v704_v56, %v3159_v12  ;;  %v4577_v29 = vld [vmem:[#allocation13_spill] sm:$0xff]  ;;  %s2575_s13 = sld [smem:[#allocation6 + $0x59]] }
 0x139   : > { %v642_v30 = vadd.f32 %v638_v36, %v558_v20  ;;  %v641_v54 = vadd.f32 %v636_v6, %v557_v33  ;;  %v586_v59 = vadd.f32 %v3405_v26, %v502_v58  ;;  %v705_v13 = vmul.f32 %v704_v56, %v3162_v14 }
 0x13a   : > { %1119 = vrot.lane.b32.xlu1 %v1114_v35, %s2871_s9  ;;  %1117 = vrot.lane.b32.xlu0 %v1113_v46, %s2871_s9  ;;  %v585_v4 = vadd.f32 %v4577_v29, %v501_v63  ;;  %v1156_v48 = vmul.f32 %v1154_v3, %v3422_v41  ;;  %v1155_v52 = vmul.f32 %v1154_v3, %v3426_v50  ;;  %v1168_v12 = vstv %s3523_s14  ;;  %s2576_s14 = sld [smem:[#allocation6 + $0x72]] }
 0x13b   : > { %v3525_v43 = vadd.f32 %v694_v1, %v642_v30  ;;  %v3530_v27 = vadd.f32 %v693_v53, %v641_v54  ;;  %v1170_v46 = vmul.f32 %v1168_v12, %v3422_v41  ;;  %v1169_v49 = vmul.f32 %v1168_v12, %v3426_v50 }
 0x13c   : > { %v652_v55 = vpop.permute.xlu1 %651  ;;  %v650_v32 = vpop.permute.xlu0 %649  ;;  %v1182_v21 = vstv %s3541_s15  ;;  %v1196_v37 = vstv %s2562_s18  ;;  %v1210_v15 = vstv %s2563_s19  ;;  %v1224_v39 = vstv %s2564_s25  ;;  %s2577_s15 = sld [smem:[#allocation6 + $0x8b]]  ;;  %s2584_s18 = sld [smem:[#allocation6 + $0x10]] }
 0x13d   : > { %v656_v51 = vadd.f32 %v652_v55, %v572_v23  ;;  %v655_v2 = vadd.f32 %v650_v32, %v571_v42  ;;  %v1184_v17 = vmul.f32 %v1182_v21, %v3422_v41  ;;  %v1183_v20 = vmul.f32 %v1182_v21, %v3426_v50  ;;  %s2585_s19 = sld [smem:[#allocation6 + $0x29]]  ;;  %s2586_s25 = sld [smem:[#allocation6 + $0x42]] }
 0x13e   : > { %1133 = vrot.lane.b32.xlu1 %v1128_v25, %s2871_s9  ;;  %1131 = vrot.lane.b32.xlu0 %v1127_v7, %s2871_s9  ;;  %v1198_v36 = vmul.f32 %v1196_v37, %v3422_v41  ;;  %v1197_v53 = vmul.f32 %v1196_v37, %v3426_v50  ;;  %v1212_v25 = vmul.f32 %v1210_v15, %v3422_v41  ;;  %v1238_v23 = vstv %s2565_s26  ;;  %s2587_s26 = sld [smem:[#allocation6 + $0x5b]] }
 0x13f   : > { %v3543_v28 = vadd.f32 %v700_v22, %v656_v51  ;;  %v3547_v61 = vadd.f32 %v699_v31, %v655_v2  ;;  %v1211_v7 = vmul.f32 %v1210_v15, %v3426_v50  ;;  %v1226_v31 = vmul.f32 %v1224_v39, %v3422_v41 }
 0x140   : > { %v666_v40 = vpop.permute.xlu1 %665  ;;  %v664_v60 = vpop.permute.xlu0 %663  ;;  %v1225_v34 = vmul.f32 %v1224_v39, %v3426_v50  ;;  %v1240_v42 = vmul.f32 %v1238_v23, %v3422_v41  ;;  %v1239_v55 = vmul.f32 %v1238_v23, %v3426_v50  ;;  %v1252_v56 = vstv %s2566_s27  ;;  %s2588_s27 = sld [smem:[#allocation6 + $0x74]] }
 0x141   : > { %v670_v62 = vadd.f32 %v666_v40, %v586_v59  ;;  %v669_v26 = vadd.f32 %v664_v60, %v585_v4  ;;  %v1254_v32 = vmul.f32 %v1252_v56, %v3422_v41  ;;  %v1253_v63 = vmul.f32 %v1252_v56, %v3426_v50 }
 0x142   : > { %1147 = vrot.lane.b32.xlu1 %v1142_v44, %s2871_s9  ;;  %1145 = vrot.lane.b32.xlu0 %v1141_v45, %s2871_s9  ;;  %v1266_v2 = vstv %s2567_s29  ;;  %v1308_v12 = vstv %s2570_s6  ;;  %s2589_s29 = sld [smem:[#allocation6 + $0x8d]]  ;;  %s2592_s6 = sld [smem:[#allocation6 + $0x43]] }
 0x143   : > { %v3555_v10 = vadd.f32 %v706_v5, %v670_v62  ;;  %v3559_v35 = vadd.f32 %v705_v13, %v669_v26  ;;  %v1268_v59 = vmul.f32 %v1266_v2, %v3422_v41  ;;  %v1267_v3 = vmul.f32 %v1266_v2, %v3426_v50 }
 0x144   : > { %v3557_v38 = vpop.permute.xlu1 %717  ;;  %v3561_v14 = vpop.permute.xlu0 %715  ;;  %v1280_v5 = vstv %s2568_s7  ;;  %v1294_v62 = vstv %s2569_s28  ;;  %v1310_v21 = vmul.f32 %v1308_v12, %v3422_v41  ;;  %v1350_v23 = vstv %s2573_s23  ;;  %s2590_s7 = sld [smem:[#allocation6 + $0x11]]  ;;  %s2591_s28 = sld [smem:[#allocation6 + $0x2a]] }
 0x145   : > { %v1282_v40 = vmul.f32 %v1280_v5, %v3422_v41  ;;  %v1281_v13 = vmul.f32 %v1280_v5, %v3426_v50  ;;  %v1352_v56 = vmul.f32 %v1350_v23, %v3422_v41  ;;  %s2595_s23 = sld [smem:[#allocation6 + $0x8e]] }
 0x146   : > { %1161 = vrot.lane.b32.xlu1 %v1156_v48, %s2871_s9  ;;  %1159 = vrot.lane.b32.xlu0 %v1155_v52, %s2871_s9  ;;  %v1296_v48 = vmul.f32 %v1294_v62, %v3422_v41  ;;  %v1295_v52 = vmul.f32 %v1294_v62, %v3426_v50 }
 0x148   : > { %v3568_v57 = vpop.permute.xlu1 %731  ;;  %v3570_v1 = vpop.permute.xlu0 %729 }
 0x14a   : > { %1175 = vrot.lane.b32.xlu1 %v1170_v46, %s2872_s16  ;;  %1173 = vrot.lane.b32.xlu0 %v1169_v49, %s2872_s16 }
 0x14c   : > { %v3576_v19 = vpop.permute.xlu1 %745  ;;  %v3578_v33 = vpop.permute.xlu0 %743 }
 0x14e   : > { %1189 = vrot.lane.b32.xlu1 %v1184_v17, %s2872_s16  ;;  %1187 = vrot.lane.b32.xlu0 %v1183_v20, %s2872_s16  ;;  %v1309_v17 = vmul.f32 %v1308_v12, %v3426_v50  ;;  %v1322_v20 = vstv %s2571_s8  ;;  %v1392_v12 = vstv %s2576_s14  ;;  %s2593_s8 = sld [smem:[#allocation6 + $0x5c]]  ;;  %s2602_s14 = sld [smem:[#allocation6 + $0x13]] }
 0x14f   : > { %v1323_v15 = vmul.f32 %v1322_v20, %v3426_v50 }
 0x150   : > { %v3584_v30 = vpop.permute.xlu1 %759  ;;  %v3586_v6 = vpop.permute.xlu0 %757 }
 0x152   : > { %1203 = vrot.lane.b32.xlu1 %v1198_v36, %s2872_s16  ;;  %1201 = vrot.lane.b32.xlu0 %v1197_v53, %s2872_s16  ;;  %v1324_v53 = vmul.f32 %v1322_v20, %v3422_v41  ;;  %v1394_v20 = vmul.f32 %v1392_v12, %v3422_v41 }
 0x154   : > { %v3592_v54 = vpop.permute.xlu1 %773  ;;  %v3594_v22 = vpop.permute.xlu0 %771 }
 0x156   : > { %1217 = vrot.lane.b32.xlu1 %v1212_v25, %s2872_s16  ;;  %1215 = vrot.lane.b32.xlu0 %v1211_v7, %s2872_s16  ;;  %v1336_v25 = vstv %s2572_s24  ;;  %s2594_s24 = sld [smem:[#allocation6 + $0x75]] }
 0x158   : > { %v3600_v47 = vpop.permute.xlu1 %787  ;;  %v3602_v24 = vpop.permute.xlu0 %785 }
 0x15a   : > { %1231 = vrot.lane.b32.xlu1 %v1226_v31, %s2872_s16  ;;  %1229 = vrot.lane.b32.xlu0 %v1225_v34, %s2872_s16  ;;  %v1338_v31 = vmul.f32 %v1336_v25, %v3422_v41  ;;  %v1337_v34 = vmul.f32 %v1336_v25, %v3426_v50 }
 0x15c   : > { %v3608_v58 = vpop.permute.xlu1 %801  ;;  %v3610_v51 = vpop.permute.xlu0 %799 }
 0x15e   : > { %1245 = vrot.lane.b32.xlu1 %v1240_v42, %s2872_s16  ;;  %1243 = vrot.lane.b32.xlu0 %v1239_v55, %s2872_s16 }
 0x160   : > { %v3616_v44 = vpop.permute.xlu1 %815  ;;  %v3618_v45 = vpop.permute.xlu0 %813 }
 0x162   : > { %1259 = vrot.lane.b32.xlu1 %v1254_v32, %s2873_s30  ;;  %1257 = vrot.lane.b32.xlu0 %v1253_v63, %s2873_s30  ;;  %v1351_v32 = vmul.f32 %v1350_v23, %v3426_v50  ;;  %v1364_v63 = vstv %s2574_s12  ;;  %s2596_s12 = sld [smem:[#allocation6 + $0x12]] }
 0x163   : > { %v1365_v5 = vmul.f32 %v1364_v63, %v3426_v50 }
 0x164   : > { %v3624_v29 = vpop.permute.xlu1 %829  ;;  %v3626_v4 = vpop.permute.xlu0 %827 }
 0x166   : > { %1273 = vrot.lane.b32.xlu1 %v1268_v59, %s2873_s30  ;;  %1271 = vrot.lane.b32.xlu0 %v1267_v3, %s2873_s30  ;;  %v1366_v3 = vmul.f32 %v1364_v63, %v3422_v41 }
 0x168   : > { %v3632_v60 = vpop.permute.xlu1 %843  ;;  %v3634_v26 = vpop.permute.xlu0 %841 }
 0x16a   : > { %1287 = vrot.lane.b32.xlu1 %v1282_v40, %s2873_s30  ;;  %1285 = vrot.lane.b32.xlu0 %v1281_v13, %s2873_s30  ;;  %v1378_v40 = vstv %s2575_s13  ;;  %s2597_s13 = sld [smem:[#allocation6 + $0x2b]] }
 0x16c   : > { %v3640_v46 = vpop.permute.xlu1 %857  ;;  %v3642_v49 = vpop.permute.xlu0 %855 }
 0x16e   : > { %1301 = vrot.lane.b32.xlu1 %v1296_v48, %s2873_s30  ;;  %1299 = vrot.lane.b32.xlu0 %v1295_v52, %s2873_s30  ;;  %v1380_v48 = vmul.f32 %v1378_v40, %v3422_v41  ;;  %v1379_v52 = vmul.f32 %v1378_v40, %v3426_v50 }
 0x170   : > { %v3648_v37 = vpop.permute.xlu1 %871  ;;  %v3650_v36 = vpop.permute.xlu0 %869 }
 0x172   : > { %1315 = vrot.lane.b32.xlu1 %v1310_v21, %s2873_s30  ;;  %1313 = vrot.lane.b32.xlu0 %v1309_v17, %s2873_s30 }
 0x174   : > { %v3656_v7 = vpop.permute.xlu1 %885  ;;  %v3658_v39 = vpop.permute.xlu0 %883 }
 0x176   : > { %1329 = vrot.lane.b32.xlu1 %v1324_v53, %s2873_s30  ;;  %1327 = vrot.lane.b32.xlu0 %v1323_v15, %s2873_s30  ;;  %v1393_v53 = vmul.f32 %v1392_v12, %v3426_v50  ;;  %v1406_v15 = vstv %s2577_s15  ;;  %s2598_s15 = sld [smem:[#allocation6 + $0x44]] }
 0x177   : > { %v1407_v23 = vmul.f32 %v1406_v15, %v3426_v50 }
 0x178   : > { %v3664_v42 = vpop.permute.xlu1 %899  ;;  %v3666_v55 = vpop.permute.xlu0 %897 }
 0x17a   : > { %1343 = vrot.lane.b32.xlu1 %v1338_v31, %s2874_s11  ;;  %1341 = vrot.lane.b32.xlu0 %v1337_v34, %s2874_s11  ;;  %v1408_v34 = vmul.f32 %v1406_v15, %v3422_v41 }
 0x17c   : > { %v3672_v2 = vpop.permute.xlu1 %913  ;;  %v3674_v59 = vpop.permute.xlu0 %911 }
 0x17e   : > { %1357 = vrot.lane.b32.xlu1 %v1352_v56, %s2874_s11  ;;  %1355 = vrot.lane.b32.xlu0 %v1351_v32, %s2874_s11  ;;  %v3705_v56 = vld [vmem:[%s3044_s10 + $0xb] sm:$0xf]  ;;  %v1458_v32 = vstv %s2584_s18  ;;  %s2603_s18 = sld [smem:[#allocation6 + $0x2c]] }
 0x17f   : > { %v1460_v40 = vmul.f32 %v1458_v32, %v3705_v56 }
 0x180   : > { %v3680_v13 = vpop.permute.xlu1 %927  ;;  %v3682_v62 = vpop.permute.xlu0 %925 }
 0x181   : > { %4578 = vst [vmem:[#allocation13_spill] sm:$0xff] %v3680_v13  ;;  %4579 = vst [vmem:[#allocation14_spill] sm:$0xff] %v3682_v62 }
 0x182   : > { %1371 = vrot.lane.b32.xlu1 %v1366_v3, %s2874_s11  ;;  %1369 = vrot.lane.b32.xlu0 %v1365_v5, %s2874_s11  ;;  %v3710_v3 = vld [vmem:[%s3044_s10 + $0x3] sm:$0xff] }
 0x184   : > { %v3688_v21 = vpop.permute.xlu1 %941  ;;  %v3690_v17 = vpop.permute.xlu0 %939 }
 0x185   : > { %4580 = vst [vmem:[#allocation15_spill] sm:$0xff] %v3688_v21  ;;  %4581 = vst [vmem:[#allocation16_spill] sm:$0xff] %v3690_v17 }
 0x186   : > { %1385 = vrot.lane.b32.xlu1 %v1380_v48, %s2874_s11  ;;  %1383 = vrot.lane.b32.xlu0 %v1379_v52, %s2874_s11  ;;  %v1459_v48 = vmul.f32 %v1458_v32, %v3710_v3  ;;  %v1472_v52 = vstv %s2585_s19  ;;  %s2599_s19 = sld [smem:[#allocation6 + $0x5d]] }
 0x187   : > { %v1473_v15 = vmul.f32 %v1472_v52, %v3710_v3 }
 0x188   : > { %v3696_v25 = vpop.permute.xlu1 %955  ;;  %v3698_v31 = vpop.permute.xlu0 %953 }
 0x189   : > { %4582 = vst [vmem:[#allocation17_spill] sm:$0xff] %v3696_v25  ;;  %4583 = vst [vmem:[#allocation18_spill] sm:$0xff] %v3698_v31 }
 0x18a   : > { %1399 = vrot.lane.b32.xlu1 %v1394_v20, %s2874_s11  ;;  %1397 = vrot.lane.b32.xlu0 %v1393_v53, %s2874_s11  ;;  %v1474_v53 = vmul.f32 %v1472_v52, %v3705_v56 }
 0x18c   : > { %v3707_v63 = vpop.permute.xlu1 %969  ;;  %v3712_v5 = vpop.permute.xlu0 %967 }
 0x18d   : > { %4584 = vst [vmem:[#allocation19_spill] sm:$0xff] %v3707_v63  ;;  %4585 = vst [vmem:[#allocation20_spill] sm:$0xff] %v3712_v5  ;;  %v1514_v5 = vstv %s2588_s27  ;;  %s2600_s27 = sld [smem:[#allocation6 + $0x76]] }
 0x18e   : > { %1413 = vrot.lane.b32.xlu1 %v1408_v34, %s2874_s11  ;;  %1411 = vrot.lane.b32.xlu0 %v1407_v23, %s2874_s11  ;;  %v1486_v34 = vstv %s2586_s25  ;;  %s2604_s25 = sld [smem:[#allocation6 + $0x45]] }
 0x18f   : > { %v1488_v32 = vmul.f32 %v1486_v34, %v3705_v56 }
 0x190   : > { %v3718_v12 = vpop.permute.xlu1 %983  ;;  %v3720_v20 = vpop.permute.xlu0 %981 }
 0x191   : > { %4586 = vst [vmem:[#allocation21_spill] sm:$0xff] %v3718_v12  ;;  %4587 = vst [vmem:[#allocation22_spill] sm:$0xff] %v3720_v20  ;;  %v1500_v20 = vstv %s2587_s26  ;;  %s2614_s26 = sld [smem:[#allocation6 + $0x15]] }
 0x192   : > { %1465 = vrot.lane.b32.xlu1 %v1460_v40, %s2871_s9  ;;  %1463 = vrot.lane.b32.xlu0 %v1459_v48, %s2871_s9  ;;  %v1487_v40 = vmul.f32 %v1486_v34, %v3710_v3  ;;  %v1502_v52 = vmul.f32 %v1500_v20, %v3705_v56  ;;  %v1516_v34 = vmul.f32 %v1514_v5, %v3705_v56 }
 0x194   : > { %v3726_v31 = vpop.permute.xlu1 %997  ;;  %v3728_v23 = vpop.permute.xlu0 %995 }
 0x195   : > { %4588 = vst [vmem:[#allocation23_spill] sm:$0xff] %v3726_v31  ;;  %4589 = vst [vmem:[#allocation24_spill] sm:$0xff] %v3728_v23 }
 0x196   : > { %1479 = vrot.lane.b32.xlu1 %v1474_v53, %s2871_s9  ;;  %1477 = vrot.lane.b32.xlu0 %v1473_v15, %s2871_s9  ;;  %v1501_v53 = vmul.f32 %v1500_v20, %v3710_v3 }
 0x198   : > { %v3734_v12 = vpop.permute.xlu1 %1011  ;;  %v3736_v48 = vpop.permute.xlu0 %1009 }
 0x199   : > { %4590 = vst [vmem:[#allocation25_spill] sm:$0xff] %v3734_v12  ;;  %4591 = vst [vmem:[#allocation26_spill] sm:$0xff] %v3736_v48  ;;  %v1528_v48 = vstv %s2589_s29  ;;  %s2605_s29 = sld [smem:[#allocation6 + $0x5e]] }
 0x19a   : > { %1493 = vrot.lane.b32.xlu1 %v1488_v32, %s2871_s9  ;;  %1491 = vrot.lane.b32.xlu0 %v1487_v40, %s2871_s9  ;;  %v1515_v32 = vmul.f32 %v1514_v5, %v3710_v3  ;;  %v1530_v20 = vmul.f32 %v1528_v48, %v3705_v56 }
 0x19c   : > { %v3742_v63 = vpop.permute.xlu1 %1025  ;;  %v3744_v15 = vpop.permute.xlu0 %1023 }
 0x19d   : > { %4592 = vst [vmem:[#allocation27_spill] sm:$0xff] %v3742_v63  ;;  %4593 = vst [vmem:[#allocation28_spill] sm:$0xff] %v3744_v15  ;;  %v1542_v15 = vstv %s2590_s7  ;;  %s2615_s7 = sld [smem:[#allocation6 + $0x2e]] }
 0x19e   : > { %1507 = vrot.lane.b32.xlu1 %v1502_v52, %s2871_s9  ;;  %1505 = vrot.lane.b32.xlu0 %v1501_v53, %s2871_s9  ;;  %v1529_v52 = vmul.f32 %v1528_v48, %v3710_v3  ;;  %v1544_v5 = vmul.f32 %v1542_v15, %v3705_v56 }
 0x1a0   : > { %v3750_v25 = vpop.permute.xlu1 %1039  ;;  %v3752_v40 = vpop.permute.xlu0 %1037 }
 0x1a1   : > { %4594 = vst [vmem:[#allocation29_spill] sm:$0xff] %v3750_v25  ;;  %4595 = vst [vmem:[#allocation30_spill] sm:$0xff] %v3752_v40  ;;  %v1556_v40 = vstv %s2591_s28  ;;  %s3882_s28 = sld [smem:[#allocation6 + $0xa]] }
 0x1a2   : > { %1521 = vrot.lane.b32.xlu1 %v1516_v34, %s2871_s9  ;;  %1519 = vrot.lane.b32.xlu0 %v1515_v32, %s2871_s9  ;;  %v1543_v34 = vmul.f32 %v1542_v15, %v3710_v3  ;;  %v1558_v48 = vmul.f32 %v1556_v40, %v3705_v56 }
 0x1a4   : > { %v3758_v63 = vpop.permute.xlu1 %1091  ;;  %v3760_v53 = vpop.permute.xlu0 %1089 }
 0x1a5   : > { %4596 = vst [vmem:[#allocation31_spill] sm:$0xff] %v3758_v63  ;;  %4597 = vst [vmem:[#allocation32_spill] sm:$0xff] %v3760_v53  ;;  %v1570_v53 = vstv %s2592_s6  ;;  %s3886_s6 = sld [smem:[#allocation6 + $0x16]] }
 0x1a6   : > { %1535 = vrot.lane.b32.xlu1 %v1530_v20, %s2871_s9  ;;  %1533 = vrot.lane.b32.xlu0 %v1529_v52, %s2871_s9  ;;  %v1557_v20 = vmul.f32 %v1556_v40, %v3710_v3  ;;  %v1572_v15 = vmul.f32 %v1570_v53, %v3705_v56 }
 0x1a8   : > { %v3766_v25 = vpop.permute.xlu1 %1105  ;;  %v3768_v32 = vpop.permute.xlu0 %1103 }
 0x1a9   : > { %4598 = vst [vmem:[#allocation33_spill] sm:$0xff] %v3766_v25  ;;  %4599 = vst [vmem:[#allocation34_spill] sm:$0xff] %v3768_v32  ;;  %v1584_v32 = vstv %s2593_s8  ;;  %s3888_s8 = sld [smem:[#allocation6 + $0x23]] }
 0x1aa   : > { %1549 = vrot.lane.b32.xlu1 %v1544_v5, %s2872_s16  ;;  %1547 = vrot.lane.b32.xlu0 %v1543_v34, %s2872_s16  ;;  %v1571_v5 = vmul.f32 %v1570_v53, %v3710_v3  ;;  %v1586_v40 = vmul.f32 %v1584_v32, %v3705_v56 }
 0x1ac   : > { %v3774_v63 = vpop.permute.xlu1 %1119  ;;  %v3776_v52 = vpop.permute.xlu0 %1117 }
 0x1ad   : > { %4600 = vst [vmem:[#allocation35_spill] sm:$0xff] %v3774_v63  ;;  %4601 = vst [vmem:[#allocation36_spill] sm:$0xff] %v3776_v52  ;;  %v1598_v52 = vstv %s2594_s24  ;;  %s3892_s24 = sld [smem:[#allocation6 + $0x3c]] }
 0x1ae   : > { %1563 = vrot.lane.b32.xlu1 %v1558_v48, %s2872_s16  ;;  %1561 = vrot.lane.b32.xlu0 %v1557_v20, %s2872_s16  ;;  %v1585_v48 = vmul.f32 %v1584_v32, %v3710_v3  ;;  %v1600_v53 = vmul.f32 %v1598_v52, %v3705_v56 }
 0x1b0   : > { %v3782_v25 = vpop.permute.xlu1 %1133  ;;  %v3784_v34 = vpop.permute.xlu0 %1131 }
 0x1b1   : > { %4602 = vst [vmem:[#allocation37_spill] sm:$0xff] %v3782_v25  ;;  %4603 = vst [vmem:[#allocation38_spill] sm:$0xff] %v3784_v34  ;;  %v1612_v34 = vstv %s2595_s23  ;;  %s3894_s23 = sld [smem:[#allocation6 + $0x55]] }
 0x1b2   : > { %1577 = vrot.lane.b32.xlu1 %v1572_v15, %s2872_s16  ;;  %1575 = vrot.lane.b32.xlu0 %v1571_v5, %s2872_s16  ;;  %v1599_v15 = vmul.f32 %v1598_v52, %v3710_v3  ;;  %v1614_v32 = vmul.f32 %v1612_v34, %v3705_v56 }
 0x1b4   : > { %v3790_v63 = vpop.permute.xlu1 %1147  ;;  %v3792_v20 = vpop.permute.xlu0 %1145 }
 0x1b5   : > { %4604 = vst [vmem:[#allocation39_spill] sm:$0xff] %v3790_v63  ;;  %4605 = vst [vmem:[#allocation40_spill] sm:$0xff] %v3792_v20  ;;  %v1626_v20 = vstv %s2596_s12  ;;  %s3898_s12 = sld [smem:[#allocation6 + $0x6e]] }
 0x1b6   : > { %1591 = vrot.lane.b32.xlu1 %v1586_v40, %s2872_s16  ;;  %1589 = vrot.lane.b32.xlu0 %v1585_v48, %s2872_s16  ;;  %v1613_v40 = vmul.f32 %v1612_v34, %v3710_v3  ;;  %v1628_v52 = vmul.f32 %v1626_v20, %v3705_v56 }
 0x1b7   : > { %v1066_v21 = vstv %s3894_s23  ;;  %s4099_s23 = sld [smem:[#allocation6 + $0x30]] }
 0x1b8   : > { %v3798_v25 = vpop.permute.xlu1 %1161  ;;  %v3800_v5 = vpop.permute.xlu0 %1159 }
 0x1b9   : > { %4606 = vst [vmem:[#allocation41_spill] sm:$0xff] %v3798_v25  ;;  %4607 = vst [vmem:[#allocation42_spill] sm:$0xff] %v3800_v5  ;;  %v1640_v5 = vstv %s2597_s13  ;;  %s3900_s13 = sld [smem:[#allocation6 + $0x87]] }
 0x1ba   : > { %1605 = vrot.lane.b32.xlu1 %v1600_v53, %s2872_s16  ;;  %1603 = vrot.lane.b32.xlu0 %v1599_v15, %s2872_s16  ;;  %v1627_v53 = vmul.f32 %v1626_v20, %v3710_v3  ;;  %v1642_v34 = vmul.f32 %v1640_v5, %v3705_v56 }
 0x1bc   : > { %v3806_v63 = vpop.permute.xlu1 %1175  ;;  %v3808_v48 = vpop.permute.xlu0 %1173 }
 0x1bd   : > { %4608 = vst [vmem:[#allocation43_spill] sm:$0xff] %v3806_v63  ;;  %4609 = vst [vmem:[#allocation44_spill] sm:$0xff] %v3808_v48  ;;  %v1710_v48 = vstv %s2602_s14  ;;  %s3906_s14 = sld [smem:[#allocation6 + $0x8f]] }
 0x1be   : > { %1619 = vrot.lane.b32.xlu1 %v1614_v32, %s2872_s16  ;;  %1617 = vrot.lane.b32.xlu0 %v1613_v40, %s2872_s16  ;;  %v1641_v32 = vmul.f32 %v1640_v5, %v3710_v3  ;;  %v1712_v20 = vmul.f32 %v1710_v48, %v3705_v56 }
 0x1bf   : > { %v1078_v23 = vstv %s3900_s13  ;;  %s4196_s13 = sld [smem:[#allocation6 + $0x79]] }
 0x1c0   : > { %v3814_v25 = vpop.permute.xlu1 %1189  ;;  %v3816_v15 = vpop.permute.xlu0 %1187 }
 0x1c1   : > { %4610 = vst [vmem:[#allocation45_spill] sm:$0xff] %v3814_v25  ;;  %4611 = vst [vmem:[#allocation46_spill] sm:$0xff] %v3816_v15  ;;  %v1654_v15 = vstv %s2598_s15  ;;  %s3918_s15 = sld [smem:[#allocation6 + $0x77]] }
 0x1c2   : > { %1633 = vrot.lane.b32.xlu1 %v1628_v52, %s2873_s30  ;;  %1631 = vrot.lane.b32.xlu0 %v1627_v53, %s2873_s30  ;;  %v1711_v52 = vmul.f32 %v1710_v48, %v3710_v3  ;;  %v1656_v5 = vmul.f32 %v1654_v15, %v3705_v56 }
 0x1c3   : > { %v1696_v13 = vstv %s3906_s14  ;;  %s4210_s14 = sld [smem:[#allocation6 + $0x28]] }
 0x1c4   : > { %v3822_v63 = vpop.permute.xlu1 %1203  ;;  %v3824_v40 = vpop.permute.xlu0 %1201 }
 0x1c5   : > { %4612 = vst [vmem:[#allocation47_spill] sm:$0xff] %v3822_v63  ;;  %4613 = vst [vmem:[#allocation48_spill] sm:$0xff] %v3824_v40  ;;  %v1724_v40 = vstv %s2603_s18  ;;  %s3934_s18 = sld [smem:[#allocation6 + $0xf]] }
 0x1c6   : > { %1647 = vrot.lane.b32.xlu1 %v1642_v34, %s2873_s30  ;;  %1645 = vrot.lane.b32.xlu0 %v1641_v32, %s2873_s30  ;;  %v1655_v34 = vmul.f32 %v1654_v15, %v3710_v3  ;;  %v1726_v48 = vmul.f32 %v1724_v40, %v3705_v56 }
 0x1c8   : > { %v3830_v25 = vpop.permute.xlu1 %1217  ;;  %v3832_v53 = vpop.permute.xlu0 %1215 }
 0x1c9   : > { %4614 = vst [vmem:[#allocation49_spill] sm:$0xff] %v3830_v25  ;;  %4615 = vst [vmem:[#allocation50_spill] sm:$0xff] %v3832_v53  ;;  %v1668_v53 = vstv %s2599_s19  ;;  %v1832_v25 = vstv %s2614_s26  ;;  %s3945_s19 = sld [smem:[#allocation6 + $0x47]]  ;;  %s3986_s26 = sld [smem:[#allocation6 + $0x5a]] }
 0x1ca   : > { %1717 = vrot.lane.b32.xlu1 %v1712_v20, %s2874_s11  ;;  %1715 = vrot.lane.b32.xlu0 %v1711_v52, %s2874_s11  ;;  %v1725_v20 = vmul.f32 %v1724_v40, %v3710_v3 }
 0x1cc   : > { %v3838_v63 = vpop.permute.xlu1 %1231  ;;  %v3840_v32 = vpop.permute.xlu0 %1229 }
 0x1cd   : > { %4616 = vst [vmem:[#allocation51_spill] sm:$0xff] %v3838_v63  ;;  %4617 = vst [vmem:[#allocation52_spill] sm:$0xff] %v3840_v32  ;;  %v1670_v32 = vmul.f32 %v1668_v53, %v3705_v56  ;;  %v1738_v63 = vstv %s2604_s25  ;;  %s3975_s25 = sld [smem:[#allocation6 + $0x41]] }
 0x1ce   : > { %1661 = vrot.lane.b32.xlu1 %v1656_v5, %s2873_s30  ;;  %1659 = vrot.lane.b32.xlu0 %v1655_v34, %s2873_s30  ;;  %v1669_v5 = vmul.f32 %v1668_v53, %v3710_v3  ;;  %v3868_v53 = vld [vmem:[%s3044_s10 + $0x4] sm:$0xff] }
 0x1d0   : > { %v3846_v52 = vpop.permute.xlu1 %1245  ;;  %v3848_v15 = vpop.permute.xlu0 %1243 }
 0x1d1   : > { %4618 = vst [vmem:[#allocation53_spill] sm:$0xff] %v3846_v52  ;;  %4619 = vst [vmem:[#allocation54_spill] sm:$0xff] %v3848_v15  ;;  %v1740_v52 = vmul.f32 %v1738_v63, %v3705_v56  ;;  %v3863_v15 = vld [vmem:[%s3044_s10 + $0xc] sm:$0xf] }
 0x1d2   : > { %1731 = vrot.lane.b32.xlu1 %v1726_v48, %s2874_s11  ;;  %1729 = vrot.lane.b32.xlu0 %v1725_v20, %s2874_s11  ;;  %v1739_v48 = vmul.f32 %v1738_v63, %v3710_v3 }
 0x1d4   : > { %v3854_v34 = vpop.permute.xlu1 %1259  ;;  %v3856_v40 = vpop.permute.xlu0 %1257 }
 0x1d5   : > { %4620 = vst [vmem:[#allocation55_spill] sm:$0xff] %v3854_v34  ;;  %4621 = vst [vmem:[#allocation56_spill] sm:$0xff] %v3856_v40  ;;  %v1682_v40 = vstv %s2600_s27  ;;  %s3995_s27 = sld [smem:[#allocation6 + $0x2f]] }
 0x1d6   : > { %1675 = vrot.lane.b32.xlu1 %v1670_v32, %s2873_s30  ;;  %1673 = vrot.lane.b32.xlu0 %v1669_v5, %s2873_s30  ;;  %v1834_v32 = vmul.f32 %v1832_v25, %v3863_v15  ;;  %v1833_v5 = vmul.f32 %v1832_v25, %v3868_v53 }
 0x1d8   : > { %v3865_v20 = vpop.permute.xlu1 %1273  ;;  %v3870_v17 = vpop.permute.xlu0 %1271 }
 0x1d9   : > { %4622 = vst [vmem:[#allocation57_spill] sm:$0xff] %v3865_v20  ;;  %4623 = vst [vmem:[#allocation58_spill] sm:$0xff] %v3870_v17  ;;  %v1684_v20 = vmul.f32 %v1682_v40, %v3705_v56  ;;  %v1752_v17 = vstv %s2605_s29  ;;  %s4017_s29 = sld [smem:[#allocation6 + $0x73]] }
 0x1da   : > { %1745 = vrot.lane.b32.xlu1 %v1740_v52, %s2874_s11  ;;  %1743 = vrot.lane.b32.xlu0 %v1739_v48, %s2874_s11  ;;  %v1683_v52 = vmul.f32 %v1682_v40, %v3710_v3  ;;  %v1754_v40 = vmul.f32 %v1752_v17, %v3705_v56 }
 0x1dc   : > { %v3876_v63 = vpop.permute.xlu1 %1287  ;;  %v3878_v34 = vpop.permute.xlu0 %1285 }
 0x1dd   : > { %4624 = vst [vmem:[#allocation59_spill] sm:$0xff] %v3876_v63  ;;  %4625 = vst [vmem:[#allocation60_spill] sm:$0xff] %v3878_v34  ;;  %v1048_v34 = vstv %s3882_s28  ;;  %v1916_v63 = vstv %s3886_s6  ;;  %s4026_s28 = sld [smem:[#allocation6 + $0x8c]]  ;;  %s4033_s6 = sld [smem:[#allocation6 + $0x90]] }
 0x1de   : > { %1839 = vrot.lane.b32.xlu1 %v1834_v32, %s2871_s9  ;;  %1837 = vrot.lane.b32.xlu0 %v1833_v5, %s2871_s9  ;;  %v1753_v32 = vmul.f32 %v1752_v17, %v3710_v3  ;;  %v1846_v5 = vstv %s2615_s7  ;;  %v1054_v17 = vstv %s3888_s8  ;;  %s4023_s7 = sld [smem:[#allocation6 + $0x17]]  ;;  %s4055_s8 = sld [smem:[#allocation6 + $0x60]] }
 0x1e0   : > { %v3890_v25 = vpop.permute.xlu1 %1301  ;;  %v3896_v48 = vpop.permute.xlu0 %1299 }
 0x1e1   : > { %4626 = vst [vmem:[#allocation61_spill] sm:$0xff] %v3890_v25  ;;  %4627 = vst [vmem:[#allocation62_spill] sm:$0xff] %v3896_v48 }
 0x1e2   : > { %1689 = vrot.lane.b32.xlu1 %v1684_v20, %s2873_s30  ;;  %1687 = vrot.lane.b32.xlu0 %v1683_v52, %s2873_s30  ;;  %v1848_v20 = vmul.f32 %v1846_v5, %v3863_v15  ;;  %v1847_v52 = vmul.f32 %v1846_v5, %v3868_v53  ;;  %v3937_v5 = vmul.f32 %v1048_v34, %v3426_v50 }
 0x1e4   : > { %v3908_v48 = vpop.permute.xlu1 %1315  ;;  %v3910_v25 = vpop.permute.xlu0 %1313  ;;  %4633 = vst [vmem:[#allocation68_spill] sm:$0xff] %v3937_v5  ;;  %v3982_v5 = vmul.f32 %v1078_v23, %v3426_v50 }
 0x1e5   : > { %4628 = vst [vmem:[#allocation63_spill] sm:$0xff] %v3908_v48  ;;  %4629 = vst [vmem:[#allocation64_spill] sm:$0xff] %v3910_v25  ;;  %v1060_v48 = vstv %s3892_s24  ;;  %v1072_v25 = vstv %s3898_s12  ;;  %s4063_s24 = sld [smem:[#allocation6 + $0x48]] }
 0x1e6   : > { %1759 = vrot.lane.b32.xlu1 %v1754_v40, %s2874_s11  ;;  %1757 = vrot.lane.b32.xlu0 %v1753_v32, %s2874_s11  ;;  %v3928_v40 = vmul.f32 %v1048_v34, %v3422_v41  ;;  %v1918_v32 = vmul.f32 %v1916_v63, %v3863_v15  ;;  %v3954_v31 = vmul.f32 %v1060_v48, %v3426_v50  ;;  %s4148_s12 = sld [smem:[#allocation6 + $0x18]] }
 0x1e7   : > { %v3957_v34 = vmul.f32 %v1066_v21, %v3422_v41 }
 0x1e8   : > { %v3921_v12 = vpop.permute.xlu1 %1329  ;;  %v3925_v62 = vpop.permute.xlu0 %1327  ;;  %4632 = vst [vmem:[#allocation67_spill] sm:$0xff] %v3928_v40  ;;  %v3948_v40 = vmul.f32 %v1054_v17, %v3426_v50 }
 0x1e9   : > { %4630 = vst [vmem:[#allocation65_spill] sm:$0xff] %v3921_v12  ;;  %4631 = vst [vmem:[#allocation66_spill] sm:$0xff] %v3925_v62  ;;  %v3940_v12 = vmul.f32 %v1054_v17, %v3422_v41  ;;  %v1917_v62 = vmul.f32 %v1916_v63, %v3868_v53  ;;  %v3965_v63 = vmul.f32 %v1072_v25, %v3422_v41 }
 0x1ea   : > { %1853 = vrot.lane.b32.xlu1 %v1848_v20, %s2871_s9  ;;  %1851 = vrot.lane.b32.xlu0 %v1847_v52, %s2871_s9  ;;  %4635 = vst [vmem:[#allocation70_spill] sm:$0xff] %v3948_v40  ;;  %v3951_v20 = vmul.f32 %v1060_v48, %v3422_v41  ;;  %v3962_v52 = vmul.f32 %v1066_v21, %v3426_v50 }
 0x1eb   : > { %4634 = vst [vmem:[#allocation69_spill] sm:$0xff] %v3940_v12  ;;  %v3968_v17 = vmul.f32 %v1072_v25, %v3426_v50  ;;  %v3971_v40 = vmul.f32 %v1078_v23, %v3422_v41  ;;  %v721_v21 = vadd.f32 %v3561_v14, %v3462_v0  ;;  %v1698_v25 = vmul.f32 %v1696_v13, %v3705_v56 }
 0x1ec   : > { %v3959_v12 = vpop.permute.xlu1 %1343  ;;  %v3973_v48 = vpop.permute.xlu0 %1341  ;;  %v736_v41 = vadd.f32 %v3568_v57, %v3478_v11  ;;  %v1766_v0 = vstv %s3918_s15  ;;  %v750_v50 = vadd.f32 %v3576_v19, %v3502_v18  ;;  %v764_v11 = vadd.f32 %v3584_v30, %v3525_v43  ;;  %s4225_s15 = sld [smem:[#allocation6 + $0x61]] }
 0x1ed   : > { %4636 = vst [vmem:[#allocation71_spill] sm:$0xff] %v3959_v12  ;;  %4637 = vst [vmem:[#allocation72_spill] sm:$0xff] %v3973_v48  ;;  %v722_v12 = vadd.f32 %v3557_v38, %v3455_v8  ;;  %v735_v48 = vadd.f32 %v3570_v1, %v3484_v9  ;;  %v1697_v8 = vmul.f32 %v1696_v13, %v3710_v3  ;;  %v1860_v30 = vstv %s3945_s19  ;;  %s4269_s19 = sld [smem:[#allocation6 + $0x31]] }
 0x1ee   : > { %1923 = vrot.lane.b32.xlu1 %v1918_v32, %s2872_s16  ;;  %1921 = vrot.lane.b32.xlu0 %v1917_v62, %s2872_s16  ;;  %v749_v38 = vadd.f32 %v3578_v33, %v3508_v16  ;;  %v763_v9 = vadd.f32 %v3586_v6, %v3530_v27  ;;  %v778_v57 = vadd.f32 %v3592_v54, %v3543_v28  ;;  %v1434_v13 = vstv %s3975_s25  ;;  %s4289_s25 = sld [smem:[#allocation6 + $0x92]] }
 0x1ef   : > { %v777_v1 = vadd.f32 %v3594_v22, %v3547_v61  ;;  %v792_v18 = vadd.f32 %v3600_v47, %v3555_v10  ;;  %v791_v16 = vadd.f32 %v3602_v24, %v3559_v35  ;;  %v806_v43 = vadd.f32 %v3608_v58, %v722_v12 }
 0x1f0   : > { %v4005_v14 = vpop.permute.xlu1 %1357  ;;  %v4015_v19 = vpop.permute.xlu0 %1355  ;;  %v805_v27 = vadd.f32 %v3610_v51, %v721_v21  ;;  %v1768_v28 = vmul.f32 %v1766_v0, %v3705_v56  ;;  %v1422_v61 = vstv %s3934_s18  ;;  %v820_v10 = vadd.f32 %v3616_v44, %v736_v41  ;;  %s4247_s18 = sld [smem:[#allocation6 + $0x49]] }
 0x1f1   : > { %v819_v35 = vadd.f32 %v3618_v45, %v735_v48  ;;  %v1767_v33 = vmul.f32 %v1766_v0, %v3710_v3  ;;  %v834_v6 = vadd.f32 %v3624_v29, %v750_v50  ;;  %v833_v54 = vadd.f32 %v3626_v4, %v749_v38  ;;  %v4638_v38 = vld [vmem:[#allocation23_spill] sm:$0xff] }
 0x1f2   : > { %1703 = vrot.lane.b32.xlu1 %v1698_v25, %s2873_s30  ;;  %1701 = vrot.lane.b32.xlu0 %v1697_v8, %s2873_s30  ;;  %v848_v22 = vadd.f32 %v3632_v60, %v764_v11  ;;  %v847_v47 = vadd.f32 %v3634_v26, %v763_v9  ;;  %v862_v58 = vadd.f32 %v3640_v46, %v778_v57  ;;  %v1440_v26 = vstv %s3986_s26  ;;  %s2624_s26 = sld [smem:[#allocation6 + $0x7a]] }
 0x1f3   : > { %v861_v51 = vadd.f32 %v3642_v49, %v777_v1  ;;  %v4046_v45 = vmul.f32 %v1422_v61, %v3705_v56  ;;  %v876_v29 = vadd.f32 %v3648_v37, %v792_v18  ;;  %v1862_v4 = vmul.f32 %v1860_v30, %v3863_v15  ;;  %v4640_v1 = vld [vmem:[#allocation24_spill] sm:$0xff] }
 0x1f4   : > { %v4039_v24 = vpop.permute.xlu1 %1371  ;;  %v4043_v44 = vpop.permute.xlu0 %1369  ;;  %v4053_v60 = vmul.f32 %v1422_v61, %v3710_v3  ;;  %v875_v46 = vadd.f32 %v3650_v36, %v791_v16  ;;  %v890_v49 = vadd.f32 %v3656_v7, %v806_v43  ;;  %v1861_v62 = vmul.f32 %v1860_v30, %v3868_v53 }
 0x1f5   : > { %v1930_v37 = vstv %s3995_s27  ;;  %v889_v12 = vadd.f32 %v3658_v39, %v805_v27  ;;  %v4067_v23 = vadd.f32 %v3664_v42, %v820_v10  ;;  %v4072_v36 = vmul.f32 %v1434_v13, %v3705_v56  ;;  %s2629_s27 = sld [smem:[#allocation6 + $0x62]] }
 0x1f6   : > { %1773 = vrot.lane.b32.xlu1 %v1768_v28, %s2874_s11  ;;  %1771 = vrot.lane.b32.xlu0 %v1767_v33, %s2874_s11  ;;  %v4075_v7 = vmul.f32 %v1434_v13, %v3710_v3  ;;  %v4078_v48 = vadd.f32 %v3666_v55, %v819_v35  ;;  %v918_v21 = vadd.f32 %v3672_v2, %v834_v6  ;;  %v1446_v42 = vstv %s4017_s29  ;;  %v4641_v28 = vld [vmem:[#allocation14_spill] sm:$0xff]  ;;  %v4642_v6 = vld [vmem:[#allocation15_spill] sm:$0xff]  ;;  %s2634_s29 = sld [smem:[#allocation6 + $0x4a]] }
 0x1f7   : > { %v4084_v39 = vmul.f32 %v1440_v26, %v3705_v56  ;;  %v917_v41 = vadd.f32 %v3674_v59, %v833_v54  ;;  %v1932_v8 = vmul.f32 %v1930_v37, %v3863_v15  ;;  %v2000_v0 = vstv %s4023_s7  ;;  %v4639_v59 = vld [vmem:[#allocation13_spill] sm:$0xff]  ;;  %s2625_s7 = sld [smem:[#allocation6 + $0x93]] }
 0x1f8   : > { %v4069_v32 = vpop.permute.xlu1 %1385  ;;  %v4081_v25 = vpop.permute.xlu0 %1383  ;;  %v1452_v50 = vstv %s4026_s28  ;;  %v1002_v11 = vadd.f32 %v4638_v38, %v918_v21  ;;  %v1931_v55 = vmul.f32 %v1930_v37, %v3868_v53  ;;  %v1780_v2 = vstv %s4033_s6  ;;  %s2635_s28 = sld [smem:[#allocation6 + $0x63]]  ;;  %s2631_s6 = sld [smem:[#allocation6 + $0x94]] }
 0x1f9   : > { %v4097_v9 = vmul.f32 %v1440_v26, %v3710_v3  ;;  %v932_v57 = vadd.f32 %v4639_v59, %v848_v22  ;;  %v1001_v18 = vadd.f32 %v4640_v1, %v917_v41  ;;  %v4106_v43 = vmul.f32 %v1446_v42, %v3705_v56 }
 0x1fa   : > { %1867 = vrot.lane.b32.xlu1 %v1862_v4, %s2871_s9  ;;  %1865 = vrot.lane.b32.xlu0 %v1861_v62, %s2871_s9  ;;  %v4109_v27 = vmul.f32 %v1446_v42, %v3710_v3  ;;  %v931_v61 = vadd.f32 %v4641_v28, %v847_v47  ;;  %v2002_v35 = vmul.f32 %v2000_v0, %v3863_v15  ;;  %v1874_v13 = vstv %s4055_s8  ;;  %v4643_v47 = vld [vmem:[#allocation25_spill] sm:$0xff]  ;;  %v4644_v42 = vld [vmem:[#allocation16_spill] sm:$0xff]  ;;  %s2636_s8 = sld [smem:[#allocation6 + $0x7c]] }
 0x1fb   : > { %v2001_v33 = vmul.f32 %v2000_v0, %v3868_v53  ;;  %v4117_v30 = vmul.f32 %v1452_v50, %v3705_v56  ;;  %v946_v54 = vadd.f32 %v4642_v6, %v862_v58  ;;  %v1782_v22 = vmul.f32 %v1780_v2, %v3705_v56  ;;  %v4645_v58 = vld [vmem:[#allocation17_spill] sm:$0xff]  ;;  %v4648_v28 = vld [vmem:[#allocation20_spill] sm:$0xff] }
 0x1fc   : > { %v4103_v16 = vpop.permute.xlu1 %1399  ;;  %v4112_v10 = vpop.permute.xlu0 %1397  ;;  %v4124_v4 = vmul.f32 %v1452_v50, %v3710_v3  ;;  %v1016_v26 = vadd.f32 %v4643_v47, %v932_v57  ;;  %v1064_v62 = vadd.f32 %v3951_v20, %v1002_v11  ;;  %v1781_v37 = vmul.f32 %v1780_v2, %v3710_v3  ;;  %v4647_v50 = vld [vmem:[#allocation19_spill] sm:$0xff] }
 0x1fd   : > { %v1944_v21 = vstv %s4063_s24  ;;  %v945_v41 = vadd.f32 %v4644_v42, %v861_v51  ;;  %v960_v0 = vadd.f32 %v4645_v58, %v876_v29  ;;  %v1063_v59 = vadd.f32 %v3954_v31, %v1001_v18  ;;  %v4649_v11 = vld [vmem:[#allocation35_spill] sm:$0xff]  ;;  %v4650_v51 = vld [vmem:[#allocation18_spill] sm:$0xff]  ;;  %v4651_v29 = vld [vmem:[#allocation36_spill] sm:$0xff]  ;;  %s2637_s24 = sld [smem:[#allocation6 + $0x95]] }
 0x1fe   : > { %1937 = vrot.lane.b32.xlu1 %v1932_v8, %s2872_s16  ;;  %1935 = vrot.lane.b32.xlu0 %v1931_v55, %s2872_s16  ;;  %v4646_v8 = vld [vmem:[#allocation26_spill] sm:$0xff]  ;;  %v974_v57 = vadd.f32 %v4647_v50, %v890_v49  ;;  %v973_v20 = vadd.f32 %v4648_v28, %v889_v12  ;;  %v1124_v55 = vadd.f32 %v4649_v11, %v1064_v62  ;;  %v4652_v49 = vld [vmem:[#allocation27_spill] sm:$0xff] }
 0x1ff   : > { %v1015_v38 = vadd.f32 %v4646_v8, %v931_v61  ;;  %v1876_v2 = vmul.f32 %v1874_v13, %v3863_v15  ;;  %v959_v47 = vadd.f32 %v4650_v51, %v875_v46  ;;  %v1123_v42 = vadd.f32 %v4651_v29, %v1063_v59  ;;  %v4653_v62 = vld [vmem:[#allocation47_spill] sm:$0xff]  ;;  %v4654_v46 = vld [vmem:[#allocation28_spill] sm:$0xff] }
 0x200   : > { %v4135_v1 = vpop.permute.xlu1 %1413  ;;  %v4140_v6 = vpop.permute.xlu0 %1411  ;;  %v1875_v31 = vmul.f32 %v1874_v13, %v3868_v53  ;;  %v1946_v18 = vmul.f32 %v1944_v21, %v3863_v15  ;;  %v1030_v12 = vadd.f32 %v4652_v49, %v946_v54  ;;  %v1070_v61 = vadd.f32 %v3957_v34, %v1016_v26  ;;  %v4656_v51 = vld [vmem:[#allocation67_spill] sm:$0xff]  ;;  %v4657_v54 = vld [vmem:[#allocation68_spill] sm:$0xff]  ;;  %v4658_v34 = vld [vmem:[#allocation37_spill] sm:$0xff] }
 0x201   : > { %v1208_v58 = vadd.f32 %v4653_v62, %v1124_v55  ;;  %v2014_v8 = vstv %s4099_s23  ;;  %v1029_v50 = vadd.f32 %v4654_v46, %v945_v41  ;;  %v1069_v59 = vadd.f32 %v3962_v52, %v1015_v38  ;;  %v4659_v55 = vld [vmem:[#allocation59_spill] sm:$0xff]  ;;  %v4660_v41 = vld [vmem:[#allocation21_spill] sm:$0xff]  ;;  %v4661_v52 = vld [vmem:[#allocation38_spill] sm:$0xff]  ;;  %s2181_s23 = sld [smem:[#allocation9]] }
 0x202   : > { %2007 = vrot.lane.b32.xlu1 %v2002_v35, %s2873_s30  ;;  %2005 = vrot.lane.b32.xlu0 %v2001_v33, %s2873_s30  ;;  %v4655_v35 = vld [vmem:[#allocation48_spill] sm:$0xff]  ;;  %v1945_v11 = vmul.f32 %v1944_v21, %v3868_v53  ;;  %v1052_v29 = vadd.f32 %v4656_v51, %v974_v57  ;;  %v1051_v49 = vadd.f32 %v4657_v54, %v973_v20  ;;  %v4663_v57 = vld [vmem:[#allocation29_spill] sm:$0xff] }
 0x203   : > { %v1207_v28 = vadd.f32 %v4655_v35, %v1123_v42  ;;  %v1138_v26 = vadd.f32 %v4658_v34, %v1070_v61  ;;  %v1292_v62 = vadd.f32 %v4659_v55, %v1208_v58  ;;  %v988_v46 = vadd.f32 %v4660_v41, %v4067_v23  ;;  %v4662_v42 = vld [vmem:[#allocation60_spill] sm:$0xff]  ;;  %v4664_v61 = vld [vmem:[#allocation49_spill] sm:$0xff]  ;;  %v4665_v23 = vld [vmem:[#allocation30_spill] sm:$0xff] }
 0x204   : > { %v4158_v13 = vpop.permute.xlu1 %1465  ;;  %v4165_v33 = vpop.permute.xlu0 %1463  ;;  %v1137_v38 = vadd.f32 %v4661_v52, %v1069_v59  ;;  %v2016_v21 = vmul.f32 %v2014_v8, %v3863_v15  ;;  %v1044_v51 = vadd.f32 %v4663_v57, %v960_v0  ;;  %v1076_v20 = vadd.f32 %v3965_v63, %v1030_v12  ;;  %v4667_v0 = vld [vmem:[#allocation22_spill] sm:$0xff]  ;;  %v4668_v12 = vld [vmem:[#allocation39_spill] sm:$0xff]  ;;  %v4669_v52 = vld [vmem:[#allocation61_spill] sm:$0xff] }
 0x205   : > { %v1291_v35 = vadd.f32 %v4662_v42, %v1207_v28  ;;  %v1222_v54 = vadd.f32 %v4664_v61, %v1138_v26  ;;  %v1376_v58 = vadd.f32 %v4039_v24, %v1292_v62  ;;  %v1043_v34 = vadd.f32 %v4665_v23, %v959_v47  ;;  %v4666_v28 = vld [vmem:[#allocation50_spill] sm:$0xff]  ;;  %v4670_v47 = vld [vmem:[#allocation69_spill] sm:$0xff] }
 0x206   : > { %1787 = vrot.lane.b32.xlu1 %v1782_v22, %s2874_s11  ;;  %1785 = vrot.lane.b32.xlu0 %v1781_v37, %s2874_s11  ;;  %v1075_v59 = vadd.f32 %v3968_v17, %v1029_v50  ;;  %v1221_v55 = vadd.f32 %v4666_v28, %v1137_v38  ;;  %v987_v63 = vadd.f32 %v4667_v0, %v4078_v48  ;;  %v4671_v17 = vld [vmem:[#allocation40_spill] sm:$0xff]  ;;  %v4672_v38 = vld [vmem:[#allocation62_spill] sm:$0xff] }
 0x207   : > { %v1375_v22 = vadd.f32 %v4043_v44, %v1291_v35  ;;  %v1152_v26 = vadd.f32 %v4668_v12, %v1076_v20  ;;  %v1306_v24 = vadd.f32 %v4669_v52, %v1222_v54  ;;  %v2015_v37 = vmul.f32 %v2014_v8, %v3868_v53  ;;  %v4673_v35 = vld [vmem:[#allocation51_spill] sm:$0xff]  ;;  %v4674_v54 = vld [vmem:[#allocation52_spill] sm:$0xff] }
 0x208   : > { %v4182_v41 = vpop.permute.xlu1 %1479  ;;  %v4188_v62 = vpop.permute.xlu0 %1477  ;;  %v1058_v42 = vadd.f32 %v4670_v47, %v988_v46  ;;  %v1151_v50 = vadd.f32 %v4671_v17, %v1075_v59  ;;  %v1305_v57 = vadd.f32 %v4672_v38, %v1221_v55  ;;  %v2084_v44 = vstv %s4148_s12  ;;  %v4675_v55 = vld [vmem:[#allocation70_spill] sm:$0xff]  ;;  %v4677_v12 = vld [vmem:[#allocation63_spill] sm:$0xff]  ;;  %s2179_s12 = sld [smem:[#allocation2]] }
 0x209   : > { %v1082_v48 = vadd.f32 %v3971_v40, %v1044_v51  ;;  %v1236_v20 = vadd.f32 %v4673_v35, %v1152_v26  ;;  %v1390_v61 = vadd.f32 %v4069_v32, %v1306_v24  ;;  %v1438_v8 = vadd.f32 %v4072_v36, %v1376_v58  ;;  %v4676_v40 = vld [vmem:[#allocation41_spill] sm:$0xff]  ;;  %v4679_v58 = vld [vmem:[#allocation64_spill] sm:$0xff] }
 0x20a   : > { %1881 = vrot.lane.b32.xlu1 %v1876_v2, %s2871_s9  ;;  %1879 = vrot.lane.b32.xlu0 %v1875_v31, %s2871_s9  ;;  %v1081_v46 = vadd.f32 %v3982_v5, %v1043_v34  ;;  %v1235_v23 = vadd.f32 %v4674_v54, %v1151_v50  ;;  %v1389_v59 = vadd.f32 %v4081_v25, %v1305_v57  ;;  %v4678_v31 = vld [vmem:[#allocation42_spill] sm:$0xff]  ;;  %v4680_v25 = vld [vmem:[#allocation31_spill] sm:$0xff]  ;;  %v4682_v50 = vld [vmem:[#allocation32_spill] sm:$0xff] }
 0x20b   : > { %v1437_v28 = vadd.f32 %v4075_v7, %v1375_v22  ;;  %v1057_v0 = vadd.f32 %v4675_v55, %v987_v63  ;;  %v1166_v51 = vadd.f32 %v4676_v40, %v1082_v48  ;;  %v1320_v26 = vadd.f32 %v4677_v12, %v1236_v20  ;;  %v4681_v63 = vld [vmem:[#allocation53_spill] sm:$0xff]  ;;  %v4683_v57 = vld [vmem:[#allocation54_spill] sm:$0xff]  ;;  %v4684_v20 = vld [vmem:[#allocation43_spill] sm:$0xff] }
 0x20c   : > { %v1494_v2 = vpop.permute.xlu1 %1493  ;;  %v1492_v36 = vpop.permute.xlu0 %1491  ;;  %v1165_v5 = vadd.f32 %v4678_v31, %v1081_v46  ;;  %v1319_v34 = vadd.f32 %v4679_v58, %v1235_v23  ;;  %v2086_v7 = vmul.f32 %v2084_v44, %v3863_v15  ;;  %v1096_v22 = vadd.f32 %v4680_v25, %v1052_v29  ;;  %v4685_v46 = vld [vmem:[#allocation65_spill] sm:$0xff]  ;;  %v4689_v55 = vld [vmem:[#allocation55_spill] sm:$0xff]  ;;  %v4690_v12 = vld [vmem:[#allocation34_spill] sm:$0xff] }
 0x20d   : > { %v4212_v32 = vadd.f32 %v1494_v2, %v1438_v8  ;;  %v4216_v52 = vadd.f32 %v1492_v36, %v1437_v28  ;;  %v1250_v24 = vadd.f32 %v4681_v63, %v1166_v51  ;;  %v1404_v47 = vadd.f32 %v4103_v16, %v1320_v26  ;;  %v4687_v2 = vld [vmem:[#allocation66_spill] sm:$0xff]  ;;  %v4691_v36 = vld [vmem:[#allocation56_spill] sm:$0xff]  ;;  %v4692_v58 = vld [vmem:[#allocation45_spill] sm:$0xff] }
 0x20e   : > { %1951 = vrot.lane.b32.xlu1 %v1946_v18, %s2872_s16  ;;  %1949 = vrot.lane.b32.xlu0 %v1945_v11, %s2872_s16  ;;  %v1444_v17 = vadd.f32 %v4084_v39, %v1390_v61  ;;  %v1095_v38 = vadd.f32 %v4682_v50, %v1051_v49  ;;  %v1249_v48 = vadd.f32 %v4683_v57, %v1165_v5  ;;  %v4686_v61 = vld [vmem:[#allocation44_spill] sm:$0xff]  ;;  %v4693_v25 = vld [vmem:[#allocation71_spill] sm:$0xff]  ;;  %v4694_v63 = vld [vmem:[#allocation46_spill] sm:$0xff] }
 0x20f   : > { %v1403_v18 = vadd.f32 %v4112_v10, %v1319_v34  ;;  %v1443_v29 = vadd.f32 %v4097_v9, %v1389_v59  ;;  %v1180_v8 = vadd.f32 %v4684_v20, %v1096_v22  ;;  %v1334_v16 = vadd.f32 %v4685_v46, %v1250_v24  ;;  %v4688_v9 = vld [vmem:[#allocation33_spill] sm:$0xff] }
 0x210   : > { %v1508_v35 = vpop.permute.xlu1 %1507  ;;  %v1506_v11 = vpop.permute.xlu0 %1505  ;;  %v2085_v39 = vmul.f32 %v2084_v44, %v3868_v53  ;;  %v1179_v23 = vadd.f32 %v4686_v61, %v1095_v38  ;;  %v1333_v49 = vadd.f32 %v4687_v2, %v1249_v48  ;;  %v1888_v10 = vstv %s4196_s13  ;;  %v4696_v50 = vld [vmem:[#allocation57_spill] sm:$0xff]  ;;  %s2643_s13 = sld [smem:[#allocation9 + $0x1]] }
 0x211   : > { %v4233_v54 = vadd.f32 %v1508_v35, %v1444_v17  ;;  %v4238_v28 = vadd.f32 %v1506_v11, %v1443_v29  ;;  %v1110_v59 = vadd.f32 %v4688_v9, %v1058_v42  ;;  %v1264_v40 = vadd.f32 %v4689_v55, %v1180_v8 }
 0x212   : > { %2021 = vrot.lane.b32.xlu1 %v2016_v21, %s2873_s30  ;;  %v1418_v51 = vadd.f32 %v4135_v1, %v1334_v16  ;;  %2019 = vrot.lane.b32.xlu0 %v2015_v37, %s2873_s30  ;;  %v1450_v44 = vadd.f32 %v4106_v43, %v1404_v47  ;;  %v1109_v26 = vadd.f32 %v4690_v12, %v1057_v0  ;;  %v1428_v22 = vstv %s4210_s14  ;;  %v4695_v47 = vld [vmem:[#allocation72_spill] sm:$0xff]  ;;  %s2649_s14 = sld [smem:[#allocation9 + $0x2]] }
 0x213   : > { %v1263_v31 = vadd.f32 %v4691_v36, %v1179_v23  ;;  %v1417_v5 = vadd.f32 %v4140_v6, %v1333_v49  ;;  %v1449_v42 = vadd.f32 %v4109_v27, %v1403_v18  ;;  %v1194_v34 = vadd.f32 %v4692_v58, %v1110_v59  ;;  %v4697_v18 = vld [vmem:[#allocation58_spill] sm:$0xff] }
 0x214   : > { %v1522_v21 = vpop.permute.xlu1 %1521  ;;  %v1348_v1 = vadd.f32 %v4693_v25, %v1264_v40  ;;  %v1520_v43 = vpop.permute.xlu0 %1519  ;;  %v1193_v24 = vadd.f32 %v4694_v63, %v1109_v26  ;;  %v1890_v6 = vmul.f32 %v1888_v10, %v3863_v15  ;;  %v1456_v38 = vadd.f32 %v4117_v30, %v1418_v51 }
 0x215   : > { %v4256_v37 = vadd.f32 %v1522_v21, %v1450_v44  ;;  %v1347_v0 = vadd.f32 %v4695_v47, %v1263_v31  ;;  %v4260_v17 = vadd.f32 %v1520_v43, %v1449_v42  ;;  %v1278_v27 = vadd.f32 %v4696_v50, %v1194_v34 }
 0x216   : > { %2091 = vrot.lane.b32.xlu1 %v2086_v7, %s2874_s11  ;;  %2089 = vrot.lane.b32.xlu0 %v2085_v39, %s2874_s11  ;;  %v1889_v57 = vmul.f32 %v1888_v10, %v3868_v53  ;;  %v1958_v48 = vstv %s4225_s15  ;;  %v1277_v35 = vadd.f32 %v4697_v18, %v1193_v24  ;;  %v1430_v29 = vmul.f32 %v1428_v22, %v3705_v56  ;;  %s2655_s15 = sld [smem:[#allocation9 + $0x3]] }
 0x217   : > { %v1455_v7 = vadd.f32 %v4124_v4, %v1417_v5  ;;  %v1362_v8 = vadd.f32 %v4005_v14, %v1278_v27  ;;  %v1426_v46 = vadd.f32 %v4046_v45, %v1348_v1  ;;  %v1429_v16 = vmul.f32 %v1428_v22, %v3710_v3 }
 0x218   : > { %v1536_v20 = vpop.permute.xlu1 %1535  ;;  %v1534_v11 = vpop.permute.xlu0 %1533  ;;  %v1361_v39 = vadd.f32 %v4015_v19, %v1277_v35  ;;  %v1425_v61 = vadd.f32 %v4053_v60, %v1347_v0  ;;  %v1960_v56 = vmul.f32 %v1958_v48, %v3863_v15  ;;  %v1959_v3 = vmul.f32 %v1958_v48, %v3868_v53 }
 0x219   : > { %v4277_v30 = vadd.f32 %v1536_v20, %v1456_v38  ;;  %v4281_v23 = vadd.f32 %v1534_v11, %v1455_v7  ;;  %v1470_v4 = vadd.f32 %v4158_v13, %v1426_v46  ;;  %v2028_v14 = vstv %s4247_s18  ;;  %s4423_s18 = sld [smem:[#allocation9 + $0x4]] }
 0x21a   : > { %1895 = vrot.lane.b32.xlu1 %v1890_v6, %s2871_s9  ;;  %1893 = vrot.lane.b32.xlu0 %v1889_v57, %s2871_s9  ;;  %v1469_v19 = vadd.f32 %v4165_v33, %v1425_v61  ;;  %v1432_v60 = vadd.f32 %v1430_v29, %v1362_v8  ;;  %v1431_v10 = vadd.f32 %v1429_v16, %v1361_v39  ;;  %v2098_v40 = vstv %s4269_s19  ;;  %s4425_s19 = sld [smem:[#allocation9 + $0x5]] }
 0x21b   : > { %v2030_v13 = vmul.f32 %v2028_v14, %v3863_v15  ;;  %v2029_v55 = vmul.f32 %v2028_v14, %v3868_v53  ;;  %v2100_v36 = vmul.f32 %v2098_v40, %v3863_v15  ;;  %v1902_v31 = vstv %s4289_s25  ;;  %s4427_s25 = sld [smem:[#allocation9 + $0x6]] }
 0x21c   : > { %v1550_v45 = vpop.permute.xlu1 %1549  ;;  %v1548_v49 = vpop.permute.xlu0 %1547  ;;  %v1484_v59 = vadd.f32 %v4182_v41, %v1432_v60  ;;  %v1483_v33 = vadd.f32 %v4188_v62, %v1431_v10  ;;  %v2099_v41 = vmul.f32 %v2098_v40, %v3868_v53  ;;  %v1904_v58 = vmul.f32 %v1902_v31, %v3863_v15 }
 0x21d   : > { %v4292_v2 = vadd.f32 %v1550_v45, %v1470_v4  ;;  %v1553_v9 = vadd.f32 %v1548_v49, %v1469_v19  ;;  %v1903_v34 = vmul.f32 %v1902_v31, %v3868_v53  ;;  %v1972_v25 = vstv %s2624_s26  ;;  %s4429_s26 = sld [smem:[#allocation9 + $0x7]] }
 0x21e   : > { %1965 = vrot.lane.b32.xlu1 %v1960_v56, %s2872_s16  ;;  %1963 = vrot.lane.b32.xlu0 %v1959_v3, %s2872_s16  ;;  %v1973_v63 = vmul.f32 %v1972_v25, %v3868_v53  ;;  %v2042_v24 = vstv %s2629_s27  ;;  %v2112_v27 = vstv %s2634_s29  ;;  %s4437_s27 = sld [smem:[#allocation6 + $0x5f]]  ;;  %s4443_s29 = sld [smem:[#allocation6 + $0x78]] }
 0x21f   : > { %v2043_v50 = vmul.f32 %v2042_v24, %v3868_v53  ;;  %v2113_v18 = vmul.f32 %v2112_v27, %v3868_v53  ;;  %v1986_v35 = vstv %s2625_s7  ;;  %v2126_v3 = vstv %s2635_s28  ;;  %s4447_s7 = sld [smem:[#allocation9 + $0x8]]  ;;  %s4453_s28 = sld [smem:[#allocation9 + $0xa]] }
 0x220   : > { %v1564_v51 = vpop.permute.xlu1 %1563  ;;  %v1562_v12 = vpop.permute.xlu0 %1561  ;;  %v1988_v46 = vmul.f32 %v1986_v35, %v3863_v15  ;;  %v1987_v16 = vmul.f32 %v1986_v35, %v3868_v53  ;;  %v2127_v49 = vmul.f32 %v2126_v3, %v3868_v53  ;;  %v2070_v10 = vstv %s2631_s6  ;;  %s4455_s6 = sld [smem:[#allocation9 + $0xb]] }
 0x221   : > { %v1568_v44 = vadd.f32 %v1564_v51, %v1484_v59  ;;  %v1567_v26 = vadd.f32 %v1562_v12, %v1483_v33  ;;  %v2072_v40 = vmul.f32 %v2070_v10, %v3863_v15  ;;  %v2071_v33 = vmul.f32 %v2070_v10, %v3868_v53 }
 0x222   : > { %2035 = vrot.lane.b32.xlu1 %v2030_v13, %s2873_s30  ;;  %2033 = vrot.lane.b32.xlu0 %v2029_v55, %s2873_s30  ;;  %v2140_v51 = vstv %s2636_s8  ;;  %s4458_s8 = sld [smem:[#allocation6 + $0x91]] }
 0x223   : > { %v2141_v31 = vmul.f32 %v2140_v51, %v3868_v53 }
 0x224   : > { %v1578_v5 = vpop.permute.xlu1 %1577  ;;  %v1576_v42 = vpop.permute.xlu0 %1575 }
 0x225   : > { %v4307_v21 = vadd.f32 %v1578_v5, %v4212_v32  ;;  %v4310_v62 = vadd.f32 %v1576_v42, %v4216_v52  ;;  %v1974_v52 = vmul.f32 %v1972_v25, %v3863_v15  ;;  %v2154_v5 = vstv %s2637_s24  ;;  %s4481_s24 = sld [smem:[#allocation9 + $0xd]] }
 0x226   : > { %2105 = vrot.lane.b32.xlu1 %v2100_v36, %s2874_s11  ;;  %2103 = vrot.lane.b32.xlu0 %v2099_v41, %s2874_s11  ;;  %v2142_v41 = vmul.f32 %v2140_v51, %v3863_v15  ;;  %v2156_v25 = vmul.f32 %v2154_v5, %v3863_v15 }
 0x228   : > { %v1592_v1 = vpop.permute.xlu1 %1591  ;;  %v1590_v32 = vpop.permute.xlu0 %1589 }
 0x229   : > { %v4317_v22 = vadd.f32 %v1592_v1, %v4233_v54  ;;  %v4320_v43 = vadd.f32 %v1590_v32, %v4238_v28  ;;  %v2044_v28 = vmul.f32 %v2042_v24, %v3863_v15  ;;  %v2155_v1 = vmul.f32 %v2154_v5, %v3868_v53 }
 0x22a   : > { %1909 = vrot.lane.b32.xlu1 %v1904_v58, %s2871_s9  ;;  %1907 = vrot.lane.b32.xlu0 %v1903_v34, %s2871_s9  ;;  %s2630_s9 = sld [smem:[#allocation6 + $0x7b]] }
 0x22c   : > { %v1606_v47 = vpop.permute.xlu1 %1605  ;;  %v1604_v54 = vpop.permute.xlu0 %1603 }
 0x22d   : > { %v4327_v0 = vadd.f32 %v1606_v47, %v4256_v37  ;;  %v4330_v6 = vadd.f32 %v1604_v54, %v4260_v17  ;;  %v2114_v17 = vmul.f32 %v2112_v27, %v3863_v15 }
 0x22e   : > { %1979 = vrot.lane.b32.xlu1 %v1974_v52, %s2872_s16  ;;  %1977 = vrot.lane.b32.xlu0 %v1973_v63, %s2872_s16 }
 0x230   : > { %v1620_v38 = vpop.permute.xlu1 %1619  ;;  %v1618_v37 = vpop.permute.xlu0 %1617 }
 0x231   : > { %v4337_v57 = vadd.f32 %v1620_v38, %v4277_v30  ;;  %v4340_v48 = vadd.f32 %v1618_v37, %v4281_v23  ;;  %v2056_v30 = vstv %s2630_s9  ;;  %s4451_s9 = sld [smem:[#allocation9 + $0x9]] }
 0x232   : > { %2049 = vrot.lane.b32.xlu1 %v2044_v28, %s2873_s30  ;;  %2047 = vrot.lane.b32.xlu0 %v2043_v50, %s2873_s30  ;;  %v2058_v56 = vmul.f32 %v2056_v30, %v3863_v15  ;;  %v2057_v4 = vmul.f32 %v2056_v30, %v3868_v53 }
 0x234   : > { %v1634_v29 = vpop.permute.xlu1 %1633  ;;  %v1632_v7 = vpop.permute.xlu0 %1631 }
 0x235   : > { %v1638_v20 = vadd.f32 %v1634_v29, %v4292_v2  ;;  %v1637_v8 = vadd.f32 %v1632_v7, %v1553_v9  ;;  %v2128_v2 = vmul.f32 %v2126_v3, %v3863_v15 }
 0x236   : > { %2119 = vrot.lane.b32.xlu1 %v2114_v17, %s2874_s11  ;;  %2117 = vrot.lane.b32.xlu0 %v2113_v18, %s2874_s11 }
 0x238   : > { %v1648_v11 = vpop.permute.xlu1 %1647  ;;  %v1646_v61 = vpop.permute.xlu0 %1645 }
 0x239   : > { %v1652_v39 = vadd.f32 %v1648_v11, %v1568_v44  ;;  %v1651_v23 = vadd.f32 %v1646_v61, %v1567_v26 }
 0x23a   : > { %1993 = vrot.lane.b32.xlu1 %v1988_v46, %s2872_s16  ;;  %1991 = vrot.lane.b32.xlu0 %v1987_v16, %s2872_s16  ;;  %s2608_s16 = sld [smem:[#allocation6 + $0x14]] }
 0x23c   : > { %v1718_v14 = vpop.permute.xlu1 %1717  ;;  %v1716_v45 = vpop.permute.xlu0 %1715 }
 0x23d   : > { %v1722_v19 = vadd.f32 %v1718_v14, %v1638_v20  ;;  %v1721_v60 = vadd.f32 %v1716_v45, %v1637_v8 }
 0x23e   : > { %2063 = vrot.lane.b32.xlu1 %v2058_v56, %s2873_s30  ;;  %2061 = vrot.lane.b32.xlu0 %v2057_v4, %s2873_s30 }
 0x240   : > { %v1662_v9 = vpop.permute.xlu1 %1661  ;;  %v1660_v59 = vpop.permute.xlu0 %1659  ;;  %v1796_v42 = vstv %s2608_s16  ;;  %s4485_s16 = sld [smem:[#allocation9 + $0xe]] }
 0x241   : > { %v1666_v13 = vadd.f32 %v1662_v9, %v4307_v21  ;;  %v1665_v55 = vadd.f32 %v1660_v59, %v4310_v62  ;;  %v1798_v32 = vmul.f32 %v1796_v42, %v3863_v15  ;;  %v1797_v63 = vmul.f32 %v1796_v42, %v3868_v53 }
 0x242   : > { %2133 = vrot.lane.b32.xlu1 %v2128_v2, %s2874_s11  ;;  %2131 = vrot.lane.b32.xlu0 %v2127_v49, %s2874_s11 }
 0x243   : > { %v1799_v28 = vadd.f32 %v1797_v63, %v1721_v60 }
 0x244   : > { %v1732_v44 = vpop.permute.xlu1 %1731  ;;  %v1730_v26 = vpop.permute.xlu0 %1729 }
 0x245   : > { %v1736_v12 = vadd.f32 %v1732_v44, %v1652_v39  ;;  %v1735_v36 = vadd.f32 %v1730_v26, %v1651_v23 }
 0x246   : > { %2077 = vrot.lane.b32.xlu1 %v2072_v40, %s2873_s30  ;;  %2075 = vrot.lane.b32.xlu0 %v2071_v33, %s2873_s30  ;;  %s2609_s30 = sld [smem:[#allocation6 + $0x2d]] }
 0x248   : > { %v1676_v21 = vpop.permute.xlu1 %1675  ;;  %v1674_v58 = vpop.permute.xlu0 %1673 }
 0x249   : > { %v1680_v62 = vadd.f32 %v1676_v21, %v4317_v22  ;;  %v1679_v34 = vadd.f32 %v1674_v58, %v4320_v43  ;;  %v1800_v43 = vadd.f32 %v1798_v32, %v1722_v19 }
 0x24a   : > { %2147 = vrot.lane.b32.xlu1 %v2142_v41, %s2874_s11  ;;  %2145 = vrot.lane.b32.xlu0 %v2141_v31, %s2874_s11 }
 0x24c   : > { %v1746_v52 = vpop.permute.xlu1 %1745  ;;  %v1744_v47 = vpop.permute.xlu0 %1743  ;;  %v1802_v17 = vstv %s2609_s30  ;;  %s4487_s30 = sld [smem:[#allocation9 + $0xf]] }
 0x24d   : > { %v1750_v24 = vadd.f32 %v1746_v52, %v1666_v13  ;;  %v1749_v22 = vadd.f32 %v1744_v47, %v1665_v55  ;;  %v1804_v20 = vmul.f32 %v1802_v17, %v3863_v15  ;;  %v1803_v8 = vmul.f32 %v1802_v17, %v3868_v53 }
 0x24e   : > { %2161 = vrot.lane.b32.xlu1 %v2156_v25, %s2874_s11  ;;  %2159 = vrot.lane.b32.xlu0 %v2155_v1, %s2874_s11  ;;  %s2610_s11 = sld [smem:[#allocation6 + $0x46]] }
 0x24f   : > { %v1806_v11 = vadd.f32 %v1804_v20, %v1736_v12  ;;  %v1805_v61 = vadd.f32 %v1803_v8, %v1735_v36  ;;  %v2258_v8 = vstv %s2649_s14  ;;  %s4515_s14 = sld [smem:[#allocation9 + $0x15]] }
 0x250   : > { %v1840_v54 = vpop.permute.xlu1 %1839  ;;  %v1838_v27 = vpop.permute.xlu0 %1837 }
 0x251   : > { %v1844_v50 = vadd.f32 %v1840_v54, %v1800_v43  ;;  %v1843_v38 = vadd.f32 %v1838_v27, %v1799_v28  ;;  %v2180_v28 = vstv %s2179_s12  ;;  %s4509_s12 = sld [smem:[#allocation9 + $0x12]] }
 0x254   : > { %v1690_v37 = vpop.permute.xlu1 %1689  ;;  %v1688_v35 = vpop.permute.xlu0 %1687  ;;  %v1808_v45 = vstv %s2610_s11  ;;  %s4491_s11 = sld [smem:[#allocation9 + $0x10]] }
 0x255   : > { %v1694_v18 = vadd.f32 %v1690_v37, %v4327_v0  ;;  %v1693_v29 = vadd.f32 %v1688_v35, %v4330_v6  ;;  %v1810_v10 = vmul.f32 %v1808_v45, %v3863_v15  ;;  %v1809_v13 = vmul.f32 %v1808_v45, %v3868_v53 }
 0x256   : > { %v2188_v45 = vstv %s4423_s18  ;;  %s4522_s18 = sld [smem:[#allocation9 + $0x17]] }
 0x257   : > { %v1812_v33 = vadd.f32 %v1810_v10, %v1750_v24  ;;  %v1811_v44 = vadd.f32 %v1809_v13, %v1749_v22  ;;  %v2182_v22 = vstv %s2181_s23  ;;  %v2264_v13 = vstv %s4427_s25  ;;  %s4493_s23 = sld [smem:[#allocation9 + $0x11]]  ;;  %s2875_s25 = smov 12  }
 0x258   : > { %v1760_v7 = vpop.permute.xlu1 %1759  ;;  %v1758_v16 = vpop.permute.xlu0 %1757 }
 0x259   : > { %v4383_v46 = vadd.f32 %v1760_v7, %v1680_v62  ;;  %v4385_v30 = vadd.f32 %v1758_v16, %v1679_v34  ;;  %v2220_v7 = vstv %s2643_s13  ;;  %v2296_v16 = vstv %s2655_s15  ;;  %s4513_s13 = sld [smem:[#allocation9 + $0x13]]  ;;  %s4520_s15 = sld [smem:[#allocation9 + $0x16]] }
 0x25c   : > { %v1854_v39 = vpop.permute.xlu1 %1853  ;;  %v1852_v56 = vpop.permute.xlu0 %1851 }
 0x25d   : > { %v1858_v23 = vadd.f32 %v1854_v39, %v1806_v11  ;;  %v1857_v0 = vadd.f32 %v1852_v56, %v1805_v61 }
 0x260   : > { %v1924_v4 = vpop.permute.xlu1 %1923  ;;  %v1922_v6 = vpop.permute.xlu0 %1921 }
 0x261   : > { %v1928_v3 = vadd.f32 %v1924_v4, %v1844_v50  ;;  %v1927_v14 = vadd.f32 %v1922_v6, %v1843_v38 }
 0x264   : > { %v1704_v19 = vpop.permute.xlu1 %1703  ;;  %v1702_v2 = vpop.permute.xlu0 %1701 }
 0x265   : > { %v4388_v60 = vadd.f32 %v1704_v19, %v4337_v57  ;;  %v4391_v49 = vadd.f32 %v1702_v2, %v4340_v48 }
 0x268   : > { %v1774_v9 = vpop.permute.xlu1 %1773  ;;  %v1772_v55 = vpop.permute.xlu0 %1771 }
 0x269   : > { %v4395_v59 = vadd.f32 %v1774_v9, %v1694_v18  ;;  %v4397_v40 = vadd.f32 %v1772_v55, %v1693_v29  ;;  %v2226_v9 = vstv %s4425_s19  ;;  %v2302_v55 = vstv %s4429_s26  ;;  %s4527_s19 = sld [smem:[#allocation9 + $0x14]]  ;;  %s2876_s26 = smov 24  }
 0x26c   : > { %v1868_v51 = vpop.permute.xlu1 %1867  ;;  %v1866_v57 = vpop.permute.xlu0 %1865 }
 0x26d   : > { %v4399_v12 = vadd.f32 %v1868_v51, %v1812_v33  ;;  %v4401_v26 = vadd.f32 %v1866_v57, %v1811_v44 }
 0x270   : > { %v1938_v48 = vpop.permute.xlu1 %1937  ;;  %v1936_v41 = vpop.permute.xlu0 %1935 }
 0x271   : > { %v1942_v36 = vadd.f32 %v1938_v48, %v1858_v23  ;;  %v1941_v15 = vadd.f32 %v1936_v41, %v1857_v0 }
 0x274   : > { %v2008_v31 = vpop.permute.xlu1 %2007  ;;  %v2006_v53 = vpop.permute.xlu0 %2005 }
 0x275   : > { %v2012_v5 = vadd.f32 %v2008_v31, %v1928_v3  ;;  %v2011_v21 = vadd.f32 %v2006_v53, %v1927_v14 }
 0x278   : > { %v4403_v42 = vpop.permute.xlu1 %1787  ;;  %v4405_v62 = vpop.permute.xlu0 %1785 }
 0x27c   : > { %v4407_v58 = vpop.permute.xlu1 %1881  ;;  %v4409_v34 = vpop.permute.xlu0 %1879 }
 0x280   : > { %v4411_v25 = vpop.permute.xlu1 %1951  ;;  %v4413_v1 = vpop.permute.xlu0 %1949 }
 0x284   : > { %v2022_v32 = vpop.permute.xlu1 %2021  ;;  %v2020_v52 = vpop.permute.xlu0 %2019 }
 0x285   : > { %v2026_v61 = vadd.f32 %v2022_v32, %v1942_v36  ;;  %v2025_v4 = vadd.f32 %v2020_v52, %v1941_v15 }
 0x288   : > { %v2092_v63 = vpop.permute.xlu1 %2091  ;;  %v2090_v47 = vpop.permute.xlu0 %2089 }
 0x289   : > { %v2096_v24 = vadd.f32 %v2092_v63, %v2012_v5  ;;  %v2095_v43 = vadd.f32 %v2090_v47, %v2011_v21 }
 0x28b   : > { %v2168_v54 = vmax.f32 %v2096_v24, 0.0  ;;  %v2167_v50 = vmax.f32 %v2095_v43, 0.0 }
 0x28c   : > { %v4415_v27 = vpop.permute.xlu1 %1895  ;;  %v4417_v37 = vpop.permute.xlu0 %1893 }
 0x28d   : > { %v2184_v38 = vmul.f32 %v2182_v22, %v2168_v54  ;;  %v2183_v17 = vmul.f32 %v2182_v22, %v2167_v50  ;;  %v2222_v23 = vmul.f32 %v2220_v7, %v2168_v54  ;;  %v2260_v56 = vmul.f32 %v2258_v8, %v2168_v54 }
 0x28e   : > { %v2298_v0 = vmul.f32 %v2296_v16, %v2168_v54  ;;  %v2221_v3 = vmul.f32 %v2220_v7, %v2167_v50  ;;  %v2259_v6 = vmul.f32 %v2258_v8, %v2167_v50  ;;  %v2297_v14 = vmul.f32 %v2296_v16, %v2167_v50 }
 0x28f   : > { %v2186_v18 = vadd.f32 %v2184_v38, %v2180_v28  ;;  %v2185_v35 = vadd.f32 %v2183_v17, %v2180_v28  ;;  %v2224_v51 = vadd.f32 %v2222_v23, %v2180_v28  ;;  %v2262_v44 = vadd.f32 %v2260_v56, %v2180_v28 }
 0x290   : > { %v4419_v29 = vpop.permute.xlu1 %1965  ;;  %v4421_v20 = vpop.permute.xlu0 %1963  ;;  %v2300_v57 = vadd.f32 %v2298_v0, %v2180_v28  ;;  %v2223_v36 = vadd.f32 %v2221_v3, %v2180_v28  ;;  %v2261_v41 = vadd.f32 %v2259_v6, %v2180_v28  ;;  %v2299_v15 = vadd.f32 %v2297_v14, %v2180_v28  ;;  %v2745_v6 = vld [vmem:[%s3044_s10 + $0x4] sm:$0xff] }
 0x291   : > { %v1956_v56 = vadd.f32 %v4411_v25, %v4399_v12 }
 0x294   : > { %v2036_v11 = vpop.permute.xlu1 %2035  ;;  %v4431_v39 = vpop.permute.xlu0 %2033 }
 0x298   : > { %v2106_v19 = vpop.permute.xlu1 %2105  ;;  %v2104_v10 = vpop.permute.xlu0 %2103 }
 0x299   : > { %v2110_v2 = vadd.f32 %v2106_v19, %v2026_v61  ;;  %v2109_v33 = vadd.f32 %v2104_v10, %v2025_v4  ;;  %v2744_v4 = vld [vmem:[%s3044_s10 + $0xc] sm:$0xf]  ;;  %v1955_v19 = vadd.f32 %v4413_v1, %v4401_v26  ;;  %s4474_s10 = sld [smem:[#allocation9 + $0xc]] }
 0x29b   : > { %v2170_v48 = vmax.f32 %v2110_v2, 0.0  ;;  %v2169_v31 = vmax.f32 %v2109_v33, 0.0  ;;  %v1820_v2 = vstv %s4443_s29  ;;  %v2039_v10 = vadd.f32 %v4431_v39, %v1955_v19  ;;  %s2664_s29 = sshll.u32 %s4704_s4, 4 }
 0x29c   : > { %v4439_v5 = vpop.permute.xlu1 %1909  ;;  %v4441_v63 = vpop.permute.xlu0 %1907  ;;  %v2270_v33 = vstv %s4453_s28  ;;  %v1826_v39 = vstv %s4458_s8  ;;  %s284_s28 = scalar_lea.vmem %s4562_s5, %s2664_s29 }
 0x29d   : > { %v2190_v53 = vmul.f32 %v2188_v45, %v2170_v48  ;;  %v2228_v21 = vmul.f32 %v2226_v9, %v2170_v48  ;;  %v2266_v32 = vmul.f32 %v2264_v13, %v2170_v48  ;;  %v2304_v52 = vmul.f32 %v2302_v55, %v2170_v48 }
 0x29e   : > { %v2189_v24 = vmul.f32 %v2188_v45, %v2169_v31  ;;  %v2227_v47 = vmul.f32 %v2226_v9, %v2169_v31  ;;  %v2265_v22 = vmul.f32 %v2264_v13, %v2169_v31  ;;  %v2303_v43 = vmul.f32 %v2302_v55, %v2169_v31 }
 0x29f   : > { %v2192_v54 = vadd.f32 %v2190_v53, %v2186_v18  ;;  %v2230_v50 = vadd.f32 %v2228_v21, %v2224_v51  ;;  %v2268_v38 = vadd.f32 %v2266_v32, %v2262_v44  ;;  %v2306_v17 = vadd.f32 %v2304_v52, %v2300_v57 }
 0x2a0   : > { %v2191_v28 = vadd.f32 %v2189_v24, %v2185_v35  ;;  %v2229_v7 = vadd.f32 %v2227_v47, %v2223_v36  ;;  %v2267_v8 = vadd.f32 %v2265_v22, %v2261_v41  ;;  %v2305_v16 = vadd.f32 %v2303_v43, %v2299_v15  ;;  %v4445_v61 = vpop.permute.xlu1 %1979  ;;  %v4449_v23 = vpop.permute.xlu0 %1977 }
 0x2a1   : > { %v1814_v18 = vstv %s4437_s27  ;;  %v2040_v45 = vadd.f32 %v2036_v11, %v1956_v56  ;;  %v2194_v13 = vstv %s4447_s7  ;;  %v2232_v55 = vstv %s4451_s9  ;;  %s2877_s27 = smov 36  }
 0x2a2   : > { %v1816_v3 = vmul.f32 %v2744_v4, %v1814_v18  ;;  %v1815_v14 = vmul.f32 %v2745_v6, %v1814_v18  ;;  %v2308_v57 = vstv %s4455_s6  ;;  %v1822_v36 = vmul.f32 %v2744_v4, %v1820_v2 }
 0x2a3   : > { %v1821_v41 = vmul.f32 %v2745_v6, %v1820_v2  ;;  %v1791_v2 = vadd.f32 %v4405_v62, %v4391_v49 }
 0x2a4   : > { %v2050_v35 = vpop.permute.xlu1 %2049  ;;  %v2048_v0 = vpop.permute.xlu0 %2047  ;;  %v1818_v25 = vadd.f32 %v1816_v3, %v4383_v46  ;;  %v1817_v44 = vadd.f32 %v1815_v14, %v4385_v30 }
 0x2a6   : > { %v1886_v1 = vadd.f32 %v4407_v58, %v1818_v25  ;;  %v1885_v11 = vadd.f32 %v4409_v34, %v1817_v44 }
 0x2a8   : > { %v2120_v9 = vpop.permute.xlu1 %2119  ;;  %v2118_v12 = vpop.permute.xlu0 %2117 }
 0x2a9   : > { %v2124_v51 = vadd.f32 %v2120_v9, %v2040_v45  ;;  %v2123_v48 = vadd.f32 %v2118_v12, %v2039_v10  ;;  %v1827_v10 = vmul.f32 %v2745_v6, %v1826_v39  ;;  %v2200_v9 = vstv %s4474_s10 }
 0x2aa   : > { %v2244_v6 = vstv %s4493_s23 }
 0x2ab   : > { %v2172_v26 = vmax.f32 %v2124_v51, 0.0  ;;  %v2171_v15 = vmax.f32 %v2123_v48, 0.0 }
 0x2ac   : > { %v4479_v31 = vpop.permute.xlu1 %1993  ;;  %v4483_v32 = vpop.permute.xlu0 %1991 }
 0x2ad   : > { %v2196_v46 = vmul.f32 %v2194_v13, %v2172_v26  ;;  %v2234_v53 = vmul.f32 %v2232_v55, %v2172_v26  ;;  %v2272_v30 = vmul.f32 %v2270_v33, %v2172_v26  ;;  %v2310_v21 = vmul.f32 %v2308_v57, %v2172_v26 }
 0x2ae   : > { %v2195_v52 = vmul.f32 %v2194_v13, %v2171_v15  ;;  %v2233_v58 = vmul.f32 %v2232_v55, %v2171_v15  ;;  %v2271_v24 = vmul.f32 %v2270_v33, %v2171_v15  ;;  %v2309_v34 = vmul.f32 %v2308_v57, %v2171_v15 }
 0x2af   : > { %v4489_v47 = vadd.f32 %v2196_v46, %v2192_v54  ;;  %v2236_v22 = vadd.f32 %v2234_v53, %v2230_v50  ;;  %v2274_v43 = vadd.f32 %v2272_v30, %v2268_v38  ;;  %v2312_v18 = vadd.f32 %v2310_v21, %v2306_v17 }
 0x2b0   : > { %v4495_v56 = vadd.f32 %v2195_v52, %v2191_v28  ;;  %v2235_v3 = vadd.f32 %v2233_v58, %v2229_v7  ;;  %v2273_v14 = vadd.f32 %v2271_v24, %v2267_v8  ;;  %v2311_v19 = vadd.f32 %v2309_v34, %v2305_v16  ;;  %v2064_v45 = vpop.permute.xlu1 %2063  ;;  %v2062_v17 = vpop.permute.xlu0 %2061 }
 0x2b1   : > { %v1792_v54 = vadd.f32 %v4403_v42, %v4388_v60  ;;  %v1970_v50 = vadd.f32 %v4419_v29, %v1886_v1  ;;  %v1828_v38 = vmul.f32 %v2744_v4, %v1826_v39  ;;  %v1969_v28 = vadd.f32 %v4421_v20, %v1885_v11 }
 0x2b2   : > { %v1824_v8 = vadd.f32 %v1822_v36, %v4395_v59  ;;  %v1823_v16 = vadd.f32 %v1821_v41, %v4397_v40  ;;  %v2238_v55 = vstv %s4481_s24  ;;  %v2276_v29 = vstv %s4485_s16 }
 0x2b3   : > { %v2054_v7 = vadd.f32 %v2050_v35, %v1970_v50  ;;  %v2053_v13 = vadd.f32 %v2048_v0, %v1969_v28  ;;  %v1830_v42 = vadd.f32 %v1828_v38, %v1792_v54  ;;  %v2314_v4 = vstv %s4487_s30 }
 0x2b4   : > { %v2134_v60 = vpop.permute.xlu1 %2133  ;;  %v2132_v51 = vpop.permute.xlu0 %2131  ;;  %v1900_v49 = vadd.f32 %v4415_v27, %v1824_v8  ;;  %v1899_v62 = vadd.f32 %v4417_v37, %v1823_v16  ;;  %v1829_v20 = vadd.f32 %v1827_v10, %v1791_v2  ;;  %v2206_v0 = vstv %s4491_s11 }
 0x2b5   : > { %v2138_v33 = vadd.f32 %v2134_v60, %v2054_v7  ;;  %v2137_v59 = vadd.f32 %v2132_v51, %v2053_v13  ;;  %v1914_v40 = vadd.f32 %v4439_v5, %v1830_v42  ;;  %v2282_v58 = vstv %s4509_s12 }
 0x2b6   : > { %v1913_v12 = vadd.f32 %v4441_v63, %v1829_v20  ;;  %v1984_v27 = vadd.f32 %v4445_v61, %v1900_v49  ;;  %v1983_v37 = vadd.f32 %v4449_v23, %v1899_v62  ;;  %v2212_v7 = vstv %s4527_s19 }
 0x2b7   : > { %v2174_v35 = vmax.f32 %v2138_v33, 0.0  ;;  %v2173_v25 = vmax.f32 %v2137_v59, 0.0 }
 0x2b8   : > { %v2078_v44 = vpop.permute.xlu1 %2077  ;;  %v2076_v41 = vpop.permute.xlu0 %2075  ;;  %v2068_v15 = vadd.f32 %v2064_v45, %v1984_v27  ;;  %v2067_v23 = vadd.f32 %v2062_v17, %v1983_v37  ;;  %v2288_v17 = vstv %s4520_s15 }
 0x2b9   : > { %v2202_v57 = vmul.f32 %v2200_v9, %v2174_v35  ;;  %v2240_v48 = vmul.f32 %v2238_v55, %v2174_v35  ;;  %v2278_v5 = vmul.f32 %v2276_v29, %v2174_v35  ;;  %v2316_v36 = vmul.f32 %v2314_v4, %v2174_v35 }
 0x2ba   : > { %v2201_v26 = vmul.f32 %v2200_v9, %v2173_v25  ;;  %v2239_v1 = vmul.f32 %v2238_v55, %v2173_v25  ;;  %v2277_v11 = vmul.f32 %v2276_v29, %v2173_v25  ;;  %v2315_v39 = vmul.f32 %v2314_v4, %v2173_v25 }
 0x2bb   : > { %v2242_v63 = vadd.f32 %v2240_v48, %v2236_v22  ;;  %v2280_v61 = vadd.f32 %v2278_v5, %v2274_v43  ;;  %v2318_v46 = vadd.f32 %v2316_v36, %v2312_v18  ;;  %v2204_v54 = vadd.f32 %v2202_v57, %v4489_v47 }
 0x2bc   : > { %v2241_v53 = vadd.f32 %v2239_v1, %v2235_v3  ;;  %v2279_v30 = vadd.f32 %v2277_v11, %v2273_v14  ;;  %v2317_v21 = vadd.f32 %v2315_v39, %v2311_v19  ;;  %v2148_v52 = vpop.permute.xlu1 %2147  ;;  %v2146_v34 = vpop.permute.xlu0 %2145  ;;  %v2203_v45 = vadd.f32 %v2201_v26, %v4495_v56 }
 0x2bd   : > { %v2152_v24 = vadd.f32 %v2148_v52, %v2068_v15  ;;  %v1998_v22 = vadd.f32 %v4479_v31, %v1914_v40  ;;  %v1997_v43 = vadd.f32 %v4483_v32, %v1913_v12  ;;  %v2320_v18 = vstv %s4513_s13 }
 0x2be   : > { %v2151_v50 = vadd.f32 %v2146_v34, %v2067_v23  ;;  %v2250_v3 = vstv %s4515_s14  ;;  %v2326_v14 = vstv %s4522_s18 }
 0x2bf   : > { %v2176_v38 = vmax.f32 %v2152_v24, 0.0  ;;  %v2082_v19 = vadd.f32 %v2078_v44, %v1998_v22  ;;  %v2081_v2 = vadd.f32 %v2076_v41, %v1997_v43 }
 0x2c0   : > { %v2175_v28 = vmax.f32 %v2151_v50, 0.0  ;;  %v2162_v10 = vpop.permute.xlu1 %2161  ;;  %v2160_v56 = vpop.permute.xlu0 %2159 }
 0x2c1   : > { %v2208_v9 = vmul.f32 %v2206_v0, %v2176_v38  ;;  %v2246_v8 = vmul.f32 %v2244_v6, %v2176_v38  ;;  %v2284_v47 = vmul.f32 %v2282_v58, %v2176_v38  ;;  %v2322_v16 = vmul.f32 %v2320_v18, %v2176_v38 }
 0x2c2   : > { %v2207_v13 = vmul.f32 %v2206_v0, %v2175_v28  ;;  %v2245_v31 = vmul.f32 %v2244_v6, %v2175_v28  ;;  %v2283_v55 = vmul.f32 %v2282_v58, %v2175_v28  ;;  %v2321_v32 = vmul.f32 %v2320_v18, %v2175_v28 }
 0x2c3   : > { %v2166_v60 = vadd.f32 %v2162_v10, %v2082_v19  ;;  %v2165_v42 = vadd.f32 %v2160_v56, %v2081_v2  ;;  %v2248_v29 = vadd.f32 %v2246_v8, %v2242_v63  ;;  %v2286_v4 = vadd.f32 %v2284_v47, %v2280_v61 }
 0x2c4   : > { %v2247_v33 = vadd.f32 %v2245_v31, %v2241_v53  ;;  %v2285_v51 = vadd.f32 %v2283_v55, %v2279_v30  ;;  %v2324_v49 = vadd.f32 %v2322_v16, %v2318_v46  ;;  %v2323_v62 = vadd.f32 %v2321_v32, %v2317_v21 }
 0x2c5   : > { %v2178_v20 = vmax.f32 %v2166_v60, 0.0  ;;  %v2177_v59 = vmax.f32 %v2165_v42, 0.0  ;;  %v2210_v40 = vadd.f32 %v2208_v9, %v2204_v54  ;;  %v2209_v35 = vadd.f32 %v2207_v13, %v2203_v45 }
 0x2c7   : > { %v2252_v12 = vmul.f32 %v2250_v3, %v2178_v20  ;;  %v2290_v27 = vmul.f32 %v2288_v17, %v2178_v20  ;;  %v2328_v37 = vmul.f32 %v2326_v14, %v2178_v20  ;;  %v2251_v25 = vmul.f32 %v2250_v3, %v2177_v59 }
 0x2c8   : > { %v2289_v0 = vmul.f32 %v2288_v17, %v2177_v59  ;;  %v2327_v6 = vmul.f32 %v2326_v14, %v2177_v59  ;;  %v2214_v44 = vmul.f32 %v2212_v7, %v2178_v20  ;;  %v2213_v57 = vmul.f32 %v2212_v7, %v2177_v59 }
 0x2c9   : > { %v2254_v48 = vadd.f32 %v2252_v12, %v2248_v29  ;;  %v2253_v5 = vadd.f32 %v2251_v25, %v2247_v33  ;;  %v2292_v36 = vadd.f32 %v2290_v27, %v2286_v4  ;;  %v2330_v41 = vadd.f32 %v2328_v37, %v2324_v49 }
 0x2ca   : > { %v2291_v26 = vadd.f32 %v2289_v0, %v2285_v51  ;;  %v2329_v1 = vadd.f32 %v2327_v6, %v2323_v62  ;;  %v2216_v11 = vadd.f32 %v2214_v44, %v2210_v40  ;;  %v2215_v39 = vadd.f32 %v2213_v57, %v2209_v35 }
 0x2cb   : > { %v2256_v15 = vmax.f32 %v2254_v48, 0.0  ;;  %v2255_v63 = vmax.f32 %v2253_v5, 0.0  ;;  %v2294_v61 = vmax.f32 %v2292_v36, 0.0  ;;  %v2332_v23 = vmax.f32 %v2330_v41, 0.0 }
 0x2cc   : > { %v2293_v46 = vmax.f32 %v2291_v26, 0.0  ;;  %v2331_v53 = vmax.f32 %v2329_v1, 0.0  ;;  %v2218_v24 = vmax.f32 %v2216_v11, 0.0  ;;  %v2217_v34 = vmax.f32 %v2215_v39, 0.0 }
 0x2cd   : > { %2337 = vrot.lane.b32.xlu1 %v2256_v15, %s2875_s25  ;;  %2335 = vrot.lane.b32.xlu0 %v2255_v63, %s2875_s25 }
 0x2d1   : > { %2345 = vrot.lane.b32.xlu1 %v2294_v61, %s2876_s26  ;;  %2343 = vrot.lane.b32.xlu0 %v2293_v46, %s2876_s26 }
 0x2d5   : > { %2353 = vrot.lane.b32.xlu1 %v2332_v23, %s2877_s27  ;;  %2351 = vrot.lane.b32.xlu0 %v2331_v53, %s2877_s27 }
 0x33f   : > { %v2338_v30 = vpop.permute.xlu1 %2337  ;;  %v2336_v21 = vpop.permute.xlu0 %2335 }
 0x340   : > { %v2359_v54 = vsel %vm2357_vm0, %v2218_v24, %v2338_v30  ;;  %v2358_v45 = vsel %vm2357_vm0, %v2217_v34, %v2336_v21 }
 0x343   : > { %v2346_v52 = vpop.permute.xlu1 %2345  ;;  %v2344_v58 = vpop.permute.xlu0 %2343 }
 0x344   : > { %v2362_v22 = vsel %vm2360_vm1, %v2359_v54, %v2346_v52  ;;  %v2361_v43 = vsel %vm2360_vm1, %v2358_v45, %v2344_v58 }
 0x347   : > { %v2354_v18 = vpop.permute.xlu1 %2353  ;;  %v2352_v50 = vpop.permute.xlu0 %2351 }
 0x348   : > { %v2365_v38 = vsel %vm2363_vm2, %v2362_v22, %v2354_v18  ;;  %v2364_v3 = vsel %vm2363_vm2, %v2361_v43, %v2352_v50 }
 0x349   : > { %2369 = vst.msk [vmem:[%s284_s28 + $0x8] sm:$0xf] %vm2368_vm3, %v2365_v38 }
 0x34a   : > { %2367 = vst.msk [vmem:[%s284_s28] sm:$0xff] %vm2366_vm4, %v2364_v3 }
 0x34b PF: > { %s4698_s4 = smov %s2998_s20  ;;  %p18_p3 = scmp.ge.s32.totalorder %s2988_s17, 4  }
 0x34c   : > { %s4699_s20 = smov %s2855_s21  ;;  %s4700_s21 = smov %s2859_s22 }
 0x34d   : > { %s4701_s22 = smov %s4698_s4  ;;  %s4702_s23 = smov %s2988_s17 }
 0x34e   :  { %20 = sbr.rel (!%p18_p3) target bundleno = 7 (0x7), region = 93 }
 0x355   :  { %2391 = vsyncpa [#allocation4], 1 }
 0x356   :  { %2393 = vsyncpa [#allocation4 + $0x1], 1 }
 0x357   :  { %2394 = vsyncpa [#allocation5], 1 }
 0x358   :  { %2396 = vsyncpa [#allocation5 + $0x1], 1 }
 0x359   :  { %2397 = vsyncpa [#allocation8], 1 }

</bundles_post_ra>
